<compile_context>
chip_gen: v7x
topology: tpu7x:2x2x1
jax: 0.10.0
libtpu: 0.0.40
codegen_flags: <defaults>
</compile_context>

<pallas_src>
import numpy as np

import jax
import jax.numpy as jnp
from jax.experimental import pallas as pl
from jax.experimental.pallas import tpu as pltpu


# ----------------------------- static geometry ------------------------------

H0, W0, C0 = 24, 24, 3                     # input
K1, C1 = 3, 28                             # conv1
H1, W1 = H0 - K1 + 1, W0 - K1 + 1          # 22, 22
HP1, WP1 = 11, 11                          # maxpool(3, 2, ceil_mode=True) on 22x22
K2, C2 = 3, 48                             # conv2
H2, W2 = HP1 - K2 + 1, WP1 - K2 + 1        # 9, 9
HP2, WP2 = 4, 4                            # maxpool(3, 2) on 9x9
K3, C3 = 2, 64                             # conv3
H3, W3 = HP2 - K3 + 1, WP2 - K3 + 1        # 3, 3
D4 = 128                                   # dense4
NH = 6                                     # heads: 2 (det) + 4 (box)

TB_MAX = 8                                 # images per grid step


def _rup(x, m):
    return (x + m - 1) // m * m


# lane-packed widths (rows = height, lanes = width*channels)
L0 = W0 * C0                               # 72
L1 = W1 * C1                               # 616
LP1 = WP1 * C1                             # 308
L2 = W2 * C2                               # 432
LP2 = WP2 * C2                             # 192
L3 = W3 * C3                               # 192

KS1, KS1P = L0, _rup(L0, 8)                # conv1 K and 8-aligned row stride
KS2, KS2P = LP1, _rup(LP1, 8)              # (308, 312)
KS3, KS3P = LP2, _rup(LP2, 8)              # (192, 192)


# ------------------------------- fused kernel -------------------------------

def _rnet_kernel(x_ref, g1_ref, bp1_ref, g2_ref, bp2_ref, g3_ref, bp3_ref,
                 w4_ref, bp4_ref, w5_ref, b5_ref,
                 det_ref, box_ref,
                 rp1_scr, p1_scr, rp2_scr, p2_scr):
    tb = x_ref.shape[0]

    def conv_prelu(x, g_ref, bp_ref, kh, h_out, k_len, k_stride, n_out):
        """Valid stride-1 conv in packed layout: kh shifted rank-2 MXU GEMMs,
        f32 accumulation, fused bias + PReLU epilogue (f32)."""
        acc = jnp.zeros((h_out, n_out), jnp.float32)
        for i in range(kh):
            xi = x[i:i + h_out, :].astype(jnp.bfloat16)
            gi = g_ref[i * k_stride:i * k_stride + k_len, :]
            acc = acc + jnp.dot(xi, gi, preferred_element_type=jnp.float32)
        y = acc + bp_ref[0:1, :]
        return jnp.where(y > 0.0, y, y * bp_ref[1:2, :])

    def maxpool(y, h_in, w_in, c, h_out, w_out, k, s, row_scr, out_scr):
        """MaxPool2d(k, s) on the packed layout.  Windows are clipped at the
        border, which matches torch's ceil_mode (implicit -inf padding)."""
        for hp in range(h_out):                       # pool along rows
            r0 = hp * s
            m = y[r0:r0 + 1, :]
            for r in range(r0 + 1, min(r0 + k, h_in)):
                m = jnp.maximum(m, y[r:r + 1, :])
            row_scr[hp:hp + 1, :] = m
        xr = row_scr[...]
        for wp in range(w_out):                       # pool along lanes (width)
            q0 = wp * s
            m = xr[:, q0 * c:(q0 + 1) * c]
            for q in range(q0 + 1, min(q0 + k, w_in)):
                m = jnp.maximum(m, xr[:, q * c:(q + 1) * c])
            out_scr[:, wp * c:(wp + 1) * c] = m
        return out_scr[...]

    @pl.loop(0, tb)
    def _(t):
        x0 = x_ref[t].astype(jnp.float32)                               # (24, 72)

        # conv1 (3->28, k3) + PReLU, then maxpool 3/2 ceil_mode=True
        y1 = conv_prelu(x0, g1_ref, bp1_ref, K1, H1, KS1, KS1P, L1)     # (22, 616)
        p1 = maxpool(y1, H1, W1, C1, HP1, WP1, 3, 2, rp1_scr, p1_scr)   # (11, 308)

        # conv2 (28->48, k3) + PReLU, then maxpool 3/2 (floor)
        y2 = conv_prelu(p1, g2_ref, bp2_ref, K2, H2, KS2, KS2P, L2)     # (9, 432)
        p2 = maxpool(y2, H2, W2, C2, HP2, WP2, 3, 2, rp2_scr, p2_scr)   # (4, 192)

        # conv3 (48->64, k2) + PReLU
        y3 = conv_prelu(p2, g3_ref, bp3_ref, K3, H3, KS3, KS3P, L3)     # (3, 192)

        # dense4 (576->128) + PReLU: sum of 3 row GEMMs against the
        # flatten-order-permuted weight (torch Flatten = c, then w, then h).
        acc = jnp.zeros((1, D4), jnp.float32)
        for h in range(H3):
            acc = acc + jnp.dot(y3[h:h + 1, :].astype(jnp.bfloat16),
                                w4_ref[h * L3:(h + 1) * L3, :],
                                preferred_element_type=jnp.float32)
        y4 = acc + bp4_ref[0:1, :]
        y4 = jnp.where(y4 > 0.0, y4, y4 * bp4_ref[1:2, :])              # (1, 128)

        # fused heads: [det | box] in one GEMM, sigmoid on the det columns.
        z = jnp.dot(y4.astype(jnp.bfloat16), w5_ref[...],
                    preferred_element_type=jnp.float32) + b5_ref[...]   # (1, 6)
        det_ref[t] = 1.0 / (1.0 + jnp.exp(-z[:, 0:2]))
        box_ref[t] = z[:, 2:6]


# --------------------------- parameter re-layout -----------------------------

def _pack_conv(w_hwio, b, p, w_in, w_out):
    """Pack an HWIO conv weight into per-row-shift block matrices so that a
    valid stride-1 conv over the packed (rows=h, lanes=w*cin) layout becomes
    kh rank-2 matmuls:  out = sum_i  x[i:i+h_out, :] @ G[i]."""
    w_hwio = np.asarray(w_hwio, np.float32)
    kh, kw, cin, cout = w_hwio.shape
    k_len, k_stride, n_out = w_in * cin, _rup(w_in * cin, 8), w_out * cout
    g = np.zeros((kh, k_stride, n_out), np.float32)
    for i in range(kh):
        for wo in range(w_out):
            for j in range(kw):
                wi = wo + j
                g[i, wi * cin:(wi + 1) * cin, wo * cout:(wo + 1) * cout] = w_hwio[i, j]
    bp = np.stack([np.tile(np.asarray(b, np.float32), w_out),
                   np.tile(np.asarray(p, np.float32), w_out)], axis=0)
    return g.reshape(kh * k_stride, n_out), bp


def _pack_dense4(w4):
    """Permute the (576, 128) dense4 weight rows so it consumes the packed
    conv3 output directly.  Torch Flatten (transpose(3,2) on NCHW) gives flat
    index k = c*(H3*W3) + w*H3 + h; packed activation row h holds lane w*C3+c."""
    w4 = np.asarray(w4, np.float32)
    out = np.zeros((H3, W3 * C3, D4), np.float32)
    for h in range(H3):
        for w in range(W3):
            for c in range(C3):
                out[h, w * C3 + c] = w4[c * (H3 * W3) + w * H3 + h]
    return out.reshape(H3 * W3 * C3, D4)


def pack_params(params):
    """One-time (parameter-load time) re-layout of raw RNet parameters into
    the operands the fused kernel consumes (bf16 matmul weights, f32 epilogue)."""
    g1, bp1 = _pack_conv(params["w1"], params["b1"], params["p1"], W0, W1)
    g2, bp2 = _pack_conv(params["w2"], params["b2"], params["p2"], WP1, W2)
    g3, bp3 = _pack_conv(params["w3"], params["b3"], params["p3"], WP2, W3)
    w4 = _pack_dense4(params["w4"])
    bp4 = np.stack([np.asarray(params["b4"], np.float32),
                    np.asarray(params["p4"], np.float32)], axis=0)
    w5 = np.concatenate([np.asarray(params["w5_1"], np.float32),
                         np.asarray(params["w5_2"], np.float32)], axis=1)
    b5 = np.concatenate([np.asarray(params["b5_1"], np.float32),
                         np.asarray(params["b5_2"], np.float32)]).reshape(1, NH)
    bf, f32 = jnp.bfloat16, jnp.float32
    return {
        "g1": jnp.asarray(g1, bf), "bp1": jnp.asarray(bp1, f32),
        "g2": jnp.asarray(g2, bf), "bp2": jnp.asarray(bp2, f32),
        "g3": jnp.asarray(g3, bf), "bp3": jnp.asarray(bp3, f32),
        "w4": jnp.asarray(w4, bf), "bp4": jnp.asarray(bp4, f32),
        "w5": jnp.asarray(w5, bf), "b5": jnp.asarray(b5, f32),
    }


_WEIGHT_KEYS = ("g1", "bp1", "g2", "bp2", "g3", "bp3", "w4", "bp4", "w5", "b5")


# ------------------------------- RNet forward --------------------------------

@jax.jit
def rnet_forward(x_nchw, packed):
    """x_nchw: (N, 3, 24, 24) float32 -> (det (N, 2), box (N, 4))."""
    n = x_nchw.shape[0]
    tb = min(TB_MAX, n)
    n_pad = pl.cdiv(n, tb) * tb

    # NCHW -> NHWC -> packed (rows = h, lanes = w*c); bf16 halves the input DMA.
    x = jnp.transpose(x_nchw, (0, 2, 3, 1)).reshape(n, H0, L0)
    if n_pad != n:
        x = jnp.pad(x, ((0, n_pad - n), (0, 0), (0, 0)))
    x = x.astype(jnp.bfloat16)

    weights = [packed[k] for k in _WEIGHT_KEYS]
    const2 = lambda b: (0, 0)                       # weights resident in VMEM
    in_specs = [pl.BlockSpec((tb, H0, L0), lambda b: (b, 0, 0))]
    in_specs += [pl.BlockSpec(w.shape, const2) for w in weights]

    det, box = pl.pallas_call(
        _rnet_kernel,
        out_shape=(jax.ShapeDtypeStruct((n_pad, 1, 2), jnp.float32),
                   jax.ShapeDtypeStruct((n_pad, 1, 4), jnp.float32)),
        grid=(n_pad // tb,),
        in_specs=in_specs,
        out_specs=(pl.BlockSpec((tb, 1, 2), lambda b: (b, 0, 0)),
                   pl.BlockSpec((tb, 1, 4), lambda b: (b, 0, 0))),
        scratch_shapes=[pltpu.VMEM((HP1, L1), jnp.float32),   # pool1 row pass
                        pltpu.VMEM((HP1, LP1), jnp.float32),  # pool1 output
                        pltpu.VMEM((HP2, L2), jnp.float32),   # pool2 row pass
                        pltpu.VMEM((HP2, LP2), jnp.float32)], # pool2 output
        compiler_params=pltpu.CompilerParams(
            dimension_semantics=("parallel",)),
    )(x, *weights)
    return det.reshape(n_pad, 2)[:n], box.reshape(n_pad, 4)[:n]


# ------------------------------ parameter init -------------------------------

def init_params(key):
    keys = jax.random.split(key, 12)

    def nrm(k, shape, scale=0.1):
        return scale * jax.random.normal(k, shape, dtype=jnp.float32)

    return {
        # conv weights in HWIO layout (real torch OIHW weights would be
        # transposed (2, 3, 1, 0) first).
        "w1": nrm(keys[0], (3, 3, C0, C1)),
        "b1": nrm(keys[1], (C1,), 0.01),
        "p1": jnp.full((C1,), 0.25, jnp.float32),
        "w2": nrm(keys[2], (3, 3, C1, C2)),
        "b2": nrm(keys[3], (C2,), 0.01),
        "p2": jnp.full((C2,), 0.25, jnp.float32),
        "w3": nrm(keys[4], (2, 2, C2, C3)),
        "b3": nrm(keys[5], (C3,), 0.01),
        "p3": jnp.full((C3,), 0.25, jnp.float32),
        # linear weights stored (in, out); w4 rows follow the torch Flatten
        # order k = c*9 + w*3 + h (handled by _pack_dense4).
        "w4": nrm(keys[6], (H3 * W3 * C3, D4)),
        "b4": nrm(keys[7], (D4,), 0.01),
        "p4": jnp.full((D4,), 0.25, jnp.float32),
        "w5_1": nrm(keys[8], (D4, 2)),
        "b5_1": nrm(keys[9], (2,), 0.01),
        "w5_2": nrm(keys[10], (D4, 4)),
        "b5_2": nrm(keys[11], (4,), 0.01),
        # TODO(synk): conv5_3 (Linear(128, 10)) exists in the torch __init__
        # but is never used by forward(), so it is not instantiated here.
    }


# ----------------------------------- main ------------------------------------

if __name__ == "__main__":
    key = jax.random.PRNGKey(0)
    kx, kp = jax.random.split(key)
    # RNet requires 24x24 inputs for the 576->128 linear to be shape-consistent.
    x = jax.random.normal(kx, (2, 3, 24, 24), dtype=jnp.float32)
    params = init_params(kp)
    packed = pack_params(params)          # one-time weight re-layout

    det, box = rnet_forward(x, packed)
    jax.block_until_ready((det, box))

    assert det.shape == (2, 2) and box.shape == (2, 4)
    assert bool(jnp.all(jnp.isfinite(det))) and bool(jnp.all(jnp.isfinite(box)))
    assert bool(jnp.all((det >= 0.0) & (det <= 1.0)))   # sigmoid range
    print("KERNEL_OK")
</pallas_src>

<mosaic_0001>
module attributes {stable_mosaic.version = 11 : i64} {
  func.func @_rnet_kernel(%arg0: i32, %arg1: memref<2x24x72xbf16, #tpu.memory_space<vmem>>, %arg2: memref<216x616xbf16, #tpu.memory_space<vmem>>, %arg3: memref<2x616xf32, #tpu.memory_space<vmem>>, %arg4: memref<936x432xbf16, #tpu.memory_space<vmem>>, %arg5: memref<2x432xf32, #tpu.memory_space<vmem>>, %arg6: memref<384x192xbf16, #tpu.memory_space<vmem>>, %arg7: memref<2x192xf32, #tpu.memory_space<vmem>>, %arg8: memref<576x128xbf16, #tpu.memory_space<vmem>>, %arg9: memref<2x128xf32, #tpu.memory_space<vmem>>, %arg10: memref<128x6xbf16, #tpu.memory_space<vmem>>, %arg11: memref<1x6xf32, #tpu.memory_space<vmem>>, %arg12: memref<2x1x2xf32, #tpu.memory_space<vmem>>, %arg13: memref<2x1x4xf32, #tpu.memory_space<vmem>>, %arg14: memref<11x616xf32, #tpu.memory_space<vmem>>, %arg15: memref<11x308xf32, #tpu.memory_space<vmem>>, %arg16: memref<4x432xf32, #tpu.memory_space<vmem>>, %arg17: memref<4x192xf32, #tpu.memory_space<vmem>>) attributes {dimension_semantics = [#tpu.dimension_semantics<parallel>], iteration_bounds = array<i64: 1>, scalar_prefetch = 0 : i64, scratch_operands = 4 : i64, tpu.core_type = #tpu.core_type<tc>, window_params = [{transform_indices = @transform_0, window_bounds = array<i64: 2, 24, 72>}, {pipeline_mode = #tpu.pipeline_mode<synchronous>, transform_indices = @transform_1, window_bounds = array<i64: 216, 616>}, {pipeline_mode = #tpu.pipeline_mode<synchronous>, transform_indices = @transform_2, window_bounds = array<i64: 2, 616>}, {pipeline_mode = #tpu.pipeline_mode<synchronous>, transform_indices = @transform_3, window_bounds = array<i64: 936, 432>}, {pipeline_mode = #tpu.pipeline_mode<synchronous>, transform_indices = @transform_4, window_bounds = array<i64: 2, 432>}, {pipeline_mode = #tpu.pipeline_mode<synchronous>, transform_indices = @transform_5, window_bounds = array<i64: 384, 192>}, {pipeline_mode = #tpu.pipeline_mode<synchronous>, transform_indices = @transform_6, window_bounds = array<i64: 2, 192>}, {pipeline_mode = #tpu.pipeline_mode<synchronous>, transform_indices = @transform_7, window_bounds = array<i64: 576, 128>}, {pipeline_mode = #tpu.pipeline_mode<synchronous>, transform_indices = @transform_8, window_bounds = array<i64: 2, 128>}, {pipeline_mode = #tpu.pipeline_mode<synchronous>, transform_indices = @transform_9, window_bounds = array<i64: 128, 6>}, {pipeline_mode = #tpu.pipeline_mode<synchronous>, transform_indices = @transform_10, window_bounds = array<i64: 1, 6>}, {transform_indices = @transform_11, window_bounds = array<i64: 2, 1, 2>}, {transform_indices = @transform_12, window_bounds = array<i64: 2, 1, 4>}]} {
    %c0_i32 = arith.constant 0 : i32
    %c2_i32 = arith.constant 2 : i32
    %0 = arith.addi %c0_i32, %c2_i32 : i32
    %c1_i32 = arith.constant 1 : i32
    scf.for %arg18 = %c0_i32 to %0 step %c1_i32  : i32 {
      %c1_i32_1 = arith.constant 1 : i32
      %1 = arith.muli %arg18, %c1_i32_1 : i32
      %c0_i32_2 = arith.constant 0 : i32
      %2 = arith.addi %c0_i32_2, %1 : i32
      %3 = arith.index_cast %2 : i32 to index
      %c0 = arith.constant 0 : index
      %c0_3 = arith.constant 0 : index
      %4 = vector.load %arg1[%3, %c0, %c0_3] : memref<2x24x72xbf16, #tpu.memory_space<vmem>>, vector<1x24x72xbf16>
      %5 = vector.shape_cast %4 : vector<1x24x72xbf16> to vector<24x72xbf16>
      %6 = arith.extf %5 : vector<24x72xbf16> to vector<24x72xf32>
      %cst = arith.constant 0.000000e+00 : f32
      %7 = vector.broadcast %cst : f32 to vector<22x616xf32>
      %8 = vector.extract_strided_slice %6 {offsets = [0, 0], sizes = [22, 72], strides = [1, 1]} : vector<24x72xf32> to vector<22x72xf32>
      %9 = arith.truncf %8 : vector<22x72xf32> to vector<22x72xbf16>
      %c0_4 = arith.constant 0 : index
      %c0_5 = arith.constant 0 : index
      %10 = vector.load %arg2[%c0_4, %c0_5] : memref<216x616xbf16, #tpu.memory_space<vmem>>, vector<72x616xbf16>
      %cst_6 = arith.constant dense<0.000000e+00> : vector<22x616xf32>
      %11 = tpu.matmul %9, %10, %cst_6 {dimension_numbers = #tpu.dot_dimension_numbers<[1], [0], [0], [1], [0, 0, 1, 1], [], []>} : vector<22x72xbf16>, vector<72x616xbf16>, vector<22x616xf32> -> vector<22x616xf32>
      %12 = arith.addf %7, %11 : vector<22x616xf32>
      %13 = vector.extract_strided_slice %6 {offsets = [1, 0], sizes = [22, 72], strides = [1, 1]} : vector<24x72xf32> to vector<22x72xf32>
      %14 = arith.truncf %13 : vector<22x72xf32> to vector<22x72xbf16>
      %c72 = arith.constant 72 : index
      %c0_7 = arith.constant 0 : index
      %15 = vector.load %arg2[%c72, %c0_7] : memref<216x616xbf16, #tpu.memory_space<vmem>>, vector<72x616xbf16>
      %cst_8 = arith.constant dense<0.000000e+00> : vector<22x616xf32>
      %16 = tpu.matmul %14, %15, %cst_8 {dimension_numbers = #tpu.dot_dimension_numbers<[1], [0], [0], [1], [0, 0, 1, 1], [], []>} : vector<22x72xbf16>, vector<72x616xbf16>, vector<22x616xf32> -> vector<22x616xf32>
      %17 = arith.addf %12, %16 : vector<22x616xf32>
      %18 = vector.extract_strided_slice %6 {offsets = [2, 0], sizes = [22, 72], strides = [1, 1]} : vector<24x72xf32> to vector<22x72xf32>
      %19 = arith.truncf %18 : vector<22x72xf32> to vector<22x72xbf16>
      %c144 = arith.constant 144 : index
      %c0_9 = arith.constant 0 : index
      %20 = vector.load %arg2[%c144, %c0_9] : memref<216x616xbf16, #tpu.memory_space<vmem>>, vector<72x616xbf16>
      %cst_10 = arith.constant dense<0.000000e+00> : vector<22x616xf32>
      %21 = tpu.matmul %19, %20, %cst_10 {dimension_numbers = #tpu.dot_dimension_numbers<[1], [0], [0], [1], [0, 0, 1, 1], [], []>} : vector<22x72xbf16>, vector<72x616xbf16>, vector<22x616xf32> -> vector<22x616xf32>
      %22 = arith.addf %17, %21 : vector<22x616xf32>
      %c0_11 = arith.constant 0 : index
      %c0_12 = arith.constant 0 : index
      %23 = vector.load %arg3[%c0_11, %c0_12] : memref<2x616xf32, #tpu.memory_space<vmem>>, vector<1x616xf32>
      %24 = vector.broadcast %23 : vector<1x616xf32> to vector<22x616xf32>
      %25 = arith.addf %22, %24 : vector<22x616xf32>
      %cst_13 = arith.constant 0.000000e+00 : f32
      %26 = vector.broadcast %cst_13 : f32 to vector<22x616xf32>
      %27 = arith.cmpf ogt, %25, %26 : vector<22x616xf32>
      %c1 = arith.constant 1 : index
      %c0_14 = arith.constant 0 : index
      %28 = vector.load %arg3[%c1, %c0_14] : memref<2x616xf32, #tpu.memory_space<vmem>>, vector<1x616xf32>
      %29 = vector.broadcast %28 : vector<1x616xf32> to vector<22x616xf32>
      %30 = arith.mulf %25, %29 : vector<22x616xf32>
      %31 = arith.select %27, %25, %30 : vector<22x616xi1>, vector<22x616xf32>
      %32 = vector.extract_strided_slice %31 {offsets = [0, 0], sizes = [1, 616], strides = [1, 1]} : vector<22x616xf32> to vector<1x616xf32>
      %33 = vector.extract_strided_slice %31 {offsets = [1, 0], sizes = [1, 616], strides = [1, 1]} : vector<22x616xf32> to vector<1x616xf32>
      %34 = arith.maximumf %32, %33 : vector<1x616xf32>
      %35 = vector.extract_strided_slice %31 {offsets = [2, 0], sizes = [1, 616], strides = [1, 1]} : vector<22x616xf32> to vector<1x616xf32>
      %36 = arith.maximumf %34, %35 : vector<1x616xf32>
      %c0_15 = arith.constant 0 : index
      %c0_16 = arith.constant 0 : index
      %37 = vector.load %arg14[%c0_15, %c0_16] : memref<11x616xf32, #tpu.memory_space<vmem>>, vector<1x616xf32>
      tpu.vector_store %arg14[%c0_15, %c0_16], %36 {strides = array<i32>} : memref<11x616xf32, #tpu.memory_space<vmem>>, vector<1x616xf32>,
      %38 = vector.extract_strided_slice %31 {offsets = [2, 0], sizes = [1, 616], strides = [1, 1]} : vector<22x616xf32> to vector<1x616xf32>
      %39 = vector.extract_strided_slice %31 {offsets = [3, 0], sizes = [1, 616], strides = [1, 1]} : vector<22x616xf32> to vector<1x616xf32>
      %40 = arith.maximumf %38, %39 : vector<1x616xf32>
      %41 = vector.extract_strided_slice %31 {offsets = [4, 0], sizes = [1, 616], strides = [1, 1]} : vector<22x616xf32> to vector<1x616xf32>
      %42 = arith.maximumf %40, %41 : vector<1x616xf32>
      %c1_17 = arith.constant 1 : index
      %c0_18 = arith.constant 0 : index
      %43 = vector.load %arg14[%c1_17, %c0_18] : memref<11x616xf32, #tpu.memory_space<vmem>>, vector<1x616xf32>
      tpu.vector_store %arg14[%c1_17, %c0_18], %42 {strides = array<i32>} : memref<11x616xf32, #tpu.memory_space<vmem>>, vector<1x616xf32>,
      %44 = vector.extract_strided_slice %31 {offsets = [4, 0], sizes = [1, 616], strides = [1, 1]} : vector<22x616xf32> to vector<1x616xf32>
      %45 = vector.extract_strided_slice %31 {offsets = [5, 0], sizes = [1, 616], strides = [1, 1]} : vector<22x616xf32> to vector<1x616xf32>
      %46 = arith.maximumf %44, %45 : vector<1x616xf32>
      %47 = vector.extract_strided_slice %31 {offsets = [6, 0], sizes = [1, 616], strides = [1, 1]} : vector<22x616xf32> to vector<1x616xf32>
      %48 = arith.maximumf %46, %47 : vector<1x616xf32>
      %c2 = arith.constant 2 : index
      %c0_19 = arith.constant 0 : index
      %49 = vector.load %arg14[%c2, %c0_19] : memref<11x616xf32, #tpu.memory_space<vmem>>, vector<1x616xf32>
      tpu.vector_store %arg14[%c2, %c0_19], %48 {strides = array<i32>} : memref<11x616xf32, #tpu.memory_space<vmem>>, vector<1x616xf32>,
      %50 = vector.extract_strided_slice %31 {offsets = [6, 0], sizes = [1, 616], strides = [1, 1]} : vector<22x616xf32> to vector<1x616xf32>
      %51 = vector.extract_strided_slice %31 {offsets = [7, 0], sizes = [1, 616], strides = [1, 1]} : vector<22x616xf32> to vector<1x616xf32>
      %52 = arith.maximumf %50, %51 : vector<1x616xf32>
      %53 = vector.extract_strided_slice %31 {offsets = [8, 0], sizes = [1, 616], strides = [1, 1]} : vector<22x616xf32> to vector<1x616xf32>
      %54 = arith.maximumf %52, %53 : vector<1x616xf32>
      %c3 = arith.constant 3 : index
      %c0_20 = arith.constant 0 : index
      %55 = vector.load %arg14[%c3, %c0_20] : memref<11x616xf32, #tpu.memory_space<vmem>>, vector<1x616xf32>
      tpu.vector_store %arg14[%c3, %c0_20], %54 {strides = array<i32>} : memref<11x616xf32, #tpu.memory_space<vmem>>, vector<1x616xf32>,
      %56 = vector.extract_strided_slice %31 {offsets = [8, 0], sizes = [1, 616], strides = [1, 1]} : vector<22x616xf32> to vector<1x616xf32>
      %57 = vector.extract_strided_slice %31 {offsets = [9, 0], sizes = [1, 616], strides = [1, 1]} : vector<22x616xf32> to vector<1x616xf32>
      %58 = arith.maximumf %56, %57 : vector<1x616xf32>
      %59 = vector.extract_strided_slice %31 {offsets = [10, 0], sizes = [1, 616], strides = [1, 1]} : vector<22x616xf32> to vector<1x616xf32>
      %60 = arith.maximumf %58, %59 : vector<1x616xf32>
      %c4 = arith.constant 4 : index
      %c0_21 = arith.constant 0 : index
      %61 = vector.load %arg14[%c4, %c0_21] : memref<11x616xf32, #tpu.memory_space<vmem>>, vector<1x616xf32>
      tpu.vector_store %arg14[%c4, %c0_21], %60 {strides = array<i32>} : memref<11x616xf32, #tpu.memory_space<vmem>>, vector<1x616xf32>,
      %62 = vector.extract_strided_slice %31 {offsets = [10, 0], sizes = [1, 616], strides = [1, 1]} : vector<22x616xf32> to vector<1x616xf32>
      %63 = vector.extract_strided_slice %31 {offsets = [11, 0], sizes = [1, 616], strides = [1, 1]} : vector<22x616xf32> to vector<1x616xf32>
      %64 = arith.maximumf %62, %63 : vector<1x616xf32>
      %65 = vector.extract_strided_slice %31 {offsets = [12, 0], sizes = [1, 616], strides = [1, 1]} : vector<22x616xf32> to vector<1x616xf32>
      %66 = arith.maximumf %64, %65 : vector<1x616xf32>
      %c5 = arith.constant 5 : index
      %c0_22 = arith.constant 0 : index
      %67 = vector.load %arg14[%c5, %c0_22] : memref<11x616xf32, #tpu.memory_space<vmem>>, vector<1x616xf32>
      tpu.vector_store %arg14[%c5, %c0_22], %66 {strides = array<i32>} : memref<11x616xf32, #tpu.memory_space<vmem>>, vector<1x616xf32>,
      %68 = vector.extract_strided_slice %31 {offsets = [12, 0], sizes = [1, 616], strides = [1, 1]} : vector<22x616xf32> to vector<1x616xf32>
      %69 = vector.extract_strided_slice %31 {offsets = [13, 0], sizes = [1, 616], strides = [1, 1]} : vector<22x616xf32> to vector<1x616xf32>
      %70 = arith.maximumf %68, %69 : vector<1x616xf32>
      %71 = vector.extract_strided_slice %31 {offsets = [14, 0], sizes = [1, 616], strides = [1, 1]} : vector<22x616xf32> to vector<1x616xf32>
      %72 = arith.maximumf %70, %71 : vector<1x616xf32>
      %c6 = arith.constant 6 : index
      %c0_23 = arith.constant 0 : index
      %73 = vector.load %arg14[%c6, %c0_23] : memref<11x616xf32, #tpu.memory_space<vmem>>, vector<1x616xf32>
      tpu.vector_store %arg14[%c6, %c0_23], %72 {strides = array<i32>} : memref<11x616xf32, #tpu.memory_space<vmem>>, vector<1x616xf32>,
      %74 = vector.extract_strided_slice %31 {offsets = [14, 0], sizes = [1, 616], strides = [1, 1]} : vector<22x616xf32> to vector<1x616xf32>
      %75 = vector.extract_strided_slice %31 {offsets = [15, 0], sizes = [1, 616], strides = [1, 1]} : vector<22x616xf32> to vector<1x616xf32>
      %76 = arith.maximumf %74, %75 : vector<1x616xf32>
      %77 = vector.extract_strided_slice %31 {offsets = [16, 0], sizes = [1, 616], strides = [1, 1]} : vector<22x616xf32> to vector<1x616xf32>
      %78 = arith.maximumf %76, %77 : vector<1x616xf32>
      %c7 = arith.constant 7 : index
      %c0_24 = arith.constant 0 : index
      %79 = vector.load %arg14[%c7, %c0_24] : memref<11x616xf32, #tpu.memory_space<vmem>>, vector<1x616xf32>
      tpu.vector_store %arg14[%c7, %c0_24], %78 {strides = array<i32>} : memref<11x616xf32, #tpu.memory_space<vmem>>, vector<1x616xf32>,
      %80 = vector.extract_strided_slice %31 {offsets = [16, 0], sizes = [1, 616], strides = [1, 1]} : vector<22x616xf32> to vector<1x616xf32>
      %81 = vector.extract_strided_slice %31 {offsets = [17, 0], sizes = [1, 616], strides = [1, 1]} : vector<22x616xf32> to vector<1x616xf32>
      %82 = arith.maximumf %80, %81 : vector<1x616xf32>
      %83 = vector.extract_strided_slice %31 {offsets = [18, 0], sizes = [1, 616], strides = [1, 1]} : vector<22x616xf32> to vector<1x616xf32>
      %84 = arith.maximumf %82, %83 : vector<1x616xf32>
      %c8 = arith.constant 8 : index
      %c0_25 = arith.constant 0 : index
      %85 = vector.load %arg14[%c8, %c0_25] : memref<11x616xf32, #tpu.memory_space<vmem>>, vector<1x616xf32>
      tpu.vector_store %arg14[%c8, %c0_25], %84 {strides = array<i32>} : memref<11x616xf32, #tpu.memory_space<vmem>>, vector<1x616xf32>,
      %86 = vector.extract_strided_slice %31 {offsets = [18, 0], sizes = [1, 616], strides = [1, 1]} : vector<22x616xf32> to vector<1x616xf32>
      %87 = vector.extract_strided_slice %31 {offsets = [19, 0], sizes = [1, 616], strides = [1, 1]} : vector<22x616xf32> to vector<1x616xf32>
      %88 = arith.maximumf %86, %87 : vector<1x616xf32>
      %89 = vector.extract_strided_slice %31 {offsets = [20, 0], sizes = [1, 616], strides = [1, 1]} : vector<22x616xf32> to vector<1x616xf32>
      %90 = arith.maximumf %88, %89 : vector<1x616xf32>
      %c9 = arith.constant 9 : index
      %c0_26 = arith.constant 0 : index
      %91 = vector.load %arg14[%c9, %c0_26] : memref<11x616xf32, #tpu.memory_space<vmem>>, vector<1x616xf32>
      tpu.vector_store %arg14[%c9, %c0_26], %90 {strides = array<i32>} : memref<11x616xf32, #tpu.memory_space<vmem>>, vector<1x616xf32>,
      %92 = vector.extract_strided_slice %31 {offsets = [20, 0], sizes = [1, 616], strides = [1, 1]} : vector<22x616xf32> to vector<1x616xf32>
      %93 = vector.extract_strided_slice %31 {offsets = [21, 0], sizes = [1, 616], strides = [1, 1]} : vector<22x616xf32> to vector<1x616xf32>
      %94 = arith.maximumf %92, %93 : vector<1x616xf32>
      %c10 = arith.constant 10 : index
      %c0_27 = arith.constant 0 : index
      %95 = vector.load %arg14[%c10, %c0_27] : memref<11x616xf32, #tpu.memory_space<vmem>>, vector<1x616xf32>
      tpu.vector_store %arg14[%c10, %c0_27], %94 {strides = array<i32>} : memref<11x616xf32, #tpu.memory_space<vmem>>, vector<1x616xf32>,
      %c0_28 = arith.constant 0 : index
      %c0_29 = arith.constant 0 : index
      %96 = vector.load %arg14[%c0_28, %c0_29] : memref<11x616xf32, #tpu.memory_space<vmem>>, vector<11x616xf32>
      %97 = vector.extract_strided_slice %96 {offsets = [0, 0], sizes = [11, 28], strides = [1, 1]} : vector<11x616xf32> to vector<11x28xf32>
      %98 = vector.extract_strided_slice %96 {offsets = [0, 28], sizes = [11, 28], strides = [1, 1]} : vector<11x616xf32> to vector<11x28xf32>
      %99 = arith.maximumf %97, %98 : vector<11x28xf32>
      %100 = vector.extract_strided_slice %96 {offsets = [0, 56], sizes = [11, 28], strides = [1, 1]} : vector<11x616xf32> to vector<11x28xf32>
      %101 = arith.maximumf %99, %100 : vector<11x28xf32>
      %c0_30 = arith.constant 0 : index
      %c0_31 = arith.constant 0 : index
      %102 = vector.load %arg15[%c0_30, %c0_31] : memref<11x308xf32, #tpu.memory_space<vmem>>, vector<11x28xf32>
      tpu.vector_store %arg15[%c0_30, %c0_31], %101 {strides = array<i32>} : memref<11x308xf32, #tpu.memory_space<vmem>>, vector<11x28xf32>,
      %103 = vector.extract_strided_slice %96 {offsets = [0, 56], sizes = [11, 28], strides = [1, 1]} : vector<11x616xf32> to vector<11x28xf32>
      %104 = vector.extract_strided_slice %96 {offsets = [0, 84], sizes = [11, 28], strides = [1, 1]} : vector<11x616xf32> to vector<11x28xf32>
      %105 = arith.maximumf %103, %104 : vector<11x28xf32>
      %106 = vector.extract_strided_slice %96 {offsets = [0, 112], sizes = [11, 28], strides = [1, 1]} : vector<11x616xf32> to vector<11x28xf32>
      %107 = arith.maximumf %105, %106 : vector<11x28xf32>
      %c0_32 = arith.constant 0 : index
      %c28 = arith.constant 28 : index
      %108 = vector.load %arg15[%c0_32, %c28] : memref<11x308xf32, #tpu.memory_space<vmem>>, vector<11x28xf32>
      tpu.vector_store %arg15[%c0_32, %c28], %107 {strides = array<i32>} : memref<11x308xf32, #tpu.memory_space<vmem>>, vector<11x28xf32>,
      %109 = vector.extract_strided_slice %96 {offsets = [0, 112], sizes = [11, 28], strides = [1, 1]} : vector<11x616xf32> to vector<11x28xf32>
      %110 = vector.extract_strided_slice %96 {offsets = [0, 140], sizes = [11, 28], strides = [1, 1]} : vector<11x616xf32> to vector<11x28xf32>
      %111 = arith.maximumf %109, %110 : vector<11x28xf32>
      %112 = vector.extract_strided_slice %96 {offsets = [0, 168], sizes = [11, 28], strides = [1, 1]} : vector<11x616xf32> to vector<11x28xf32>
      %113 = arith.maximumf %111, %112 : vector<11x28xf32>
      %c0_33 = arith.constant 0 : index
      %c56 = arith.constant 56 : index
      %114 = vector.load %arg15[%c0_33, %c56] : memref<11x308xf32, #tpu.memory_space<vmem>>, vector<11x28xf32>
      tpu.vector_store %arg15[%c0_33, %c56], %113 {strides = array<i32>} : memref<11x308xf32, #tpu.memory_space<vmem>>, vector<11x28xf32>,
      %115 = vector.extract_strided_slice %96 {offsets = [0, 168], sizes = [11, 28], strides = [1, 1]} : vector<11x616xf32> to vector<11x28xf32>
      %116 = vector.extract_strided_slice %96 {offsets = [0, 196], sizes = [11, 28], strides = [1, 1]} : vector<11x616xf32> to vector<11x28xf32>
      %117 = arith.maximumf %115, %116 : vector<11x28xf32>
      %118 = vector.extract_strided_slice %96 {offsets = [0, 224], sizes = [11, 28], strides = [1, 1]} : vector<11x616xf32> to vector<11x28xf32>
      %119 = arith.maximumf %117, %118 : vector<11x28xf32>
      %c0_34 = arith.constant 0 : index
      %c84 = arith.constant 84 : index
      %120 = vector.load %arg15[%c0_34, %c84] : memref<11x308xf32, #tpu.memory_space<vmem>>, vector<11x28xf32>
      tpu.vector_store %arg15[%c0_34, %c84], %119 {strides = array<i32>} : memref<11x308xf32, #tpu.memory_space<vmem>>, vector<11x28xf32>,
      %121 = vector.extract_strided_slice %96 {offsets = [0, 224], sizes = [11, 28], strides = [1, 1]} : vector<11x616xf32> to vector<11x28xf32>
      %122 = vector.extract_strided_slice %96 {offsets = [0, 252], sizes = [11, 28], strides = [1, 1]} : vector<11x616xf32> to vector<11x28xf32>
      %123 = arith.maximumf %121, %122 : vector<11x28xf32>
      %124 = vector.extract_strided_slice %96 {offsets = [0, 280], sizes = [11, 28], strides = [1, 1]} : vector<11x616xf32> to vector<11x28xf32>
      %125 = arith.maximumf %123, %124 : vector<11x28xf32>
      %c0_35 = arith.constant 0 : index
      %c112 = arith.constant 112 : index
      %126 = vector.load %arg15[%c0_35, %c112] : memref<11x308xf32, #tpu.memory_space<vmem>>, vector<11x28xf32>
      tpu.vector_store %arg15[%c0_35, %c112], %125 {strides = array<i32>} : memref<11x308xf32, #tpu.memory_space<vmem>>, vector<11x28xf32>,
      %127 = vector.extract_strided_slice %96 {offsets = [0, 280], sizes = [11, 28], strides = [1, 1]} : vector<11x616xf32> to vector<11x28xf32>
      %128 = vector.extract_strided_slice %96 {offsets = [0, 308], sizes = [11, 28], strides = [1, 1]} : vector<11x616xf32> to vector<11x28xf32>
      %129 = arith.maximumf %127, %128 : vector<11x28xf32>
      %130 = vector.extract_strided_slice %96 {offsets = [0, 336], sizes = [11, 28], strides = [1, 1]} : vector<11x616xf32> to vector<11x28xf32>
      %131 = arith.maximumf %129, %130 : vector<11x28xf32>
      %c0_36 = arith.constant 0 : index
      %c140 = arith.constant 140 : index
      %132 = vector.load %arg15[%c0_36, %c140] : memref<11x308xf32, #tpu.memory_space<vmem>>, vector<11x28xf32>
      tpu.vector_store %arg15[%c0_36, %c140], %131 {strides = array<i32>} : memref<11x308xf32, #tpu.memory_space<vmem>>, vector<11x28xf32>,
      %133 = vector.extract_strided_slice %96 {offsets = [0, 336], sizes = [11, 28], strides = [1, 1]} : vector<11x616xf32> to vector<11x28xf32>
      %134 = vector.extract_strided_slice %96 {offsets = [0, 364], sizes = [11, 28], strides = [1, 1]} : vector<11x616xf32> to vector<11x28xf32>
      %135 = arith.maximumf %133, %134 : vector<11x28xf32>
      %136 = vector.extract_strided_slice %96 {offsets = [0, 392], sizes = [11, 28], strides = [1, 1]} : vector<11x616xf32> to vector<11x28xf32>
      %137 = arith.maximumf %135, %136 : vector<11x28xf32>
      %c0_37 = arith.constant 0 : index
      %c168 = arith.constant 168 : index
      %138 = vector.load %arg15[%c0_37, %c168] : memref<11x308xf32, #tpu.memory_space<vmem>>, vector<11x28xf32>
      tpu.vector_store %arg15[%c0_37, %c168], %137 {strides = array<i32>} : memref<11x308xf32, #tpu.memory_space<vmem>>, vector<11x28xf32>,
      %139 = vector.extract_strided_slice %96 {offsets = [0, 392], sizes = [11, 28], strides = [1, 1]} : vector<11x616xf32> to vector<11x28xf32>
      %140 = vector.extract_strided_slice %96 {offsets = [0, 420], sizes = [11, 28], strides = [1, 1]} : vector<11x616xf32> to vector<11x28xf32>
      %141 = arith.maximumf %139, %140 : vector<11x28xf32>
      %142 = vector.extract_strided_slice %96 {offsets = [0, 448], sizes = [11, 28], strides = [1, 1]} : vector<11x616xf32> to vector<11x28xf32>
      %143 = arith.maximumf %141, %142 : vector<11x28xf32>
      %c0_38 = arith.constant 0 : index
      %c196 = arith.constant 196 : index
      %144 = vector.load %arg15[%c0_38, %c196] : memref<11x308xf32, #tpu.memory_space<vmem>>, vector<11x28xf32>
      tpu.vector_store %arg15[%c0_38, %c196], %143 {strides = array<i32>} : memref<11x308xf32, #tpu.memory_space<vmem>>, vector<11x28xf32>,
      %145 = vector.extract_strided_slice %96 {offsets = [0, 448], sizes = [11, 28], strides = [1, 1]} : vector<11x616xf32> to vector<11x28xf32>
      %146 = vector.extract_strided_slice %96 {offsets = [0, 476], sizes = [11, 28], strides = [1, 1]} : vector<11x616xf32> to vector<11x28xf32>
      %147 = arith.maximumf %145, %146 : vector<11x28xf32>
      %148 = vector.extract_strided_slice %96 {offsets = [0, 504], sizes = [11, 28], strides = [1, 1]} : vector<11x616xf32> to vector<11x28xf32>
      %149 = arith.maximumf %147, %148 : vector<11x28xf32>
      %c0_39 = arith.constant 0 : index
      %c224 = arith.constant 224 : index
      %150 = vector.load %arg15[%c0_39, %c224] : memref<11x308xf32, #tpu.memory_space<vmem>>, vector<11x28xf32>
      tpu.vector_store %arg15[%c0_39, %c224], %149 {strides = array<i32>} : memref<11x308xf32, #tpu.memory_space<vmem>>, vector<11x28xf32>,
      %151 = vector.extract_strided_slice %96 {offsets = [0, 504], sizes = [11, 28], strides = [1, 1]} : vector<11x616xf32> to vector<11x28xf32>
      %152 = vector.extract_strided_slice %96 {offsets = [0, 532], sizes = [11, 28], strides = [1, 1]} : vector<11x616xf32> to vector<11x28xf32>
      %153 = arith.maximumf %151, %152 : vector<11x28xf32>
      %154 = vector.extract_strided_slice %96 {offsets = [0, 560], sizes = [11, 28], strides = [1, 1]} : vector<11x616xf32> to vector<11x28xf32>
      %155 = arith.maximumf %153, %154 : vector<11x28xf32>
      %c0_40 = arith.constant 0 : index
      %c252 = arith.constant 252 : index
      %156 = vector.load %arg15[%c0_40, %c252] : memref<11x308xf32, #tpu.memory_space<vmem>>, vector<11x28xf32>
      tpu.vector_store %arg15[%c0_40, %c252], %155 {strides = array<i32>} : memref<11x308xf32, #tpu.memory_space<vmem>>, vector<11x28xf32>,
      %157 = vector.extract_strided_slice %96 {offsets = [0, 560], sizes = [11, 28], strides = [1, 1]} : vector<11x616xf32> to vector<11x28xf32>
      %158 = vector.extract_strided_slice %96 {offsets = [0, 588], sizes = [11, 28], strides = [1, 1]} : vector<11x616xf32> to vector<11x28xf32>
      %159 = arith.maximumf %157, %158 : vector<11x28xf32>
      %c0_41 = arith.constant 0 : index
      %c280 = arith.constant 280 : index
      %160 = vector.load %arg15[%c0_41, %c280] : memref<11x308xf32, #tpu.memory_space<vmem>>, vector<11x28xf32>
      tpu.vector_store %arg15[%c0_41, %c280], %159 {strides = array<i32>} : memref<11x308xf32, #tpu.memory_space<vmem>>, vector<11x28xf32>,
      %c0_42 = arith.constant 0 : index
      %c0_43 = arith.constant 0 : index
      %161 = vector.load %arg15[%c0_42, %c0_43] : memref<11x308xf32, #tpu.memory_space<vmem>>, vector<11x308xf32>
      %cst_44 = arith.constant 0.000000e+00 : f32
      %162 = vector.broadcast %cst_44 : f32 to vector<9x432xf32>
      %163 = vector.extract_strided_slice %161 {offsets = [0, 0], sizes = [9, 308], strides = [1, 1]} : vector<11x308xf32> to vector<9x308xf32>
      %164 = arith.truncf %163 : vector<9x308xf32> to vector<9x308xbf16>
      %c0_45 = arith.constant 0 : index
      %c0_46 = arith.constant 0 : index
      %165 = vector.load %arg4[%c0_45, %c0_46] : memref<936x432xbf16, #tpu.memory_space<vmem>>, vector<308x432xbf16>
      %cst_47 = arith.constant dense<0.000000e+00> : vector<9x432xf32>
      %166 = tpu.matmul %164, %165, %cst_47 {dimension_numbers = #tpu.dot_dimension_numbers<[1], [0], [0], [1], [0, 0, 1, 1], [], []>} : vector<9x308xbf16>, vector<308x432xbf16>, vector<9x432xf32> -> vector<9x432xf32>
      %167 = arith.addf %162, %166 : vector<9x432xf32>
      %168 = vector.extract_strided_slice %161 {offsets = [1, 0], sizes = [9, 308], strides = [1, 1]} : vector<11x308xf32> to vector<9x308xf32>
      %169 = arith.truncf %168 : vector<9x308xf32> to vector<9x308xbf16>
      %c312 = arith.constant 312 : index
      %c0_48 = arith.constant 0 : index
      %170 = vector.load %arg4[%c312, %c0_48] : memref<936x432xbf16, #tpu.memory_space<vmem>>, vector<308x432xbf16>
      %cst_49 = arith.constant dense<0.000000e+00> : vector<9x432xf32>
      %171 = tpu.matmul %169, %170, %cst_49 {dimension_numbers = #tpu.dot_dimension_numbers<[1], [0], [0], [1], [0, 0, 1, 1], [], []>} : vector<9x308xbf16>, vector<308x432xbf16>, vector<9x432xf32> -> vector<9x432xf32>
      %172 = arith.addf %167, %171 : vector<9x432xf32>
      %173 = vector.extract_strided_slice %161 {offsets = [2, 0], sizes = [9, 308], strides = [1, 1]} : vector<11x308xf32> to vector<9x308xf32>
      %174 = arith.truncf %173 : vector<9x308xf32> to vector<9x308xbf16>
      %c624 = arith.constant 624 : index
      %c0_50 = arith.constant 0 : index
      %175 = vector.load %arg4[%c624, %c0_50] : memref<936x432xbf16, #tpu.memory_space<vmem>>, vector<308x432xbf16>
      %cst_51 = arith.constant dense<0.000000e+00> : vector<9x432xf32>
      %176 = tpu.matmul %174, %175, %cst_51 {dimension_numbers = #tpu.dot_dimension_numbers<[1], [0], [0], [1], [0, 0, 1, 1], [], []>} : vector<9x308xbf16>, vector<308x432xbf16>, vector<9x432xf32> -> vector<9x432xf32>
      %177 = arith.addf %172, %176 : vector<9x432xf32>
      %c0_52 = arith.constant 0 : index
      %c0_53 = arith.constant 0 : index
      %178 = vector.load %arg5[%c0_52, %c0_53] : memref<2x432xf32, #tpu.memory_space<vmem>>, vector<1x432xf32>
      %179 = vector.broadcast %178 : vector<1x432xf32> to vector<9x432xf32>
      %180 = arith.addf %177, %179 : vector<9x432xf32>
      %cst_54 = arith.constant 0.000000e+00 : f32
      %181 = vector.broadcast %cst_54 : f32 to vector<9x432xf32>
      %182 = arith.cmpf ogt, %180, %181 : vector<9x432xf32>
      %c1_55 = arith.constant 1 : index
      %c0_56 = arith.constant 0 : index
      %183 = vector.load %arg5[%c1_55, %c0_56] : memref<2x432xf32, #tpu.memory_space<vmem>>, vector<1x432xf32>
      %184 = vector.broadcast %183 : vector<1x432xf32> to vector<9x432xf32>
      %185 = arith.mulf %180, %184 : vector<9x432xf32>
      %186 = arith.select %182, %180, %185 : vector<9x432xi1>, vector<9x432xf32>
      %187 = vector.extract_strided_slice %186 {offsets = [0, 0], sizes = [1, 432], strides = [1, 1]} : vector<9x432xf32> to vector<1x432xf32>
      %188 = vector.extract_strided_slice %186 {offsets = [1, 0], sizes = [1, 432], strides = [1, 1]} : vector<9x432xf32> to vector<1x432xf32>
      %189 = arith.maximumf %187, %188 : vector<1x432xf32>
      %190 = vector.extract_strided_slice %186 {offsets = [2, 0], sizes = [1, 432], strides = [1, 1]} : vector<9x432xf32> to vector<1x432xf32>
      %191 = arith.maximumf %189, %190 : vector<1x432xf32>
      %c0_57 = arith.constant 0 : index
      %c0_58 = arith.constant 0 : index
      %192 = vector.load %arg16[%c0_57, %c0_58] : memref<4x432xf32, #tpu.memory_space<vmem>>, vector<1x432xf32>
      tpu.vector_store %arg16[%c0_57, %c0_58], %191 {strides = array<i32>} : memref<4x432xf32, #tpu.memory_space<vmem>>, vector<1x432xf32>,
      %193 = vector.extract_strided_slice %186 {offsets = [2, 0], sizes = [1, 432], strides = [1, 1]} : vector<9x432xf32> to vector<1x432xf32>
      %194 = vector.extract_strided_slice %186 {offsets = [3, 0], sizes = [1, 432], strides = [1, 1]} : vector<9x432xf32> to vector<1x432xf32>
      %195 = arith.maximumf %193, %194 : vector<1x432xf32>
      %196 = vector.extract_strided_slice %186 {offsets = [4, 0], sizes = [1, 432], strides = [1, 1]} : vector<9x432xf32> to vector<1x432xf32>
      %197 = arith.maximumf %195, %196 : vector<1x432xf32>
      %c1_59 = arith.constant 1 : index
      %c0_60 = arith.constant 0 : index
      %198 = vector.load %arg16[%c1_59, %c0_60] : memref<4x432xf32, #tpu.memory_space<vmem>>, vector<1x432xf32>
      tpu.vector_store %arg16[%c1_59, %c0_60], %197 {strides = array<i32>} : memref<4x432xf32, #tpu.memory_space<vmem>>, vector<1x432xf32>,
      %199 = vector.extract_strided_slice %186 {offsets = [4, 0], sizes = [1, 432], strides = [1, 1]} : vector<9x432xf32> to vector<1x432xf32>
      %200 = vector.extract_strided_slice %186 {offsets = [5, 0], sizes = [1, 432], strides = [1, 1]} : vector<9x432xf32> to vector<1x432xf32>
      %201 = arith.maximumf %199, %200 : vector<1x432xf32>
      %202 = vector.extract_strided_slice %186 {offsets = [6, 0], sizes = [1, 432], strides = [1, 1]} : vector<9x432xf32> to vector<1x432xf32>
      %203 = arith.maximumf %201, %202 : vector<1x432xf32>
      %c2_61 = arith.constant 2 : index
      %c0_62 = arith.constant 0 : index
      %204 = vector.load %arg16[%c2_61, %c0_62] : memref<4x432xf32, #tpu.memory_space<vmem>>, vector<1x432xf32>
      tpu.vector_store %arg16[%c2_61, %c0_62], %203 {strides = array<i32>} : memref<4x432xf32, #tpu.memory_space<vmem>>, vector<1x432xf32>,
      %205 = vector.extract_strided_slice %186 {offsets = [6, 0], sizes = [1, 432], strides = [1, 1]} : vector<9x432xf32> to vector<1x432xf32>
      %206 = vector.extract_strided_slice %186 {offsets = [7, 0], sizes = [1, 432], strides = [1, 1]} : vector<9x432xf32> to vector<1x432xf32>
      %207 = arith.maximumf %205, %206 : vector<1x432xf32>
      %208 = vector.extract_strided_slice %186 {offsets = [8, 0], sizes = [1, 432], strides = [1, 1]} : vector<9x432xf32> to vector<1x432xf32>
      %209 = arith.maximumf %207, %208 : vector<1x432xf32>
      %c3_63 = arith.constant 3 : index
      %c0_64 = arith.constant 0 : index
      %210 = vector.load %arg16[%c3_63, %c0_64] : memref<4x432xf32, #tpu.memory_space<vmem>>, vector<1x432xf32>
      tpu.vector_store %arg16[%c3_63, %c0_64], %209 {strides = array<i32>} : memref<4x432xf32, #tpu.memory_space<vmem>>, vector<1x432xf32>,
      %c0_65 = arith.constant 0 : index
      %c0_66 = arith.constant 0 : index
      %211 = vector.load %arg16[%c0_65, %c0_66] : memref<4x432xf32, #tpu.memory_space<vmem>>, vector<4x432xf32>
      %212 = vector.extract_strided_slice %211 {offsets = [0, 0], sizes = [4, 48], strides = [1, 1]} : vector<4x432xf32> to vector<4x48xf32>
      %213 = vector.extract_strided_slice %211 {offsets = [0, 48], sizes = [4, 48], strides = [1, 1]} : vector<4x432xf32> to vector<4x48xf32>
      %214 = arith.maximumf %212, %213 : vector<4x48xf32>
      %215 = vector.extract_strided_slice %211 {offsets = [0, 96], sizes = [4, 48], strides = [1, 1]} : vector<4x432xf32> to vector<4x48xf32>
      %216 = arith.maximumf %214, %215 : vector<4x48xf32>
      %c0_67 = arith.constant 0 : index
      %c0_68 = arith.constant 0 : index
      %217 = vector.load %arg17[%c0_67, %c0_68] : memref<4x192xf32, #tpu.memory_space<vmem>>, vector<4x48xf32>
      tpu.vector_store %arg17[%c0_67, %c0_68], %216 {strides = array<i32>} : memref<4x192xf32, #tpu.memory_space<vmem>>, vector<4x48xf32>,
      %218 = vector.extract_strided_slice %211 {offsets = [0, 96], sizes = [4, 48], strides = [1, 1]} : vector<4x432xf32> to vector<4x48xf32>
      %219 = vector.extract_strided_slice %211 {offsets = [0, 144], sizes = [4, 48], strides = [1, 1]} : vector<4x432xf32> to vector<4x48xf32>
      %220 = arith.maximumf %218, %219 : vector<4x48xf32>
      %221 = vector.extract_strided_slice %211 {offsets = [0, 192], sizes = [4, 48], strides = [1, 1]} : vector<4x432xf32> to vector<4x48xf32>
      %222 = arith.maximumf %220, %221 : vector<4x48xf32>
      %c0_69 = arith.constant 0 : index
      %c48 = arith.constant 48 : index
      %223 = vector.load %arg17[%c0_69, %c48] : memref<4x192xf32, #tpu.memory_space<vmem>>, vector<4x48xf32>
      tpu.vector_store %arg17[%c0_69, %c48], %222 {strides = array<i32>} : memref<4x192xf32, #tpu.memory_space<vmem>>, vector<4x48xf32>,
      %224 = vector.extract_strided_slice %211 {offsets = [0, 192], sizes = [4, 48], strides = [1, 1]} : vector<4x432xf32> to vector<4x48xf32>
      %225 = vector.extract_strided_slice %211 {offsets = [0, 240], sizes = [4, 48], strides = [1, 1]} : vector<4x432xf32> to vector<4x48xf32>
      %226 = arith.maximumf %224, %225 : vector<4x48xf32>
      %227 = vector.extract_strided_slice %211 {offsets = [0, 288], sizes = [4, 48], strides = [1, 1]} : vector<4x432xf32> to vector<4x48xf32>
      %228 = arith.maximumf %226, %227 : vector<4x48xf32>
      %c0_70 = arith.constant 0 : index
      %c96 = arith.constant 96 : index
      %229 = vector.load %arg17[%c0_70, %c96] : memref<4x192xf32, #tpu.memory_space<vmem>>, vector<4x48xf32>
      tpu.vector_store %arg17[%c0_70, %c96], %228 {strides = array<i32>} : memref<4x192xf32, #tpu.memory_space<vmem>>, vector<4x48xf32>,
      %230 = vector.extract_strided_slice %211 {offsets = [0, 288], sizes = [4, 48], strides = [1, 1]} : vector<4x432xf32> to vector<4x48xf32>
      %231 = vector.extract_strided_slice %211 {offsets = [0, 336], sizes = [4, 48], strides = [1, 1]} : vector<4x432xf32> to vector<4x48xf32>
      %232 = arith.maximumf %230, %231 : vector<4x48xf32>
      %233 = vector.extract_strided_slice %211 {offsets = [0, 384], sizes = [4, 48], strides = [1, 1]} : vector<4x432xf32> to vector<4x48xf32>
      %234 = arith.maximumf %232, %233 : vector<4x48xf32>
      %c0_71 = arith.constant 0 : index
      %c144_72 = arith.constant 144 : index
      %235 = vector.load %arg17[%c0_71, %c144_72] : memref<4x192xf32, #tpu.memory_space<vmem>>, vector<4x48xf32>
      tpu.vector_store %arg17[%c0_71, %c144_72], %234 {strides = array<i32>} : memref<4x192xf32, #tpu.memory_space<vmem>>, vector<4x48xf32>,
      %c0_73 = arith.constant 0 : index
      %c0_74 = arith.constant 0 : index
      %236 = vector.load %arg17[%c0_73, %c0_74] : memref<4x192xf32, #tpu.memory_space<vmem>>, vector<4x192xf32>
      %cst_75 = arith.constant 0.000000e+00 : f32
      %237 = vector.broadcast %cst_75 : f32 to vector<3x192xf32>
      %238 = vector.extract_strided_slice %236 {offsets = [0, 0], sizes = [3, 192], strides = [1, 1]} : vector<4x192xf32> to vector<3x192xf32>
      %239 = arith.truncf %238 : vector<3x192xf32> to vector<3x192xbf16>
      %c0_76 = arith.constant 0 : index
      %c0_77 = arith.constant 0 : index
      %240 = vector.load %arg6[%c0_76, %c0_77] : memref<384x192xbf16, #tpu.memory_space<vmem>>, vector<192x192xbf16>
      %cst_78 = arith.constant dense<0.000000e+00> : vector<3x192xf32>
      %241 = tpu.matmul %239, %240, %cst_78 {dimension_numbers = #tpu.dot_dimension_numbers<[1], [0], [0], [1], [0, 0, 1, 1], [], []>} : vector<3x192xbf16>, vector<192x192xbf16>, vector<3x192xf32> -> vector<3x192xf32>
      %242 = arith.addf %237, %241 : vector<3x192xf32>
      %243 = vector.extract_strided_slice %236 {offsets = [1, 0], sizes = [3, 192], strides = [1, 1]} : vector<4x192xf32> to vector<3x192xf32>
      %244 = arith.truncf %243 : vector<3x192xf32> to vector<3x192xbf16>
      %c192 = arith.constant 192 : index
      %c0_79 = arith.constant 0 : index
      %245 = vector.load %arg6[%c192, %c0_79] : memref<384x192xbf16, #tpu.memory_space<vmem>>, vector<192x192xbf16>
      %cst_80 = arith.constant dense<0.000000e+00> : vector<3x192xf32>
      %246 = tpu.matmul %244, %245, %cst_80 {dimension_numbers = #tpu.dot_dimension_numbers<[1], [0], [0], [1], [0, 0, 1, 1], [], []>} : vector<3x192xbf16>, vector<192x192xbf16>, vector<3x192xf32> -> vector<3x192xf32>
      %247 = arith.addf %242, %246 : vector<3x192xf32>
      %c0_81 = arith.constant 0 : index
      %c0_82 = arith.constant 0 : index
      %248 = vector.load %arg7[%c0_81, %c0_82] : memref<2x192xf32, #tpu.memory_space<vmem>>, vector<1x192xf32>
      %249 = vector.broadcast %248 : vector<1x192xf32> to vector<3x192xf32>
      %250 = arith.addf %247, %249 : vector<3x192xf32>
      %cst_83 = arith.constant 0.000000e+00 : f32
      %251 = vector.broadcast %cst_83 : f32 to vector<3x192xf32>
      %252 = arith.cmpf ogt, %250, %251 : vector<3x192xf32>
      %c1_84 = arith.constant 1 : index
      %c0_85 = arith.constant 0 : index
      %253 = vector.load %arg7[%c1_84, %c0_85] : memref<2x192xf32, #tpu.memory_space<vmem>>, vector<1x192xf32>
      %254 = vector.broadcast %253 : vector<1x192xf32> to vector<3x192xf32>
      %255 = arith.mulf %250, %254 : vector<3x192xf32>
      %256 = arith.select %252, %250, %255 : vector<3x192xi1>, vector<3x192xf32>
      %cst_86 = arith.constant 0.000000e+00 : f32
      %257 = vector.broadcast %cst_86 : f32 to vector<1x128xf32>
      %258 = vector.extract_strided_slice %256 {offsets = [0, 0], sizes = [1, 192], strides = [1, 1]} : vector<3x192xf32> to vector<1x192xf32>
      %259 = arith.truncf %258 : vector<1x192xf32> to vector<1x192xbf16>
      %c0_87 = arith.constant 0 : index
      %c0_88 = arith.constant 0 : index
      %260 = vector.load %arg8[%c0_87, %c0_88] : memref<576x128xbf16, #tpu.memory_space<vmem>>, vector<192x128xbf16>
      %cst_89 = arith.constant dense<0.000000e+00> : vector<1x128xf32>
      %261 = tpu.matmul %259, %260, %cst_89 {dimension_numbers = #tpu.dot_dimension_numbers<[1], [0], [0], [1], [0, 0, 1, 1], [], []>} : vector<1x192xbf16>, vector<192x128xbf16>, vector<1x128xf32> -> vector<1x128xf32>
      %262 = arith.addf %257, %261 : vector<1x128xf32>
      %263 = vector.extract_strided_slice %256 {offsets = [1, 0], sizes = [1, 192], strides = [1, 1]} : vector<3x192xf32> to vector<1x192xf32>
      %264 = arith.truncf %263 : vector<1x192xf32> to vector<1x192xbf16>
      %c192_90 = arith.constant 192 : index
      %c0_91 = arith.constant 0 : index
      %265 = vector.load %arg8[%c192_90, %c0_91] : memref<576x128xbf16, #tpu.memory_space<vmem>>, vector<192x128xbf16>
      %cst_92 = arith.constant dense<0.000000e+00> : vector<1x128xf32>
      %266 = tpu.matmul %264, %265, %cst_92 {dimension_numbers = #tpu.dot_dimension_numbers<[1], [0], [0], [1], [0, 0, 1, 1], [], []>} : vector<1x192xbf16>, vector<192x128xbf16>, vector<1x128xf32> -> vector<1x128xf32>
      %267 = arith.addf %262, %266 : vector<1x128xf32>
      %268 = vector.extract_strided_slice %256 {offsets = [2, 0], sizes = [1, 192], strides = [1, 1]} : vector<3x192xf32> to vector<1x192xf32>
      %269 = arith.truncf %268 : vector<1x192xf32> to vector<1x192xbf16>
      %c384 = arith.constant 384 : index
      %c0_93 = arith.constant 0 : index
      %270 = vector.load %arg8[%c384, %c0_93] : memref<576x128xbf16, #tpu.memory_space<vmem>>, vector<192x128xbf16>
      %cst_94 = arith.constant dense<0.000000e+00> : vector<1x128xf32>
      %271 = tpu.matmul %269, %270, %cst_94 {dimension_numbers = #tpu.dot_dimension_numbers<[1], [0], [0], [1], [0, 0, 1, 1], [], []>} : vector<1x192xbf16>, vector<192x128xbf16>, vector<1x128xf32> -> vector<1x128xf32>
      %272 = arith.addf %267, %271 : vector<1x128xf32>
      %c0_95 = arith.constant 0 : index
      %c0_96 = arith.constant 0 : index
      %273 = vector.load %arg9[%c0_95, %c0_96] : memref<2x128xf32, #tpu.memory_space<vmem>>, vector<1x128xf32>
      %274 = arith.addf %272, %273 : vector<1x128xf32>
      %cst_97 = arith.constant 0.000000e+00 : f32
      %275 = vector.broadcast %cst_97 : f32 to vector<1x128xf32>
      %276 = arith.cmpf ogt, %274, %275 : vector<1x128xf32>
      %c1_98 = arith.constant 1 : index
      %c0_99 = arith.constant 0 : index
      %277 = vector.load %arg9[%c1_98, %c0_99] : memref<2x128xf32, #tpu.memory_space<vmem>>, vector<1x128xf32>
      %278 = arith.mulf %274, %277 : vector<1x128xf32>
      %279 = arith.select %276, %274, %278 : vector<1x128xi1>, vector<1x128xf32>
      %280 = arith.truncf %279 : vector<1x128xf32> to vector<1x128xbf16>
      %c0_100 = arith.constant 0 : index
      %c0_101 = arith.constant 0 : index
      %281 = vector.load %arg10[%c0_100, %c0_101] : memref<128x6xbf16, #tpu.memory_space<vmem>>, vector<128x6xbf16>
      %cst_102 = arith.constant dense<0.000000e+00> : vector<1x6xf32>
      %282 = tpu.matmul %280, %281, %cst_102 {dimension_numbers = #tpu.dot_dimension_numbers<[1], [0], [0], [1], [0, 0, 1, 1], [], []>} : vector<1x128xbf16>, vector<128x6xbf16>, vector<1x6xf32> -> vector<1x6xf32>
      %c0_103 = arith.constant 0 : index
      %c0_104 = arith.constant 0 : index
      %283 = vector.load %arg11[%c0_103, %c0_104] : memref<1x6xf32, #tpu.memory_space<vmem>>, vector<1x6xf32>
      %284 = arith.addf %282, %283 : vector<1x6xf32>
      %285 = vector.extract_strided_slice %284 {offsets = [0, 0], sizes = [1, 2], strides = [1, 1]} : vector<1x6xf32> to vector<1x2xf32>
      %cst_105 = arith.constant 0.000000e+00 : f32
      %286 = vector.broadcast %cst_105 : f32 to vector<1x2xf32>
      %287 = arith.subf %286, %285 : vector<1x2xf32>
      %288 = math.exp %287 : vector<1x2xf32>
      %cst_106 = arith.constant 1.000000e+00 : f32
      %289 = vector.broadcast %cst_106 : f32 to vector<1x2xf32>
      %290 = arith.addf %289, %288 : vector<1x2xf32>
      %cst_107 = arith.constant 1.000000e+00 : f32
      %291 = vector.broadcast %cst_107 : f32 to vector<1x2xf32>
      %292 = arith.divf %291, %290 : vector<1x2xf32>
      %293 = arith.index_cast %2 : i32 to index
      %c0_108 = arith.constant 0 : index
      %c0_109 = arith.constant 0 : index
      %294 = vector.load %arg12[%293, %c0_108, %c0_109] : memref<2x1x2xf32, #tpu.memory_space<vmem>>, vector<1x1x2xf32>
      %295 = vector.shape_cast %294 : vector<1x1x2xf32> to vector<1x2xf32>
      %296 = vector.shape_cast %292 : vector<1x2xf32> to vector<1x1x2xf32>
      tpu.vector_store %arg12[%293, %c0_108, %c0_109], %296 {strides = array<i32>} : memref<2x1x2xf32, #tpu.memory_space<vmem>>, vector<1x1x2xf32>,
      %297 = vector.extract_strided_slice %284 {offsets = [0, 2], sizes = [1, 4], strides = [1, 1]} : vector<1x6xf32> to vector<1x4xf32>
      %298 = arith.index_cast %2 : i32 to index
      %c0_110 = arith.constant 0 : index
      %c0_111 = arith.constant 0 : index
      %299 = vector.load %arg13[%298, %c0_110, %c0_111] : memref<2x1x4xf32, #tpu.memory_space<vmem>>, vector<1x1x4xf32>
      %300 = vector.shape_cast %299 : vector<1x1x4xf32> to vector<1x4xf32>
      %301 = vector.shape_cast %297 : vector<1x4xf32> to vector<1x1x4xf32>
      tpu.vector_store %arg13[%298, %c0_110, %c0_111], %301 {strides = array<i32>} : memref<2x1x4xf32, #tpu.memory_space<vmem>>, vector<1x1x4xf32>,
    }
    %c2_i32_0 = arith.constant 2 : i32
    return
  }
  func.func @transform_0(%arg0: i32) -> (i32, i32, i32) {
    %c0_i32 = arith.constant 0 : i32
    %c0_i32_0 = arith.constant 0 : i32
    %c0_i32_1 = arith.constant 0 : i32
    return %arg0, %c0_i32, %c0_i32_0 : i32, i32, i32
  }
  func.func @transform_1(%arg0: i32) -> (i32, i32) {
    %c0_i32 = arith.constant 0 : i32
    %c0_i32_0 = arith.constant 0 : i32
    %c0_i32_1 = arith.constant 0 : i32
    return %c0_i32, %c0_i32_0 : i32, i32
  }
  func.func @transform_2(%arg0: i32) -> (i32, i32) {
    %c0_i32 = arith.constant 0 : i32
    %c0_i32_0 = arith.constant 0 : i32
    %c0_i32_1 = arith.constant 0 : i32
    return %c0_i32, %c0_i32_0 : i32, i32
  }
  func.func @transform_3(%arg0: i32) -> (i32, i32) {
    %c0_i32 = arith.constant 0 : i32
    %c0_i32_0 = arith.constant 0 : i32
    %c0_i32_1 = arith.constant 0 : i32
    return %c0_i32, %c0_i32_0 : i32, i32
  }
  func.func @transform_4(%arg0: i32) -> (i32, i32) {
    %c0_i32 = arith.constant 0 : i32
    %c0_i32_0 = arith.constant 0 : i32
    %c0_i32_1 = arith.constant 0 : i32
    return %c0_i32, %c0_i32_0 : i32, i32
  }
  func.func @transform_5(%arg0: i32) -> (i32, i32) {
    %c0_i32 = arith.constant 0 : i32
    %c0_i32_0 = arith.constant 0 : i32
    %c0_i32_1 = arith.constant 0 : i32
    return %c0_i32, %c0_i32_0 : i32, i32
  }
  func.func @transform_6(%arg0: i32) -> (i32, i32) {
    %c0_i32 = arith.constant 0 : i32
    %c0_i32_0 = arith.constant 0 : i32
    %c0_i32_1 = arith.constant 0 : i32
    return %c0_i32, %c0_i32_0 : i32, i32
  }
  func.func @transform_7(%arg0: i32) -> (i32, i32) {
    %c0_i32 = arith.constant 0 : i32
    %c0_i32_0 = arith.constant 0 : i32
    %c0_i32_1 = arith.constant 0 : i32
    return %c0_i32, %c0_i32_0 : i32, i32
  }
  func.func @transform_8(%arg0: i32) -> (i32, i32) {
    %c0_i32 = arith.constant 0 : i32
    %c0_i32_0 = arith.constant 0 : i32
    %c0_i32_1 = arith.constant 0 : i32
    return %c0_i32, %c0_i32_0 : i32, i32
  }
  func.func @transform_9(%arg0: i32) -> (i32, i32) {
    %c0_i32 = arith.constant 0 : i32
    %c0_i32_0 = arith.constant 0 : i32
    %c0_i32_1 = arith.constant 0 : i32
    return %c0_i32, %c0_i32_0 : i32, i32
  }
  func.func @transform_10(%arg0: i32) -> (i32, i32) {
    %c0_i32 = arith.constant 0 : i32
    %c0_i32_0 = arith.constant 0 : i32
    %c0_i32_1 = arith.constant 0 : i32
    return %c0_i32, %c0_i32_0 : i32, i32
  }
  func.func @transform_11(%arg0: i32) -> (i32, i32, i32) {
    %c0_i32 = arith.constant 0 : i32
    %c0_i32_0 = arith.constant 0 : i32
    %c0_i32_1 = arith.constant 0 : i32
    return %arg0, %c0_i32, %c0_i32_0 : i32, i32, i32
  }
  func.func @transform_12(%arg0: i32) -> (i32, i32, i32) {
    %c0_i32 = arith.constant 0 : i32
    %c0_i32_0 = arith.constant 0 : i32
    %c0_i32_1 = arith.constant 0 : i32
    return %arg0, %c0_i32, %c0_i32_0 : i32, i32, i32
  }
}

</mosaic_0001>

<bundles_post_ra>
// kernel: rnet_forward.1
= control target key start
LH: loop header
LB: loop body
LE: loop exit
PB: predicated region body
PF: predicated region fallthrough
CT: control target
= control target key end

     0   :  { %18 = vsyncpa [#allocation7], 0  ;;  %s8527_s0 = inlined_call_operand.vmem [shape: bf16[2,24,72], index: 0, kind: input, shape index: {}]   ;;  %s8528_s1 = inlined_call_operand.vmem [shape: bf16[216,616], index: 1, kind: input, shape index: {}]   ;;  %s8529_s2 = inlined_call_operand.vmem [shape: f32[2,616], index: 2, kind: input, shape index: {}]   ;;  %s8530_s3 = inlined_call_operand.vmem [shape: bf16[936,432], index: 3, kind: input, shape index: {}]   ;;  %s8531_s4 = inlined_call_operand.vmem [shape: f32[2,432], index: 4, kind: input, shape index: {}]   ;;  %s8532_s5 = inlined_call_operand.vmem [shape: bf16[384,192], index: 5, kind: input, shape index: {}]   ;;  %s8533_s6 = inlined_call_operand.vmem [shape: f32[2,192], index: 6, kind: input, shape index: {}]   ;;  %s8534_s7 = inlined_call_operand.vmem [shape: bf16[576,128], index: 7, kind: input, shape index: {}]   ;;  %s8535_s8 = inlined_call_operand.vmem [shape: f32[2,128], index: 8, kind: input, shape index: {}]   ;;  %s8536_s9 = inlined_call_operand.vmem [shape: bf16[128,6], index: 9, kind: input, shape index: {}]   ;;  %s8537_s10 = inlined_call_operand.vmem [shape: f32[1,6], index: 10, kind: input, shape index: {}]   ;;  %s8538_s11 = inlined_call_operand.hbm [shape: f32[2,1,2], index: 11, kind: output, shape index: {0}]   ;;  %s8539_s12 = inlined_call_operand.hbm [shape: f32[2,1,4], index: 12, kind: output, shape index: {1}]  }
   0x1   :  { %19 = vsyncpa [#allocation9], 0  ;;  %s6647_s21 = smov 0  }
   0x2 LB: > { %v5927_v0 = vld [vmem:[%s8528_s1 + $0xb8] ss:$20 sps:$4 sm:$0xff]   ;;  %v5929_v1 = vld [vmem:[%s8528_s1 + $0xc0] ss:$20 sps:$4 sm:$0xff]   ;;  %v6559_v2 = vmov 0   ;;  %s5744_s23 = smul.u32 12, %s6557_s21  ;;  %s6557_s21 = sphi %s6647_s21, %s48_s21  }
   0x3   : > { %302 = vmatprep.mubr.bf16.mxu0 %v6559_v2  ;;  %353 = vmatprep.mubr.bf16.mxu1 %v6559_v2  ;;  %v5931_v3 = vld [vmem:[%s8528_s1 + $0xb4] ss:$20 sps:$4 sm:$0xff]   ;;  %v5932_v4 = vld [vmem:[%s8528_s1 + $0xbc] ss:$20 sps:$4 sm:$0xff]   ;;  %v5938_v8 = vld [vmem:[%s8528_s1 + $0xe4] ss:$20 sps:$4 sm:$0xff]  }
   0x4   : > { %270 = vmatprep.subr.bf16.mxu0 %v5927_v0  ;;  %321 = vmatprep.subr.bf16.mxu1 %v5929_v1  ;;  %v5933_v5 = vld [vmem:[%s8528_s1 + $0xe0] ss:$20 sps:$4 sm:$0xff]   ;;  %v5935_v6 = vld [vmem:[%s8528_s1 + $0xe8] ss:$20 sps:$4 sm:$0xff]   ;;  %v5941_v10 = vld [vmem:[%s8528_s1 + $0x110] ss:$20 sps:$4 sm:$0xff]   ;;  %s51_s24 = scalar_lea.vmem %s8527_s0, %s5744_s23 }
   0x5   : > { %271 = vmatpush1.bf16.msra.mxu0 %v5931_v3  ;;  %322 = vmatpush1.bf16.msra.mxu1 %v5932_v4  ;;  %v5937_v7 = vld [vmem:[%s8528_s1 + $0xdc] ss:$20 sps:$4 sm:$0xff]   ;;  %v5943_v11 = vld [vmem:[%s8528_s1 + $0x104] ss:$20 sps:$4 sm:$0xff]   ;;  %v5944_v12 = vld [vmem:[%s8528_s1 + $0x10c] ss:$20 sps:$4 sm:$0xff]  }
   0x6   : > { %272 = vmatprep.subr.bf16.mxu0 %v5933_v5  ;;  %323 = vmatprep.subr.bf16.mxu1 %v5935_v6  ;;  %v5939_v9 = vld [vmem:[%s8528_s1 + $0x108] ss:$20 sps:$4 sm:$0xff]   ;;  %v5945_v13 = vld [vmem:[%s8528_s1 + $0x130] ss:$20 sps:$4 sm:$0xff]   ;;  %v5947_v14 = vld [vmem:[%s8528_s1 + $0x138] ss:$20 sps:$4 sm:$0xff]  }
   0x7   : > { %v5949_v15 = vld [vmem:[%s8528_s1 + $0x12c] ss:$20 sps:$4 sm:$0xff]   ;;  %v111_v16 = vld [vmem:[%s8528_s1 + $0x154] sm:$0xff]  ;;  %vm254_vm0 = vcmask 1043456   ;;  %v6717_v25 = vld [vmem:[%s51_s24 + $0x8] ss:$0 sps:$4 sm:$0xff]  }
   0x8   : > { %v112_v17 = vld [vmem:[%s8528_s1 + $0x15c] sm:$0xff]  ;;  %v5950_v18 = vld [vmem:[%s8528_s1 + $0x134] ss:$20 sps:$4 sm:$0xff]   ;;  %v5314_v19 = vcombine.high %v111_v16, %v111_v16  ;;  %v5313_v21 = vcombine.low %v111_v16, %v111_v16  ;;  %v5955_v24 = vld [vmem:[%s8528_s1 + $0xc4] ss:$20 sps:$4 sm:$0xff]   ;;  %v123_v32 = vshll.u32 %v6717_v25, 16 }
   0x9   : > { %273 = vmatpush1.bf16.msra.mxu0 %v5937_v7  ;;  %324 = vmatpush1.bf16.msra.mxu1 %v5938_v8  ;;  %v5316_v20 = vcombine.high %v112_v17, %v112_v17  ;;  %v5315_v22 = vcombine.low %v112_v17, %v112_v17  ;;  %v6712_v23 = vld [vmem:[%s51_s24] sm:$0xff]   ;;  %vm114_vm1 = vsmask.f32 7424  ;;  %v5956_v33 = vld [vmem:[%s8528_s1 + $0x8] ss:$20 sps:$4 sm:$0xff]   ;;  %vm247_vm2 = vcmask 588800  }
   0xa   : > { %274 = vmatprep.subr.bf16.mxu0 %v5939_v9  ;;  %325 = vmatprep.subr.bf16.mxu1 %v5941_v10  ;;  %v116_v26 = vshrl.u32 %v6712_v23, 16  ;;  %v118_v27 = vshll.u32 %v6712_v23, 16  ;;  %v5958_v28 = vld [vmem:[%s8528_s1 + $0xc] ss:$20 sps:$4 sm:$0xff]   ;;  %v256_v29 = vsel %vm254_vm0, %v5313_v21, 0  ;;  %v125_v35 = vrot.slane %v123_v32, 1 }
   0xb   : > { %v262_v30 = vsel %vm254_vm0, %v5315_v22, 0  ;;  %v5961_v36 = vld [vmem:[%s8528_s1 + $0xec] ss:$20 sps:$4 sm:$0xff]   ;;  %v5964_v38 = vld [vmem:[%s8528_s1 + $0x34] ss:$20 sps:$4 sm:$0xff]   ;;  %v127_v40 = vshrl.u32 %v6717_v25, 16 }
   0xc   : > { %v120_v31 = vrot.slane %v118_v27, 1  ;;  %v5962_v39 = vld [vmem:[%s8528_s1 + $0x30] ss:$20 sps:$4 sm:$0xff]   ;;  %v5965_v41 = vld [vmem:[%s8528_s1 + $0x114] ss:$20 sps:$4 sm:$0xff]   ;;  %vm735_vm3 = vcmask 1046528  }
   0xd   : > { %275 = vmatpush1.bf16.msra.mxu0 %v5943_v11  ;;  %326 = vmatpush1.bf16.msra.mxu1 %v5944_v12  ;;  %v5968_v42 = vld [vmem:[%s8528_s1 + $0x5c] ss:$20 sps:$4 sm:$0xff]   ;;  %v129_v43 = vor.u32 %v127_v40, %v125_v35  ;;  %v5966_v44 = vld [vmem:[%s8528_s1 + $0x58] ss:$20 sps:$4 sm:$0xff]   ;;  %v5970_v48 = vld [vmem:[%s8528_s1 + $0x80] ss:$20 sps:$4 sm:$0xff]  }
   0xe   : > { %276 = vmatprep.subr.bf16.mxu0 %v5945_v13  ;;  %327 = vmatprep.subr.bf16.mxu1 %v5947_v14  ;;  %v121_v34 = vor.u32 %v120_v31, %v116_v26  ;;  %v5969_v45 = vld [vmem:[%s8528_s1 + $0x13c] ss:$20 sps:$4 sm:$0xff]   ;;  %v5972_v46 = vld [vmem:[%s8528_s1 + $0x84] ss:$20 sps:$4 sm:$0xff]   ;;  %v85_v47 = vld [vmem:[%s8528_s1 + $0xa8] sm:$0xff]  ;;  %s6561_s14 = smov 100  }
   0xf   : > { %v5973_v49 = vld [vmem:[%s8528_s1 + $0x164] ss:$0 sps:$4 sm:$0xff]   ;;  %v5349_v50 = vcombine.high %v85_v47, %v85_v47  ;;  %v5348_v51 = vcombine.low %v85_v47, %v85_v47  ;;  %v5976_v56 = vld [vmem:[%s8528_s1] ss:$20 sps:$4 sm:$0xff]   ;;  %v5983_v58 = vld [vmem:[%s8528_s1 + $0x38] ss:$20 sps:$4 sm:$0xff]  }
  0x10   : > { %v126_v37 = vsel %vm114_vm1, %v121_v34, %v125_v35  ;;  %v5978_v52 = vld [vmem:[%s8528_s1 + $0x4] ss:$20 sps:$4 sm:$0xff]   ;;  %v268_v53 = vsel %vm254_vm0, %v5973_v49, 0  ;;  %v5982_v57 = vld [vmem:[%s8528_s1 + $0x2c] ss:$20 sps:$4 sm:$0xff]   ;;  %v731_v26 = vld [vmem:[%s8528_s1 + $0x210] sm:$0xff] }
  0x11   : > { %277 = vmatpush1.bf16.msra.mxu0 %v5949_v15  ;;  %328 = vmatpush1.bf16.msra.mxu1 %v5950_v18  ;;  %v548_v54 = vsel %vm254_vm0, %v5348_v51, 0  ;;  %v5979_v55 = vld [vmem:[%s8528_s1 + $0x10] ss:$20 sps:$4 sm:$0xff]   ;;  %v5980_v59 = vld [vmem:[%s8528_s1 + $0x28] ss:$20 sps:$4 sm:$0xff]   ;;  %v5381_v32 = vcombine.low %v731_v26, %v731_v26  ;;  %v736_v34 = vrot.slane %v6712_v23, 1 }
  0x12   : > { %5318 = vmatprep.subr.msk.bf16.mxu0 %vm254_vm0, %v5314_v19  ;;  %5321 = vmatprep.subr.msk.bf16.mxu1 %vm254_vm0, %v5316_v20  ;;  %v5986_v60 = vld [vmem:[%s8528_s1 + $0x54] ss:$20 sps:$4 sm:$0xff]   ;;  %v5984_v62 = vld [vmem:[%s8528_s1 + $0x50] ss:$20 sps:$4 sm:$0xff]   ;;  %v5988_v1 = vld [vmem:[%s8528_s1 + $0x78] ss:$20 sps:$4 sm:$0xff]  }
  0x13   : > { %v5987_v61 = vld [vmem:[%s8528_s1 + $0x60] ss:$20 sps:$4 sm:$0xff]   ;;  %v5990_v63 = vld [vmem:[%s8528_s1 + $0x7c] ss:$20 sps:$4 sm:$0xff]   ;;  %v6004_v16 = vld [vmem:[%s8528_s1 + $0x198] ss:$20 sps:$4 sm:$0xff]  }
  0x14   : > { %v5991_v0 = vld [vmem:[%s8528_s1 + $0x88] ss:$20 sps:$4 sm:$0xff]   ;;  %v84_v3 = vld [vmem:[%s8528_s1 + $0xa0] sm:$0xff]  ;;  %v5993_v4 = vld [vmem:[%s8528_s1 + $0xb0] ss:$0 sps:$4 sm:$0xff]   ;;  %v737_v35 = vrot.slane %v6717_v25, 1 }
  0x15   : > { %279 = vmatpush1.bf16.msra.mxu0 %v256_v29  ;;  %330 = vmatpush1.bf16.msra.mxu1 %v262_v30  ;;  %v5347_v5 = vcombine.high %v84_v3, %v84_v3  ;;  %v5346_v6 = vcombine.low %v84_v3, %v84_v3  ;;  %v5997_v7 = vld [vmem:[%s8528_s1 + $0x16c] ss:$20 sps:$4 sm:$0xff]   ;;  %v6000_v8 = vld [vmem:[%s8528_s1 + $0x174] ss:$20 sps:$4 sm:$0xff]   ;;  %v554_v10 = vsel %vm254_vm0, %v5993_v4, 0  ;;  %v5382_v30 = vcombine.high %v731_v26, %v731_v26  ;;  %s6562_s15 = smov 72  }
  0x16   : > { %5775 = vmatprep.subr.bf16.mxu0 %v5955_v24  ;;  %607 = vmatprep.subr.bf16.mxu1 %v5958_v28  ;;  %v5995_v11 = vld [vmem:[%s8528_s1 + $0x168] ss:$20 sps:$4 sm:$0xff]   ;;  %v5998_v12 = vld [vmem:[%s8528_s1 + $0x170] ss:$20 sps:$4 sm:$0xff]   ;;  %v6007_v19 = vld [vmem:[%s8528_s1 + $0x1b8] ss:$20 sps:$4 sm:$0xff]  }
  0x17   : > { %v542_v9 = vsel %vm254_vm0, %v5346_v6, 0  ;;  %v6003_v13 = vld [vmem:[%s8528_s1 + $0x194] ss:$20 sps:$4 sm:$0xff]   ;;  %v6006_v14 = vld [vmem:[%s8528_s1 + $0x19c] ss:$20 sps:$4 sm:$0xff]   ;;  %s6563_s17 = smov 116  }
  0x18   : > { %5319 = vmatmul.mubr.msk.bf16.vlgmr.msra.gmra.mrb[0].mxu0 %vm247_vm2, %v126_v37  ;;  %5322 = vmatmul.mubr.msk.bf16.vlgmr.msra.gmra.mrb[0].mxu1 %vm247_vm2, %v126_v37  ;;  %v6001_v15 = vld [vmem:[%s8528_s1 + $0x190] ss:$20 sps:$4 sm:$0xff]   ;;  %v6010_v20 = vld [vmem:[%s8528_s1 + $0x1c0] ss:$20 sps:$4 sm:$0xff]   ;;  %v6016_v28 = vld [vmem:[%s8528_s1 + $0x1e8] ss:$20 sps:$4 sm:$0xff]  }
  0x19   : > { %5776 = vmatpush3.bf16.msra.mxu0 %v5955_v24  ;;  %608 = vmatpush1.bf16.msra.mxu1 %v5956_v33  ;;  %v6009_v17 = vld [vmem:[%s8528_s1 + $0x1bc] ss:$20 sps:$4 sm:$0xff]   ;;  %v6012_v18 = vld [vmem:[%s8528_s1 + $0x1c4] ss:$20 sps:$4 sm:$0xff]   ;;  %v6018_v22 = vld [vmem:[%s8528_s1 + $0x1ec] ss:$20 sps:$4 sm:$0xff]  }
  0x1a   : > { %5777 = vmatprep.subr.bf16.mxu0 %v5961_v36  ;;  %609 = vmatprep.subr.bf16.mxu1 %v5964_v38  ;;  %v6015_v21 = vld [vmem:[%s8528_s1 + $0x1e4] ss:$20 sps:$4 sm:$0xff]   ;;  %v730_v24 = vld [vmem:[%s8528_s1 + $0x208] sm:$0xff]  ;;  %v6013_v27 = vld [vmem:[%s8528_s1 + $0x1e0] ss:$20 sps:$4 sm:$0xff]   ;;  %s6564_s20 = smov 60  }
  0x1b   : > { %312 = vmatprep.mubr.bf16.mxu0 %v6559_v2  ;;  %363 = vmatprep.mubr.bf16.mxu1 %v6559_v2  ;;  %v5380_v29 = vcombine.high %v730_v24, %v730_v24  ;;  %v5379_v31 = vcombine.low %v730_v24, %v730_v24  ;;  %v6023_v33 = vld [vmem:[%s8528_s1 + $0x178] ss:$20 sps:$4 sm:$0xff]   ;;  %v6024_v38 = vld [vmem:[%s8528_s1 + $0x1a0] ss:$20 sps:$4 sm:$0xff]   ;;  %s6565_s27 = smov 32   ;;  %s6566_s19 = smov 44  }
  0x1c   : > { %v6027_v40 = vld [vmem:[%s8528_s1 + $0x218] ss:$0 sps:$4 sm:$0xff]   ;;  %s6567_s30 = smov 16   ;;  %s6570_s22 = smov 104  }
  0x1d   : > { %5778 = vmatpush3.bf16.msra.mxu0 %v5961_v36  ;;  %610 = vmatpush1.bf16.msra.mxu1 %v5962_v39  ;;  %v863_v36 = vsel %vm254_vm0, %v5379_v31, 0  ;;  %v738_v39 = vsel %vm735_vm3, %v736_v34, %v737_v35  ;;  %s6571_s28 = smov 80   ;;  %s6573_s23 = smov 96  }
  0x1e   : > { %5779 = vmatprep.subr.bf16.mxu0 %v5965_v41  ;;  %611 = vmatprep.subr.bf16.mxu1 %v5968_v42  ;;  %s6577_s13 = smov 126   ;;  %s5239_s16 = scalar_lea.vmem [#allocation6], %s6557_s21 }
  0x1f   : > { %s5246_s18 = scalar_lea.vmem [#allocation8], %s6557_s21  ;;  %s48_s21 = sadd.s32 1, %s6557_s21  }
  0x20   : > { %5320 = vmatmul.mubr.msk.bf16.gmra.mrb[4].mxu0 %vm247_vm2, %v129_v43  ;;  %5323 = vmatmul.mubr.msk.bf16.gmra.mrb[4].mxu1 %vm247_vm2, %v129_v43  ;;  %p45_p0 = scmp.ge.s32.totalorder %s48_s21, 2  }
  0x21   : > { %5780 = vmatpush3.bf16.msra.mxu0 %v5965_v41  ;;  %612 = vmatpush1.bf16.msra.mxu1 %v5966_v44  ;;  %v875_v41 = vsel %vm254_vm0, %v6027_v40, 0 }
  0x22   : > { %5781 = vmatprep.subr.bf16.mxu0 %v5969_v45  ;;  %613 = vmatprep.subr.bf16.mxu1 %v5972_v46 }
  0x23   : > { %5785 = vmatprep.mubr.msk.bf16.mxu0 %vm247_vm2, %v126_v37  ;;  %639 = vmatprep.mubr.bf16.mxu1 %v6559_v2  ;;  %v869_v37 = vsel %vm254_vm0, %v5381_v32, 0 }
  0x25   : > { %5782 = vmatpush3.bf16.msra.mxu0 %v5969_v45  ;;  %614 = vmatpush1.bf16.msra.mxu1 %v5970_v48 }
  0x26   : > { %5893 = vmatprep.subr.msk.bf16.mxu0 %vm254_vm0, %v5973_v49  ;;  %5354 = vmatprep.subr.msk.bf16.mxu1 %vm254_vm0, %v5349_v50 }
  0x29   : > { %5784 = vmatpush3.bf16.msra.mxu0 %v268_v53  ;;  %616 = vmatpush1.bf16.msra.mxu1 %v548_v54 }
  0x2a   : > { %556 = vmatprep.subr.bf16.mxu0 %v5978_v52  ;;  %5789 = vmatprep.subr.bf16.mxu1 %v5979_v55 }
  0x2c   : > { %5786 = vmatmul.mubr.msk.bf16.vlgmr.msra.gmra.mrb[8].mxu0 %vm247_vm2, %v129_v43  ;;  %5355 = vmatmul.mubr.msk.bf16.vlgmr.msra.gmra.mrb[0].mxu1 %vm247_vm2, %v6712_v23 }
  0x2d   : > { %557 = vmatpush1.bf16.msra.mxu0 %v5976_v56  ;;  %5790 = vmatpush3.bf16.msra.mxu1 %v5979_v55 }
  0x2e   : > { %558 = vmatprep.subr.bf16.mxu0 %v5982_v57  ;;  %5791 = vmatprep.subr.bf16.mxu1 %v5983_v58 }
  0x2f   : > { %649 = vmatprep.mubr.bf16.mxu1 %v6559_v2  ;;  %588 = vmatprep.mubr.bf16.mxu0 %v6559_v2 }
  0x31   : > { %559 = vmatpush1.bf16.msra.mxu0 %v5980_v59  ;;  %5792 = vmatpush3.bf16.msra.mxu1 %v5983_v58 }
  0x32   : > { %560 = vmatprep.subr.bf16.mxu0 %v5986_v60  ;;  %5793 = vmatprep.subr.bf16.mxu1 %v5987_v61 }
  0x34   : > { %5356 = vmatmul.mubr.msk.bf16.gmra.mrb[8].mxu1 %vm247_vm2, %v6717_v25 }
  0x35   : > { %561 = vmatpush1.bf16.msra.mxu0 %v5984_v62  ;;  %5794 = vmatpush3.bf16.msra.mxu1 %v5987_v61 }
  0x36   : > { %562 = vmatprep.subr.bf16.mxu0 %v5990_v63  ;;  %5795 = vmatprep.subr.bf16.mxu1 %v5991_v0 }
  0x37   : > { %5799 = vmatprep.mubr.msk.bf16.mxu1 %vm247_vm2, %v6712_v23 }
  0x39   : > { %563 = vmatpush1.bf16.msra.mxu0 %v5988_v1  ;;  %5796 = vmatpush3.bf16.msra.mxu1 %v5991_v0 }
  0x3a   : > { %5351 = vmatprep.subr.msk.bf16.mxu0 %vm254_vm0, %v5347_v5  ;;  %5894 = vmatprep.subr.msk.bf16.mxu1 %vm254_vm0, %v5993_v4  ;;  %v1044_v4 = vlaneseq }
  0x3d   : > { %565 = vmatpush1.bf16.msra.mxu0 %v542_v9  ;;  %5798 = vmatpush3.bf16.msra.mxu1 %v554_v10 }
  0x3e   : > { %877 = vmatprep.subr.bf16.mxu0 %v5997_v7  ;;  %928 = vmatprep.subr.bf16.mxu1 %v6000_v8  ;;  %v6940_v8 = vshrl.u32 %v1044_v4, 7 }
  0x40   : > { %5352 = vmatmul.mubr.msk.bf16.vlgmr.msra.gmra.mrb[0].mxu0 %vm247_vm2, %v6712_v23  ;;  %5800 = vmatmul.mubr.msk.bf16.vlgmr.msra.gmra.mrb[12].mxu1 %vm247_vm2, %v6717_v25  ;;  %v6025_v23 = vld [vmem:[%s8528_s1 + $0x1c8] ss:$20 sps:$4 sm:$0xff]  }
  0x41   : > { %878 = vmatpush1.bf16.msra.mxu0 %v5995_v11  ;;  %929 = vmatpush1.bf16.msra.mxu1 %v5998_v12  ;;  %v6945_v12 = vsub.s32 0, %v6940_v8 }
  0x42   : > { %879 = vmatprep.subr.bf16.mxu0 %v6003_v13  ;;  %930 = vmatprep.subr.bf16.mxu1 %v6006_v14  ;;  %v6948_v13 = vsub.s32 2, %v6940_v8  ;;  %v6953_v14 = vld [vmem:[%s8529_s2] ss:$2 sm:$0x1f] }
  0x43   : > { %598 = vmatprep.mubr.bf16.mxu0 %v6559_v2  ;;  %960 = vmatprep.mubr.bf16.mxu1 %v6559_v2 }
  0x45   : > { %880 = vmatpush1.bf16.msra.mxu0 %v6001_v15  ;;  %931 = vmatpush1.bf16.msra.mxu1 %v6004_v16  ;;  %v6560_v15 = vmov 1966171168  }
  0x46   : > { %881 = vmatprep.subr.bf16.mxu0 %v6009_v17  ;;  %932 = vmatprep.subr.bf16.mxu1 %v6012_v18  ;;  %v1200_v16 = vunpack.c.l.s4 %v6560_v15  ;;  %v6956_v17 = vsub.s32 1, %v6940_v8  ;;  %v6959_v18 = vsub.s32 3, %v6940_v8 }
  0x48   : > { %5353 = vmatmul.mubr.msk.bf16.gmra.mrb[12].mxu0 %vm247_vm2, %v6717_v25  ;;  %v6026_v25 = vld [vmem:[%s8528_s1 + $0x1f0] ss:$20 sps:$4 sm:$0xff]   ;;  %v6976_v24 = vrot.slane %v6953_v14, %v6956_v17  ;;  %v6980_v26 = vrot.slane %v6953_v14, %v6959_v18 }
  0x49   : > { %882 = vmatpush1.bf16.msra.mxu0 %v6007_v19  ;;  %933 = vmatpush1.bf16.msra.mxu1 %v6010_v20  ;;  %v6964_v19 = vld [vmem:[%s8529_s2 + $0x1] ss:$2 sm:$0x1f]  ;;  %v6968_v20 = vrot.slane %v6953_v14, %v6945_v12 }
  0x4a   : > { %883 = vmatprep.subr.bf16.mxu0 %v6015_v21  ;;  %934 = vmatprep.subr.bf16.mxu1 %v6018_v22  ;;  %v6972_v21 = vrot.slane %v6953_v14, %v6948_v13  ;;  %v1201_v22 = vunpack.c.0.s8 %v1200_v16  ;;  %v6992_v31 = vrot.slane %v6964_v19, %v6956_v17  ;;  %v6996_v32 = vrot.slane %v6964_v19, %v6959_v18 }
  0x4b   : > { %909 = vmatprep.mubr.bf16.mxu0 %v6559_v2 }
  0x4d   : > { %884 = vmatpush1.bf16.msra.mxu0 %v6013_v27  ;;  %935 = vmatpush1.bf16.msra.mxu1 %v6016_v28  ;;  %v6984_v27 = vrot.slane %v6964_v19, %v6945_v12  ;;  %v6988_v28 = vrot.slane %v6964_v19, %v6948_v13 }
  0x4e   : > { %5384 = vmatprep.subr.msk.bf16.mxu0 %vm254_vm0, %v5380_v29  ;;  %5387 = vmatprep.subr.msk.bf16.mxu1 %vm254_vm0, %v5382_v30 }
  0x51   : > { %886 = vmatpush1.bf16.msra.mxu0 %v863_v36  ;;  %937 = vmatpush1.bf16.msra.mxu1 %v869_v37  ;;  %v7001_v37 = vsub.s32 %v1201_v22, %v6940_v8 }
  0x52   : > { %5803 = vmatprep.subr.bf16.mxu0 %v6023_v33 }
  0x54   : > { %5385 = vmatmul.mubr.msk.bf16.vlgmr.msra.gmra.mrb[0].mxu0 %vm247_vm2, %v738_v39  ;;  %5388 = vmatmul.mubr.msk.bf16.vlgmr.msra.gmra.mrb[0].mxu1 %vm247_vm2, %v738_v39 }
  0x55   : > { %5804 = vmatpush3.bf16.msra.mxu0 %v6023_v33  ;;  %919 = vmatprep.mubr.bf16.mxu0 %v6559_v2 }
  0x56   : > { %5805 = vmatprep.subr.bf16.mxu0 %v6024_v38  ;;  %970 = vmatprep.mubr.bf16.mxu1 %v6559_v2 }
  0x59   : > { %5806 = vmatpush3.bf16.msra.mxu0 %v6024_v38 }
  0x5a   : > { %5807 = vmatprep.subr.bf16.mxu0 %v6025_v23 }
  0x5c   : > { %5386 = vmatmul.mubr.msk.bf16.gmra.mrb[16].mxu0 %vm247_vm2, %v737_v35  ;;  %5389 = vmatmul.mubr.msk.bf16.gmra.mrb[16].mxu1 %vm247_vm2, %v737_v35 }
  0x5d   : > { %5808 = vmatpush3.bf16.msra.mxu0 %v6025_v23  ;;  %5813 = vmatprep.mubr.msk.bf16.mxu0 %vm247_vm2, %v738_v39 }
  0x5e   : > { %5809 = vmatprep.subr.bf16.mxu0 %v6026_v25 }
  0x61   : > { %5810 = vmatpush3.bf16.msra.mxu0 %v6026_v25 }
  0x62   : > { %5895 = vmatprep.subr.msk.bf16.mxu0 %vm254_vm0, %v6027_v40 }
  0x65   : > { %5812 = vmatpush3.bf16.msra.mxu0 %v875_v41 }
  0x68   : > { %5814 = vmatmul.mubr.msk.bf16.vlgmr.msra.gmra.mrb[20].mxu0 %vm247_vm2, %v737_v35 }
  0xf3   : > { %v314_v42 = vpop.f32.mrb[4].mxu0  ;;  %v365_v43 = vpop.f32.mrb[4].mxu1 }
  0xf4   : > { %v316_v44 = vpop.f32.mrb[5].mxu0  ;;  %v367_v45 = vpop.f32.mrb[5].mxu1 }
  0xf5   : > { %v318_v46 = vpop.f32.mrb[6].mxu0  ;;  %v369_v47 = vpop.f32.mrb[6].mxu1 }
  0xf6   : > { %v319_v48 = vpop.f32.mrb[7].mxu0  ;;  %v370_v49 = vpop.f32.mrb[7].mxu1 }
  0xff   : > { %v5787_v50 = vpop.f32.mrb[8].mxu0 }
 0x100   : > { %v406_v51 = vpop.f32.mrb[9].mxu0 }
 0x101   : > { %v5788_v52 = vpop.f32.mrb[10].mxu0 }
 0x102   : > { %v409_v53 = vpop.f32.mrb[11].mxu0 }
 0x107   : > { %v651_v54 = vpop.f32.mrb[8].mxu1 }
 0x108   : > { %v6927_v55 = vadd.f32 %v651_v54, %v365_v43  ;;  %v653_v56 = vpop.f32.mrb[9].mxu1 }
 0x109   : > { %v6929_v57 = vadd.f32 %v653_v56, %v367_v45  ;;  %v655_v58 = vpop.f32.mrb[10].mxu1 }
 0x10a   : > { %v656_v59 = vpop.f32.mrb[11].mxu1 }
 0x113   : > { %v5801_v60 = vpop.f32.mrb[12].mxu1 }
 0x114   : > { %v6931_v61 = vadd.f32 %v5801_v60, %v5787_v50  ;;  %v692_v62 = vpop.f32.mrb[13].mxu1 }
 0x115   : > { %v6933_v63 = vadd.f32 %v692_v62, %v406_v51  ;;  %v5802_v0 = vpop.f32.mrb[14].mxu1 }
 0x116   : > { %v695_v1 = vpop.f32.mrb[15].mxu1 }
 0x117   : > { %v6935_v3 = vadd.f32 %v695_v1, %v409_v53 }
 0x11b   : > { %v600_v5 = vpop.f32.mrb[12].mxu0 }
 0x11c   : > { %v6937_v6 = vadd.f32 %v600_v5, %v314_v42  ;;  %v602_v7 = vpop.f32.mrb[13].mxu0 }
 0x11d   : > { %v6942_v9 = vadd.f32 %v602_v7, %v316_v44  ;;  %v604_v10 = vpop.f32.mrb[14].mxu0 }
 0x11e   : > { %v605_v11 = vpop.f32.mrb[15].mxu0 }
 0x127   : > { %v911_v29 = vpop.f32.mrb[0].mxu0  ;;  %v962_v30 = vpop.f32.mrb[0].mxu1 }
 0x128   : > { %v1069_v33 = vadd.f32 %v6968_v20, %v911_v29  ;;  %v1071_v34 = vadd.f32 %v6972_v21, %v962_v30  ;;  %v913_v35 = vpop.f32.mrb[1].mxu0  ;;  %v964_v36 = vpop.f32.mrb[1].mxu1 }
 0x129   : > { %v1070_v38 = vadd.f32 %v6976_v24, %v913_v35  ;;  %v1072_v39 = vadd.f32 %v6980_v26, %v964_v36  ;;  %v915_v23 = vpop.f32.mrb[2].mxu0  ;;  %v966_v25 = vpop.f32.mrb[2].mxu1 }
 0x12a   : > { %vm1084_vm4 = vcmp.gt.f32.partialorder %v1069_v33, 0.0  ;;  %v1127_v40 = vmul.f32 %v6984_v27, %v1069_v33  ;;  %vm1086_vm5 = vcmp.gt.f32.partialorder %v1071_v34, 0.0  ;;  %v1129_v41 = vmul.f32 %v6988_v28, %v1071_v34  ;;  %v917_v42 = vpop.f32.mrb[3].mxu0  ;;  %v968_v43 = vpop.f32.mrb[3].mxu1 }
 0x12b   : > { %vm1085_vm6 = vcmp.gt.f32.partialorder %v1070_v38, 0.0  ;;  %v1128_v44 = vmul.f32 %v6992_v31, %v1070_v38  ;;  %vm1087_vm7 = vcmp.gt.f32.partialorder %v1072_v39, 0.0  ;;  %v1130_v45 = vmul.f32 %v6996_v32, %v1072_v39 }
 0x12c   : > { %v1142_v46 = vsel %vm1084_vm4, %v1069_v33, %v1127_v40  ;;  %v1144_v47 = vsel %vm1086_vm5, %v1071_v34, %v1129_v41  ;;  %v1074_v48 = vadd.f32 %v6968_v20, %v915_v23  ;;  %v1076_v49 = vadd.f32 %v6972_v21, %v966_v25 }
 0x12d   : > { %v1162_v50 = vrot.slane %v1142_v46, 1  ;;  %v1177_v51 = vrot.slane %v1142_v46, 2  ;;  %v1164_v52 = vrot.slane %v1144_v47, 1  ;;  %v1179_v53 = vrot.slane %v1144_v47, 2 }
 0x12e   : > { %v1143_v54 = vsel %vm1085_vm6, %v1070_v38, %v1128_v44  ;;  %v1145_v56 = vsel %vm1087_vm7, %v1072_v39, %v1130_v45  ;;  %vm1089_vm8 = vcmp.gt.f32.partialorder %v1074_v48, 0.0  ;;  %v1132_v58 = vmul.f32 %v6984_v27, %v1074_v48 }
 0x12f   : > { %v1172_v59 = vmax.f32 %v1142_v46, %v1162_v50  ;;  %v1174_v60 = vmax.f32 %v1144_v47, %v1164_v52  ;;  %v1163_v62 = vrot.slane %v1143_v54, 1  ;;  %v1178_v0 = vrot.slane %v1143_v54, 2  ;;  %v921_v1 = vpop.f32.mrb[16].mxu0  ;;  %v972_v5 = vpop.f32.mrb[16].mxu1 }
 0x130   : > { %v1165_v7 = vrot.slane %v1145_v56, 1  ;;  %v1180_v10 = vrot.slane %v1145_v56, 2  ;;  %v1147_v11 = vsel %vm1089_vm8, %v1074_v48, %v1132_v58  ;;  %vm1091_vm9 = vcmp.gt.f32.partialorder %v1076_v49, 0.0  ;;  %v923_v15 = vpop.f32.mrb[17].mxu0  ;;  %v7012_v16 = vpop.f32.mrb[17].mxu1 }
 0x131   : > { %v1187_v22 = vmax.f32 %v1172_v59, %v1177_v51  ;;  %v1189_v29 = vmax.f32 %v1174_v60, %v1179_v53  ;;  %v1173_v30 = vmax.f32 %v1143_v54, %v1163_v62  ;;  %v1297_v33 = vrot.slane %v1147_v11, 2  ;;  %v925_v34 = vpop.f32.mrb[18].mxu0  ;;  %v976_v35 = vpop.f32.mrb[18].mxu1 }
 0x132   : > { %v1175_v36 = vmax.f32 %v1145_v56, %v1165_v7  ;;  %v1361_v38 = vrot.slane %v1147_v11, 1  ;;  %v1134_v39 = vmul.f32 %v6988_v28, %v1076_v49  ;;  %v1075_v23 = vadd.f32 %v6976_v24, %v917_v42  ;;  %v926_v25 = vpop.f32.mrb[19].mxu0  ;;  %v977_v40 = vpop.f32.mrb[19].mxu1 }
 0x133   : > { %v1188_v41 = vmax.f32 %v1173_v30, %v1178_v0  ;;  %v1307_v44 = vmax.f32 %v1172_v59, %v1297_v33  ;;  %v1077_v45 = vadd.f32 %v6980_v26, %v968_v43  ;;  %v1037_v46 = vadd.f32 %v921_v1, %v6937_v6 }
 0x134   : > { %v1190_v47 = vmax.f32 %v1175_v36, %v1180_v10  ;;  %v1371_v48 = vmax.f32 %v1147_v11, %v1361_v38  ;;  %v1149_v50 = vsel %vm1091_vm9, %v1076_v49, %v1134_v39  ;;  %vm1090_vm10 = vcmp.gt.f32.partialorder %v1075_v23, 0.0 }
 0x135   : > { %v1197_v51 = vcombine.low %v1187_v22, %v1188_v41  ;;  %v1248_v52 = vcombine.high %v1187_v22, %v1188_v41  ;;  %v1299_v53 = vrot.slane %v1149_v50, 2  ;;  %v1363_v54 = vrot.slane %v1149_v50, 1 }
 0x136   : > { %v1198_v56 = vcombine.low %v1189_v29, %v1190_v47  ;;  %v1249_v58 = vcombine.high %v1189_v29, %v1190_v47  ;;  %v1133_v42 = vmul.f32 %v6992_v31, %v1075_v23  ;;  %vm1092_vm11 = vcmp.gt.f32.partialorder %v1077_v45, 0.0 }
 0x137   : > { %v7021_v62 = vrot.slane %v1197_v51, %v7001_v37  ;;  %v7024_v43 = vrot.slane %v1248_v52, %v7001_v37  ;;  %v1309_v6 = vmax.f32 %v1174_v60, %v1299_v53  ;;  %v1373_v59 = vmax.f32 %v1149_v50, %v1363_v54 }
 0x138   : > { %v7027_v0 = vrot.slane %v1198_v56, %v7001_v37  ;;  %v7030_v49 = vrot.slane %v1249_v58, %v7001_v37  ;;  %v1148_v1 = vsel %vm1090_vm10, %v1075_v23, %v1133_v42  ;;  %v1376_v7 = vmax.f32 %v1371_v48, %v1297_v33 }
 0x139   : > { %v1298_v10 = vrot.slane %v1148_v1, 2  ;;  %v1362_v11 = vrot.slane %v1148_v1, 1  ;;  %v1135_v22 = vmul.f32 %v6996_v32, %v1077_v45  ;;  %v1079_v34 = vadd.f32 %v6968_v20, %v1037_v46 }
 0x13a   : > { %v1220_v29 = vcombine.low %v7021_v62, %v7027_v0  ;;  %v1272_v60 = vcombine.low %v7024_v43, %v7030_v49  ;;  %v1039_v35 = vadd.f32 %v972_v5, %v6927_v55  ;;  %v1038_v23 = vadd.f32 %v923_v15, %v6942_v9 }
 0x13b   : > { %v1308_v38 = vmax.f32 %v1173_v30, %v1298_v10  ;;  %v1372_v39 = vmax.f32 %v1148_v1, %v1362_v11  ;;  %v1150_v25 = vsel %vm1092_vm11, %v1077_v45, %v1135_v22  ;;  %v5815_v33 = vpop.f32.mrb[20].mxu0  ;;  %v1378_v40 = vmax.f32 %v1373_v59, %v1299_v53 }
 0x13c   : > { %v1300_v41 = vrot.slane %v1150_v25, 2  ;;  %v1364_v47 = vrot.slane %v1150_v25, 1  ;;  %v1062_v50 = vsub.s32 4, %v6940_v8  ;;  %v1013_v51 = vpop.f32.mrb[21].mxu0  ;;  %vm1094_vm12 = vcmp.gt.f32.partialorder %v1079_v34, 0.0 }
 0x13d   : > { %v1317_v52 = vcombine.high %v1307_v44, %v1308_v38  ;;  %v1377_v54 = vmax.f32 %v1372_v39, %v1298_v10  ;;  %v1137_v56 = vmul.f32 %v6984_v27, %v1079_v34  ;;  %v5816_v20 = vpop.f32.mrb[22].mxu0  ;;  %v1081_v5 = vadd.f32 %v6972_v21, %v1039_v35 }
 0x13e   : > { %v1310_v46 = vmax.f32 %v1175_v36, %v1300_v41  ;;  %v7042_v55 = vmax.f32 %v1150_v25, %v1364_v47  ;;  %v1080_v9 = vadd.f32 %v6976_v24, %v1038_v23  ;;  %v1016_v15 = vpop.f32.mrb[23].mxu0  ;;  %vm7095_vm4 = vcmp.lt.s32.totalorder %v1044_v4, 616 }
 0x13f   : > { %v7047_v30 = vrot.slane %v1317_v52, %v7001_v37  ;;  %v1386_v45 = vcombine.low %v1376_v7, %v1377_v54  ;;  %v1434_v8 = vcombine.high %v1376_v7, %v1377_v54  ;;  %v1152_v53 = vsel %vm1094_vm12, %v1079_v34, %v1137_v56 }
 0x140   : > { %v1318_v44 = vcombine.high %v1309_v6, %v1310_v46  ;;  %v1379_v58 = vmax.f32 %v7042_v55, %v1300_v41  ;;  %v1483_v42 = vrot.slane %v1152_v53, 2  ;;  %v1547_v27 = vrot.slane %v1152_v53, 1 }
 0x141   : > { %v7051_v36 = vrot.slane %v1386_v45, %v7001_v37  ;;  %v7054_v1 = vrot.slane %v1434_v8, %v7001_v37  ;;  %vm1096_vm13 = vcmp.gt.f32.partialorder %v1081_v5, 0.0  ;;  %v1139_v21 = vmul.f32 %v6988_v28, %v1081_v5 }
 0x142   : > { %v7058_v24 = vrot.slane %v1318_v44, %v7001_v37  ;;  %v1387_v10 = vcombine.low %v1378_v40, %v1379_v58  ;;  %v1435_v7 = vcombine.high %v1378_v40, %v1379_v58  ;;  %v1493_v11 = vmax.f32 %v1371_v48, %v1483_v42 }
 0x143   : > { %v1154_v6 = vsel %vm1096_vm13, %v1081_v5, %v1139_v21  ;;  %vm1095_vm14 = vcmp.gt.f32.partialorder %v1080_v9, 0.0  ;;  %v1138_v22 = vmul.f32 %v6992_v31, %v1080_v9  ;;  %v1557_v25 = vmax.f32 %v1152_v53, %v1547_v27 }
 0x144   : > { %v1341_v34 = vcombine.low %v7047_v30, %v7058_v24  ;;  %v7064_v35 = vrot.slane %v1387_v10, %v7001_v37  ;;  %v7067_v38 = vrot.slane %v1435_v7, %v7001_v37  ;;  %v1485_v28 = vrot.slane %v1154_v6, 2 }
 0x145   : > { %v1549_v23 = vrot.slane %v1154_v6, 1  ;;  %v1153_v41 = vsel %vm1095_vm14, %v1080_v9, %v1138_v22  ;;  %v1040_v48 = vadd.f32 %v7012_v16, %v6929_v57  ;;  %v1063_v52 = vrot.slane %v6953_v14, %v1062_v50 }
 0x146   : > { %v1409_v40 = vcombine.low %v7051_v36, %v7064_v35  ;;  %v1458_v31 = vcombine.low %v7054_v1, %v7067_v38  ;;  %v1495_v47 = vmax.f32 %v1373_v59, %v1485_v28  ;;  %v1484_v54 = vrot.slane %v1153_v41, 2 }
 0x147   : > { %v1548_v56 = vrot.slane %v1153_v41, 1  ;;  %v1082_v20 = vadd.f32 %v6980_v26, %v1040_v48  ;;  %v1559_v46 = vmax.f32 %v1154_v6, %v1549_v23  ;;  %v1041_v5 = vadd.f32 %v5815_v33, %v6931_v61 }
 0x148   : > { %v1121_v9 = vrot.slane %v6964_v19, %v1062_v50  ;;  %v1031_v57 = vadd.f32 %v1013_v51, %v6933_v63  ;;  %v1562_v16 = vmax.f32 %v1557_v25, %v1483_v42  ;;  %v1494_v45 = vmax.f32 %v1372_v39, %v1484_v54 }
 0x149   : > { %v1558_v8 = vmax.f32 %v1153_v41, %v1548_v56  ;;  %vm1097_vm15 = vcmp.gt.f32.partialorder %v1082_v20, 0.0  ;;  %v1140_v53 = vmul.f32 %v6996_v32, %v1082_v20  ;;  %v1083_v59 = vadd.f32 %v1063_v52, %v1041_v5 }
 0x14a   : > { %v1073_v44 = vadd.f32 %v1063_v52, %v1031_v57  ;;  %v1036_v14 = vadd.f32 %v1016_v15, %v6935_v3  ;;  %v7086_v26 = vrot.slane %v1220_v29, %v7001_v37  ;;  %v1503_v61 = vcombine.high %v1493_v11, %v1494_v45 }
 0x14b   : > { %v1563_v19 = vmax.f32 %v1558_v8, %v1484_v54  ;;  %v1625_v33 = vcombine.high %v1557_v25, %v1558_v8  ;;  %v1564_v63 = vmax.f32 %v1559_v46, %v1485_v28  ;;  %v1155_v50 = vsel %vm1097_vm15, %v1082_v20, %v1140_v53 }
 0x14c   : > { %vm1098_vm0 = vcmp.gt.f32.partialorder %v1083_v59, 0.0  ;;  %v1141_v39 = vmul.f32 %v1121_v9, %v1083_v59  ;;  %v7089_v51 = vrot.slane %v1503_v61, %v7001_v37  ;;  %v1486_v58 = vrot.slane %v1155_v50, 2 }
 0x14d   : > { %v1572_v32 = vcombine.low %v1562_v16, %v1563_v19  ;;  %vm1088_vm1 = vcmp.gt.f32.partialorder %v1073_v44, 0.0  ;;  %v1550_v3 = vrot.slane %v1155_v50, 1  ;;  %v1131_v42 = vmul.f32 %v1121_v9, %v1073_v44 }
 0x14e   : > { %v1156_v15 = vsel %vm1098_vm0, %v1083_v59, %v1141_v39  ;;  %v1078_v27 = vadd.f32 %v1063_v52, %v1036_v14  ;;  %v1634_v0 = vrot.slane %v1625_v33, %v7001_v37  ;;  %v1496_v29 = vmax.f32 %v7042_v55, %v1486_v58 }
 0x14f   : > { %v1580_v62 = vrot.slane %v1572_v32, %v7001_v37  ;;  %v1551_v21 = vrot.slane %v1156_v15, 1  ;;  %v1560_v10 = vmax.f32 %v1155_v50, %v1550_v3  ;;  %v1146_v7 = vsel %vm1088_vm1, %v1073_v44, %v1131_v42 }
 0x150   : > { %vm1093_vm3 = vcmp.gt.f32.partialorder %v1078_v27, 0.0  ;;  %v1136_v11 = vmul.f32 %v1121_v9, %v1078_v27  ;;  %v1504_v22 = vcombine.high %v1495_v47, %v1496_v29  ;;  %v1487_v28 = vrot.slane %v1156_v15, 2 }
 0x151   : > { %v1561_v25 = vmax.f32 %v1156_v15, %v1551_v21  ;;  %v1166_v23 = vrot.slane %v1146_v7, 1  ;;  %v1565_v41 = vmax.f32 %v1560_v10, %v1486_v58  ;;  %v1626_v48 = vcombine.high %v1559_v46, %v1560_v10 }
 0x152   : > { %v1181_v52 = vrot.slane %v1146_v7, 2  ;;  %v1151_v54 = vsel %vm1093_vm3, %v1078_v27, %v1136_v11  ;;  %v7100_v55 = vrot.slane %v1504_v22, %v7001_v37  ;;  %v1279_v19 = vrot.slane %v1272_v60, %v7001_v37 }
 0x153   : > { %v1566_v56 = vmax.f32 %v1561_v25, %v1487_v28  ;;  %v1627_v20 = vcombine.high %v1561_v25, %v1561_v25  ;;  %v1176_v5 = vmax.f32 %v1146_v7, %v1166_v23  ;;  %v1573_v9 = vcombine.low %v1564_v63, %v1565_v41 }
 0x154   : > { %v1641_v57 = vrot.slane %v1626_v48, %v7001_v37  ;;  %v1301_v16 = vrot.slane %v1151_v54, 2  ;;  %v1365_v45 = vrot.slane %v1151_v54, 1  ;;  %v1527_v47 = vcombine.low %v7089_v51, %v7100_v55 }
 0x155   : > { %v1594_v8 = vrot.slane %v1566_v56, %v7001_v37  ;;  %v1648_v46 = vrot.slane %v1627_v20, %v7001_v37  ;;  %v1191_v53 = vmax.f32 %v1176_v5, %v1181_v52  ;;  %v1587_v59 = vrot.slane %v1573_v9, %v7001_v37 }
 0x156   : > { %v1649_v44 = vcombine.low %v1634_v0, %v1641_v57  ;;  %v1311_v14 = vmax.f32 %v1176_v5, %v1301_v16  ;;  %v1375_v61 = vmax.f32 %v1151_v54, %v1365_v45  ;;  %v1348_v3 = vrot.slane %v1341_v34, %v7001_v37 }
 0x157   : > { %v1609_v33 = vrot.slane %v1594_v8, %v7001_v37  ;;  %v1663_v63 = vrot.slane %v1648_v46, %v7001_v37  ;;  %v1219_v50 = vrot.slane %v1191_v53, %v7001_v37  ;;  %v1595_v39 = vcombine.low %v1580_v62, %v1587_v59  ;;  %v6030_v8 = vld [vmem:[%s8530_s3 + $0x274] ss:$16 sps:$4 sm:$0xff]   ;;  %v6031_v46 = vld [vmem:[%s8530_s3 + $0x278] ss:$16 sps:$4 sm:$0xff]  }
 0x158   : > { %v1656_v51 = vrot.slane %v1649_v44, %v7001_v37  ;;  %v1250_v32 = vcombine.high %v1191_v53, %v1191_v53  ;;  %v1319_v58 = vcombine.high %v1311_v14, %v1311_v14  ;;  %v1380_v43 = vmax.f32 %v1375_v61, %v1301_v16  ;;  %v6033_v53 = vld [vmem:[%s8530_s3 + $0x27c] ss:$16 sps:$4 sm:$0xff]   ;;  %v6036_v59 = vld [vmem:[%s8530_s3 + $0x294] ss:$16 sps:$4 sm:$0xff]   ;;  %2550 = vmatprep.subr.bf16.mxu1 %v6030_v8  ;;  %v6064_v8 = vld [vmem:[%s8530_s3 + $0x330] ss:$16 sps:$4 sm:$0xff]  }
 0x159   : > { %v1234_v15 = vrot.slane %v1219_v50, %v7001_v37  ;;  %v1497_v49 = vmax.f32 %v1375_v61, %v1487_v28  ;;  %v1602_v60 = vrot.slane %v1595_v39, %v7001_v37  ;;  %v1465_v36 = vrot.slane %v1458_v31, %v7001_v37  ;;  %v6039_v44 = vld [vmem:[%s8530_s3 + $0x29c] ss:$16 sps:$4 sm:$0xff]   ;;  %2636 = vmatprep.subr.bf16.mxu0 %v6033_v53  ;;  %v6034_v61 = vld [vmem:[%s8530_s3 + $0x290] ss:$16 sps:$4 sm:$0xff]  }
 0x15a   : > { %v1664_v42 = vcombine.low %v1656_v51, %v1663_v63  ;;  %v1271_v27 = vrot.slane %v1250_v32, %v7001_v37  ;;  %v1340_v62 = vrot.slane %v1319_v58, %v7001_v37  ;;  %v1408_v21 = vrot.slane %v1380_v43, %v7001_v37  ;;  %2637 = vmatpush1.bf16.msra.mxu0 %v6031_v46  ;;  %v6066_v46 = vld [vmem:[%s8530_s3 + $0x334] ss:$16 sps:$4 sm:$0xff]  }
 0x15b   : > { %v1235_v0 = vcombine.low %v7086_v26, %v1234_v15  ;;  %v1243_v29 = vcombine.high %v7086_v26, %v1234_v15  ;;  %v1436_v10 = vcombine.high %v1380_v43, %v1380_v43  ;;  %v1610_v30 = vcombine.low %v1602_v60, %v1609_v33  ;;  %2638 = vmatprep.subr.bf16.mxu0 %v6039_v44  ;;  %v6042_v15 = vld [vmem:[%s8530_s3 + $0x2b4] ss:$16 sps:$4 sm:$0xff]   ;;  %v6043_v43 = vld [vmem:[%s8530_s3 + $0x2b8] ss:$16 sps:$4 sm:$0xff]  }
 0x15c   : > { %v1615_v24 = vcombine.high %v1602_v60, %v1609_v33  ;;  %1667 = vst.msk [vmem:[#allocation2 + $0x2a] ss:$8 sm:$0xf] %vm7095_vm4, %v1664_v42  ;;  %1668 = vst.msk [vmem:[#allocation2 + $0x2a] ss:$8 sm:$0x10] %vm7095_vm4, %v1664_v42  ;;  %v1286_v34 = vrot.slane %v1271_v27, %v7001_v37  ;;  %v1355_v7 = vrot.slane %v1340_v62, %v7001_v37 }
 0x15d   : > { %v1416_v26 = vrot.slane %v1409_v40, %v7001_v37  ;;  %1241 = vst.msk [vmem:[#allocation2] ss:$8 sm:$0xf] %vm7095_vm4, %v1235_v0  ;;  %1242 = vst.msk [vmem:[#allocation2] ss:$8 sm:$0x10] %vm7095_vm4, %v1235_v0  ;;  %v1423_v11 = vrot.slane %v1408_v21, %v7001_v37  ;;  %v1457_v22 = vrot.slane %v1436_v10, %v7001_v37 }
 0x15e   : > { %1246 = vst.msk [vmem:[#allocation2 + $0x1] ss:$8 sm:$0xf] %vm7095_vm4, %v1243_v29  ;;  %1247 = vst.msk [vmem:[#allocation2 + $0x1] ss:$8 sm:$0x10] %vm7095_vm4, %v1243_v29  ;;  %v1505_v28 = vcombine.high %v1497_v49, %v1497_v49  ;;  %v1287_v35 = vcombine.low %v1279_v19, %v1286_v34  ;;  %v1356_v40 = vcombine.high %v1348_v3, %v1355_v7 }
 0x15f   : > { %1613 = vst.msk [vmem:[#allocation2 + $0x28] ss:$8 sm:$0xf] %vm7095_vm4, %v1610_v30  ;;  %1614 = vst.msk [vmem:[#allocation2 + $0x28] ss:$8 sm:$0x10] %vm7095_vm4, %v1610_v30  ;;  %v1424_v25 = vcombine.low %v1416_v26, %v1423_v11  ;;  %v1429_v23 = vcombine.high %v1416_v26, %v1423_v11  ;;  %v1472_v41 = vrot.slane %v1457_v22, %v7001_v37 }
 0x160   : > { %1618 = vst.msk [vmem:[#allocation2 + $0x29] ss:$8 sm:$0xf] %vm7095_vm4, %v1615_v24  ;;  %1619 = vst.msk [vmem:[#allocation2 + $0x29] ss:$8 sm:$0x10] %vm7095_vm4, %v1615_v24  ;;  %v1526_v1 = vrot.slane %v1505_v28, %v7001_v37  ;;  %v1534_v38 = vrot.slane %v1527_v47, %v7001_v37 }
 0x161   : > { %1290 = vst.msk [vmem:[#allocation2 + $0x2] ss:$8 sm:$0xf] %vm7095_vm4, %v1287_v35  ;;  %1291 = vst.msk [vmem:[#allocation2 + $0x2] ss:$8 sm:$0x10] %vm7095_vm4, %v1287_v35  ;;  %v1473_v31 = vcombine.low %v1465_v36, %v1472_v41 }
 0x162   : > { %1359 = vst.msk [vmem:[#allocation2 + $0x3] ss:$8 sm:$0xf] %vm7095_vm4, %v1356_v40  ;;  %1360 = vst.msk [vmem:[#allocation2 + $0x3] ss:$8 sm:$0x10] %vm7095_vm4, %v1356_v40  ;;  %v1541_v48 = vrot.slane %v1526_v1, %v7001_v37 }
 0x163   : > { %1427 = vst.msk [vmem:[#allocation2 + $0x4] ss:$8 sm:$0xf] %vm7095_vm4, %v1424_v25  ;;  %1428 = vst.msk [vmem:[#allocation2 + $0x4] ss:$8 sm:$0x10] %vm7095_vm4, %v1424_v25 }
 0x164   : > { %1432 = vst.msk [vmem:[#allocation2 + $0x5] ss:$8 sm:$0xf] %vm7095_vm4, %v1429_v23  ;;  %1433 = vst.msk [vmem:[#allocation2 + $0x5] ss:$8 sm:$0x10] %vm7095_vm4, %v1429_v23  ;;  %v1542_v52 = vcombine.high %v1534_v38, %v1541_v48 }
 0x165   : > { %1476 = vst.msk [vmem:[#allocation2 + $0x6] ss:$8 sm:$0xf] %vm7095_vm4, %v1473_v31  ;;  %1477 = vst.msk [vmem:[#allocation2 + $0x6] ss:$8 sm:$0x10] %vm7095_vm4, %v1473_v31 }
 0x166   : > { %1545 = vst.msk [vmem:[#allocation2 + $0x7] ss:$8 sm:$0xf] %vm7095_vm4, %v1542_v52  ;;  %1546 = vst.msk [vmem:[#allocation2 + $0x7] ss:$8 sm:$0x10] %vm7095_vm4, %v1542_v52 }
 0x167   : > { %v7187_v54 = vld [vmem:[#allocation2 + $0x38] sm:$0x7]  ;;  %v7189_v55 = vld [vmem:[#allocation2 + $0x30] sm:$0x7]  ;;  %v7195_v56 = vld [vmem:[#allocation2 + $0x40] sm:$0x7] }
 0x168   : > { %1775 = vrot.lane.b32.xlu1 %v7187_v54, %s6561_s14  ;;  %1727 = vrot.lane.b32.xlu0 %v7189_v55, %s6561_s14  ;;  %v7209_v5 = vld [vmem:[#allocation2 + $0x28] sm:$0x7]  ;;  %v6028_v47 = vld [vmem:[%s8530_s3 + $0x270] ss:$16 sps:$4 sm:$0xff]   ;;  %v6045_v60 = vld [vmem:[%s8530_s3 + $0x2bc] ss:$16 sps:$4 sm:$0xff]  }
 0x169   : > { %v7235_v16 = vld [vmem:[#allocation2 + $0x48] sm:$0x7]  ;;  %2551 = vmatpush1.bf16.msra.mxu1 %v6028_v47  ;;  %v6040_v3 = vld [vmem:[%s8530_s3 + $0x2b0] ss:$16 sps:$4 sm:$0xff]   ;;  %v6048_v0 = vld [vmem:[%s8530_s3 + $0x2d4] ss:$16 sps:$4 sm:$0xff]  }
 0x16a   : > { %v6037_v33 = vld [vmem:[%s8530_s3 + $0x298] ss:$16 sps:$4 sm:$0xff]   ;;  %2552 = vmatprep.subr.bf16.mxu1 %v6036_v59  ;;  %v6046_v62 = vld [vmem:[%s8530_s3 + $0x2d0] ss:$16 sps:$4 sm:$0xff]   ;;  %vm1699_vm5 = vcmask 223232   ;;  %vm1697_vm6 = vcmask 228352  }
 0x16b   : > { %2639 = vmatpush1.bf16.msra.mxu0 %v6037_v33  ;;  %v6049_v29 = vld [vmem:[%s8530_s3 + $0x2d8] ss:$16 sps:$4 sm:$0xff]   ;;  %v6051_v10 = vld [vmem:[%s8530_s3 + $0x2dc] ss:$16 sps:$4 sm:$0xff]   ;;  %v6052_v7 = vld [vmem:[%s8530_s3 + $0x2f0] ss:$16 sps:$4 sm:$0xff]  }
 0x16c   : > { %1830 = vrot.lane.b32.xlu1 %v7195_v56, %s6561_s14  ;;  %2640 = vmatprep.subr.bf16.mxu0 %v6045_v60  ;;  %v6054_v26 = vld [vmem:[%s8530_s3 + $0x2f4] ss:$16 sps:$4 sm:$0xff]   ;;  %v6055_v11 = vld [vmem:[%s8530_s3 + $0x2f8] ss:$16 sps:$4 sm:$0xff]   ;;  %v6057_v28 = vld [vmem:[%s8530_s3 + $0x2fc] ss:$16 sps:$4 sm:$0xff]  }
 0x16d   : > { %v7199_v20 = vld [vmem:[#allocation2 + $0x8] sm:$0xff]  ;;  %v7205_v6 = vld [vmem:[#allocation2 + $0x18] sm:$0xff]  ;;  %v7213_v9 = vld [vmem:[#allocation2 + $0x10] sm:$0xff]  ;;  %2553 = vmatpush1.bf16.msra.mxu1 %v6034_v61  ;;  %vm1777_vm7 = vcmask 818176   ;;  %vm1723_vm8 = vcmask 452832   ;;  %vm1759_vm9 = vcmask 682432  }
 0x16e   : > { %1725 = vrot.lane.b32.xlu0 %v7199_v20, %s6561_s14  ;;  %v7219_v57 = vld [vmem:[#allocation2] sm:$0xff]  ;;  %2554 = vmatprep.subr.bf16.mxu1 %v6042_v15  ;;  %v6061_v52 = vld [vmem:[%s8530_s3 + $0x318] ss:$16 sps:$4 sm:$0xff]   ;;  %v6069_v61 = vld [vmem:[%s8530_s3 + $0x33c] ss:$16 sps:$4 sm:$0xff]   ;;  %vm1721_vm10 = vcmask 457952  }
 0x16f   : > { %v7239_v45 = vld [vmem:[#allocation2 + $0x20] sm:$0xff]  ;;  %2641 = vmatpush1.bf16.msra.mxu0 %v6043_v43  ;;  %v6067_v44 = vld [vmem:[%s8530_s3 + $0x338] ss:$16 sps:$4 sm:$0xff]   ;;  %vm1769_vm11 = vcmask 912032   ;;  %vm1804_vm12 = vcmask 1043328   ;;  %vm1806_vm13 = vcmask 92160  }
 0x170   : > { %1786 = vrot.lane.b32.xlu1 %v7187_v54, %s6562_s15  ;;  %2642 = vmatprep.subr.bf16.mxu0 %v6051_v10  ;;  %v6058_v31 = vld [vmem:[%s8530_s3 + $0x310] ss:$16 sps:$4 sm:$0xff]   ;;  %v6060_v48 = vld [vmem:[%s8530_s3 + $0x314] ss:$16 sps:$4 sm:$0xff]   ;;  %vm1824_vm14 = vcmask 321632   ;;  %vm1856_vm15 = vcmask 551232  }
 0x171   : > { %2555 = vmatpush1.bf16.msra.mxu1 %v6040_v3  ;;  %v6070_v15 = vld [vmem:[%s8530_s3 + $0x350] ss:$16 sps:$4 sm:$0xff]   ;;  %v6072_v43 = vld [vmem:[%s8530_s3 + $0x354] ss:$16 sps:$4 sm:$0xff]   ;;  %vm1874_vm0 = vcmask 780832   ;;  %vm1898_vm1 = vcmask 1010432  }
 0x172   : > { %1828 = vrot.lane.b32.xlu0 %v7205_v6, %s6561_s14  ;;  %2556 = vmatprep.subr.bf16.mxu1 %v6048_v0  ;;  %vm1757_vm3 = vcmask 687552   ;;  %vm1767_vm4 = vcmask 917152  }
 0x173   : > { %2643 = vmatpush1.bf16.msra.mxu0 %v6049_v29 }
 0x174   : > { %1683 = vrot.lane.b32.xlu1 %v7209_v5, %s6561_s14  ;;  %2644 = vmatprep.subr.bf16.mxu0 %v6057_v28 }
 0x175   : > { %2557 = vmatpush1.bf16.msra.mxu1 %v6046_v62  ;;  %v6075_v62 = vld [vmem:[%s8530_s3 + $0x35c] ss:$16 sps:$4 sm:$0xff]  }
 0x176   : > { %1784 = vrot.lane.b32.xlu0 %v7213_v9, %s6562_s15  ;;  %2558 = vmatprep.subr.bf16.mxu1 %v6054_v26 }
 0x177   : > { %2645 = vmatpush1.bf16.msra.mxu0 %v6055_v11  ;;  %v6081_v11 = vld [vmem:[%s8530_s3 + $0x37c] ss:$16 sps:$4 sm:$0xff]  }
 0x178   : > { %1691 = vrot.lane.b32.xlu1 %v7209_v5, %s6562_s15 }
 0x179   : > { %2559 = vmatpush1.bf16.msra.mxu1 %v6052_v7 }
 0x17a   : > { %1681 = vrot.lane.b32.xlu0 %v7219_v57, %s6561_s14  ;;  %2560 = vmatprep.subr.bf16.mxu1 %v6060_v48  ;;  %v6091_v48 = vld [vmem:[%s8530_s3 + $0x3b8] ss:$16 sps:$4 sm:$0xff]  }
 0x17c   : > { %1705 = vrot.lane.b32.xlu1 %v7189_v55, %s6562_s15 }
 0x17d   : > { %2561 = vmatpush1.bf16.msra.mxu1 %v6058_v31 }
 0x17e   : > { %1689 = vrot.lane.b32.xlu0 %v7219_v57, %s6562_s15  ;;  %2562 = vmatprep.subr.bf16.mxu1 %v6066_v46  ;;  %v6096_v46 = vld [vmem:[%s8530_s3 + $0x3d4] ss:$16 sps:$4 sm:$0xff]  }
 0x180   : > { %1840 = vrot.lane.b32.xlu1 %v7195_v56, %s6562_s15 }
 0x181   : > { %2563 = vmatpush1.bf16.msra.mxu1 %v6064_v8 }
 0x182   : > { %1703 = vrot.lane.b32.xlu0 %v7199_v20, %s6562_s15  ;;  %2564 = vmatprep.subr.bf16.mxu1 %v6072_v43 }
 0x184   : > { %1773 = vrot.lane.b32.xlu1 %v7213_v9, %s6561_s14 }
 0x185   : > { %2565 = vmatpush1.bf16.msra.mxu1 %v6070_v15 }
 0x186   : > { %1838 = vrot.lane.b32.xlu0 %v7205_v6, %s6562_s15 }
 0x188   : > { %1880 = vrot.lane.b32.xlu1 %v7235_v16, %s6562_s15 }
 0x18a   : > { %1878 = vrot.lane.b32.xlu0 %v7239_v45, %s6562_s15 }
 0x18c   : > { %1902 = vrot.lane.b32.xlu1 %v7235_v16, %s6561_s14 }
 0x18e   : > { %1900 = vrot.lane.b32.xlu0 %v7239_v45, %s6561_s14 }
 0x1da   : > { %v7265_v14 = vpop.permute.xlu1 %1775  ;;  %v7270_v19 = vpop.permute.xlu0 %1727 }
 0x1db   : > { %v1811_v50 = vmax.f32 %v7187_v54, %v7265_v14  ;;  %v1733_v24 = vmax.f32 %v7209_v5, %v7270_v19  ;;  %v1734_v41 = vmax.f32 %v7189_v55, %v7270_v19  ;;  %v1779_v7 = vsel %vm1777_vm7, %v7270_v19, %v7265_v14 }
 0x1dc   : > { %v1783_v28 = vmax.f32 %v7189_v55, %v1779_v7  ;;  %v6084_v55 = vld [vmem:[%s8530_s3 + $0x394] ss:$16 sps:$4 sm:$0xff]   ;;  %v6123_v7 = vld [vmem:[%s8530_s3 + $0x45c] ss:$16 sps:$4 sm:$0xff]  }
 0x1de   : > { %v7275_v63 = vpop.permute.xlu1 %1830 }
 0x1df   : > { %v1861_v53 = vmax.f32 %v7195_v56, %v7275_v63 }
 0x1e0   : > { %v7279_v39 = vpop.permute.xlu0 %1725 }
 0x1e1   : > { %v1731_v26 = vmax.f32 %v7219_v57, %v7279_v39 }
 0x1e2   : > { %v7281_v51 = vpop.permute.xlu1 %1786 }
 0x1e3   : > { %v1813_v32 = vmax.f32 %v1811_v50, %v7281_v51 }
 0x1e4   : > { %v7284_v58 = vpop.permute.xlu0 %1828 }
 0x1e5   : > { %1818 = vrot.lane.b32.xlu1 %v1813_v32, %s6563_s17  ;;  %v1860_v19 = vmax.f32 %v7205_v6, %v7284_v58 }
 0x1e6   : > { %v1684_v49 = vpop.permute.xlu1 %1683 }
 0x1e7   : > { %v1688_v42 = vmax.f32 %v7209_v5, %v1684_v49  ;;  %v6063_v5 = vld [vmem:[%s8530_s3 + $0x31c] ss:$16 sps:$4 sm:$0xff]  }
 0x1e8   : > { %v7300_v27 = vpop.permute.xlu0 %1784  ;;  %2646 = vmatprep.subr.bf16.mxu0 %v6063_v5 }
 0x1e9   : > { %2647 = vmatpush1.bf16.msra.mxu0 %v6061_v52 }
 0x1ea   : > { %v1692_v21 = vpop.permute.xlu1 %1691  ;;  %2648 = vmatprep.subr.bf16.mxu0 %v6069_v61  ;;  %v6099_v61 = vld [vmem:[%s8530_s3 + $0x3dc] ss:$16 sps:$4 sm:$0xff]  }
 0x1eb   : > { %v1696_v30 = vmax.f32 %v1688_v42, %v1692_v21 }
 0x1ec   : > { %v1682_v34 = vpop.permute.xlu0 %1681 }
 0x1ed   : > { %1700 = vst.msk [vmem:[#allocation3 + $0x18] sm:$0x7] %vm1699_vm5, %v1696_v30  ;;  %v1687_v40 = vmax.f32 %v7219_v57, %v1682_v34  ;;  %2649 = vmatpush1.bf16.msra.mxu0 %v6067_v44  ;;  %v6076_v30 = vld [vmem:[%s8530_s3 + $0x370] ss:$16 sps:$4 sm:$0xff]   ;;  %v6079_v34 = vld [vmem:[%s8530_s3 + $0x378] ss:$16 sps:$4 sm:$0xff]   ;;  %v1833_v57 = vsel %vm1777_vm7, %v7265_v14, %v7275_v63 }
 0x1ee   : > { %v1706_v22 = vpop.permute.xlu1 %1705  ;;  %2650 = vmatprep.subr.bf16.mxu0 %v6075_v62  ;;  %v6085_v14 = vld [vmem:[%s8530_s3 + $0x398] ss:$16 sps:$4 sm:$0xff]   ;;  %v6087_v63 = vld [vmem:[%s8530_s3 + $0x39c] ss:$16 sps:$4 sm:$0xff]   ;;  %vm1939_vm5 = vcmask 1043424  }
 0x1ef   : > { %v1708_v36 = vsel %vm247_vm2, %v1692_v21, %v1706_v22  ;;  %v1739_v35 = vmax.f32 %v1733_v24, %v1706_v22  ;;  %v1740_v47 = vmax.f32 %v1734_v41, %v1706_v22  ;;  %v6078_v24 = vld [vmem:[%s8530_s3 + $0x374] ss:$16 sps:$4 sm:$0xff]   ;;  %v6111_v62 = vld [vmem:[%s8530_s3 + $0x41c] ss:$16 sps:$4 sm:$0xff]  }
 0x1f0   : > { %v1712_v25 = vmax.f32 %v1688_v42, %v1708_v36  ;;  %v1690_v23 = vpop.permute.xlu0 %1689  ;;  %v6073_v42 = vld [vmem:[%s8530_s3 + $0x358] ss:$16 sps:$4 sm:$0xff]   ;;  %2566 = vmatprep.subr.bf16.mxu1 %v6078_v24 }
 0x1f1   : > { %1749 = vrot.lane.b32.xlu0 %v1739_v35, %s6562_s15  ;;  %v1695_v1 = vmax.f32 %v1687_v40, %v1690_v23  ;;  %2651 = vmatpush1.bf16.msra.mxu0 %v6073_v42  ;;  %v6082_v35 = vld [vmem:[%s8530_s3 + $0x390] ss:$16 sps:$4 sm:$0xff]   ;;  %v6108_v42 = vld [vmem:[%s8530_s3 + $0x414] ss:$16 sps:$4 sm:$0xff]  }
 0x1f2   : > { %v7333_v38 = vpop.permute.xlu1 %1840  ;;  %1717 = vrot.lane.b32.xlu1 %v1712_v25, %s6561_s14  ;;  %2652 = vmatprep.subr.bf16.mxu0 %v6081_v11 }
 0x1f3   : > { %1698 = vst.msk [vmem:[#allocation3] sm:$0xff] %vm1697_vm6, %v1695_v1  ;;  %v1863_v32 = vmax.f32 %v1861_v53, %v7333_v38  ;;  %2567 = vmatpush1.bf16.msra.mxu1 %v6076_v30  ;;  %v6088_v1 = vld [vmem:[%s8530_s3 + $0x3b0] ss:$16 sps:$4 sm:$0xff]   ;;  %v6120_v30 = vld [vmem:[%s8530_s3 + $0x454] ss:$16 sps:$4 sm:$0xff]   ;;  %vm1800_vm6 = vcmask 1048448  }
 0x1f4   : > { %v7365_v33 = vpop.permute.xlu0 %1703  ;;  %2568 = vmatprep.subr.bf16.mxu1 %v6084_v55 }
 0x1f5   : > { %v1707_v49 = vsel %vm247_vm2, %v1690_v23, %v7365_v33  ;;  %v1737_v22 = vmax.f32 %v1731_v26, %v7365_v33  ;;  %2653 = vmatpush1.bf16.msra.mxu0 %v6079_v34  ;;  %v1837_v23 = vmax.f32 %v7187_v54, %v1833_v57  ;;  %v6093_v54 = vld [vmem:[%s8530_s3 + $0x3bc] ss:$16 sps:$4 sm:$0xff]   ;;  %v6118_v26 = vld [vmem:[%s8530_s3 + $0x450] ss:$16 sps:$4 sm:$0xff]  }
 0x1f6   : > { %1751 = vrot.lane.b32.xlu1 %v1740_v47, %s6562_s15  ;;  %v7357_v59 = vpop.permute.xlu1 %1773  ;;  %v1711_v10 = vmax.f32 %v1687_v40, %v1707_v49  ;;  %v1791_v40 = vmax.f32 %v1783_v28, %v7281_v51  ;;  %2654 = vmatprep.subr.bf16.mxu0 %v6087_v63  ;;  %v6090_v51 = vld [vmem:[%s8530_s3 + $0x3b4] ss:$16 sps:$4 sm:$0xff]   ;;  %v6129_v28 = vld [vmem:[%s8530_s3 + $0x47c] ss:$16 sps:$4 sm:$0xff]  }
 0x1f7   : > { %v1810_v50 = vmax.f32 %v7213_v9, %v7357_v59  ;;  %2569 = vmatpush1.bf16.msra.mxu1 %v6082_v35  ;;  %v1845_v31 = vmax.f32 %v1837_v23, %v7333_v38  ;;  %v1778_v8 = vsel %vm1777_vm7, %v7279_v39, %v7357_v59 }
 0x1f8   : > { %v7392_v21 = vpop.permute.xlu0 %1838  ;;  %2570 = vmatprep.subr.bf16.mxu1 %v6090_v51 }
 0x1f9   : > { %v1812_v3 = vmax.f32 %v1810_v50, %v7300_v27  ;;  %v1862_v25 = vmax.f32 %v1860_v19, %v7392_v21  ;;  %2655 = vmatpush1.bf16.msra.mxu0 %v6085_v14  ;;  %v1782_v50 = vmax.f32 %v7199_v20, %v1778_v8 }
 0x1fa   : > { %1868 = vrot.lane.b32.xlu1 %v1863_v32, %s6564_s20  ;;  %v7380_v60 = vpop.permute.xlu1 %1880  ;;  %2656 = vmatprep.subr.bf16.mxu0 %v6093_v54  ;;  %v1832_v32 = vsel %vm1777_vm7, %v7357_v59, %v7284_v58  ;;  %vm1802_vm7 = vcmask 97280  }
 0x1fb   : > { %v1883_v0 = vsel %vm247_vm2, %v7333_v38, %v7380_v60  ;;  %1816 = vrot.lane.b32.xlu0 %v1812_v3, %s6563_s17  ;;  %2571 = vmatpush1.bf16.msra.mxu1 %v6088_v1  ;;  %v6094_v38 = vld [vmem:[%s8530_s3 + $0x3d0] ss:$16 sps:$4 sm:$0xff]   ;;  %v6103_v3 = vld [vmem:[%s8530_s3 + $0x3f8] ss:$16 sps:$4 sm:$0xff]   ;;  %v1836_v15 = vmax.f32 %v7213_v9, %v1832_v32  ;;  %v1790_v43 = vmax.f32 %v1782_v50, %v7300_v27 }
 0x1fc   : > { %v1887_v29 = vmax.f32 %v1861_v53, %v1883_v0  ;;  %v7421_v36 = vpop.permute.xlu0 %1878  ;;  %2572 = vmatprep.subr.bf16.mxu1 %v6096_v46  ;;  %v6109_v27 = vld [vmem:[%s8530_s3 + $0x418] ss:$16 sps:$4 sm:$0xff]  }
 0x1fd   : > { %v1882_v41 = vsel %vm247_vm2, %v7392_v21, %v7421_v36  ;;  %2657 = vmatpush1.bf16.msra.mxu0 %v6091_v48  ;;  %v1844_v0 = vmax.f32 %v1836_v15, %v7392_v21  ;;  %v6117_v21 = vld [vmem:[%s8530_s3 + $0x43c] ss:$16 sps:$4 sm:$0xff]  }
 0x1fe   : > { %1892 = vrot.lane.b32.xlu1 %v1887_v29, %s6565_s27  ;;  %v1903_v52 = vpop.permute.xlu1 %1902  ;;  %v1886_v5 = vmax.f32 %v1860_v19, %v1882_v41  ;;  %2658 = vmatprep.subr.bf16.mxu0 %v6099_v61 }
 0x1ff   : > { %1715 = vrot.lane.b32.xlu0 %v1711_v10, %s6561_s14  ;;  %v1908_v44 = vmax.f32 %v7195_v56, %v1903_v52  ;;  %v6102_v56 = vld [vmem:[%s8530_s3 + $0x3f4] ss:$16 sps:$4 sm:$0xff]   ;;  %2573 = vmatpush1.bf16.msra.mxu1 %v6094_v38  ;;  %v1909_v58 = vmax.f32 %v7235_v16, %v1903_v52  ;;  %v6106_v16 = vld [vmem:[%s8530_s3 + $0x410] ss:$16 sps:$4 sm:$0xff]  }
 0x200   : > { %2574 = vmatprep.subr.bf16.mxu1 %v6102_v56  ;;  %v1901_v49 = vpop.permute.xlu0 %1900  ;;  %v6112_v10 = vld [vmem:[%s8530_s3 + $0x430] ss:$16 sps:$4 sm:$0xff]  }
 0x201   : > { %v1914_v59 = vmax.f32 %v1908_v44, %v7380_v60  ;;  %v1915_v9 = vmax.f32 %v1909_v58, %v7380_v60  ;;  %v1906_v29 = vmax.f32 %v7205_v6, %v1901_v49  ;;  %v6114_v60 = vld [vmem:[%s8530_s3 + $0x434] ss:$16 sps:$4 sm:$0xff]   ;;  %v6115_v6 = vld [vmem:[%s8530_s3 + $0x438] ss:$16 sps:$4 sm:$0xff]   ;;  %v1907_v24 = vmax.f32 %v7239_v45, %v1901_v49 }
 0x202   : > { %1763 = vrot.lane.b32.xlu1 %v1740_v47, %s6566_s19  ;;  %v1732_v47 = vmax.f32 %v7199_v20, %v7279_v39  ;;  %v6097_v39 = vld [vmem:[%s8530_s3 + $0x3d8] ss:$16 sps:$4 sm:$0xff]   ;;  %v6105_v20 = vld [vmem:[%s8530_s3 + $0x3fc] ss:$16 sps:$4 sm:$0xff]  }
 0x203   : > { %1745 = vrot.lane.b32.xlu0 %v1737_v22, %s6562_s15  ;;  %2659 = vmatpush1.bf16.msra.mxu0 %v6097_v39  ;;  %v1912_v34 = vmax.f32 %v1906_v29, %v7421_v36  ;;  %v6121_v45 = vld [vmem:[%s8530_s3 + $0x458] ss:$16 sps:$4 sm:$0xff]   ;;  %v1913_v11 = vmax.f32 %v1907_v24, %v7421_v36  ;;  %v6126_v22 = vld [vmem:[%s8530_s3 + $0x474] ss:$16 sps:$4 sm:$0xff]  }
 0x204   : > { %v1738_v53 = vmax.f32 %v1732_v47, %v7365_v33  ;;  %v6100_v33 = vld [vmem:[%s8530_s3 + $0x3f0] ss:$16 sps:$4 sm:$0xff]   ;;  %2660 = vmatprep.subr.bf16.mxu0 %v6105_v20 }
 0x205   : > { %2575 = vmatpush1.bf16.msra.mxu1 %v6100_v33 }
 0x206   : > { %1796 = vrot.lane.b32.xlu1 %v1791_v40, %s6567_s30  ;;  %2576 = vmatprep.subr.bf16.mxu1 %v6108_v42 }
 0x207   : > { %1866 = vrot.lane.b32.xlu0 %v1862_v25, %s6564_s20  ;;  %s6568_s20 = smov 88   ;;  %2661 = vmatpush1.bf16.msra.mxu0 %v6103_v3 }
 0x208   : > { %2662 = vmatprep.subr.bf16.mxu0 %v6111_v62  ;;  %v6124_v62 = vld [vmem:[%s8530_s3 + $0x470] ss:$16 sps:$4 sm:$0xff]  }
 0x209   : > { %2577 = vmatpush1.bf16.msra.mxu1 %v6106_v16 }
 0x20a   : > { %1850 = vrot.lane.b32.xlu1 %v1845_v31, %s6568_s20  ;;  %2578 = vmatprep.subr.bf16.mxu1 %v6114_v60  ;;  %v6132_v60 = vld [vmem:[%s8530_s3 + $0x494] ss:$16 sps:$4 sm:$0xff]  }
 0x20b   : > { %1890 = vrot.lane.b32.xlu0 %v1886_v5, %s6565_s27  ;;  %2663 = vmatpush1.bf16.msra.mxu0 %v6109_v27 }
 0x20c   : > { %2664 = vmatprep.subr.bf16.mxu0 %v6117_v21 }
 0x20d   : > { %2579 = vmatpush1.bf16.msra.mxu1 %v6112_v10  ;;  %v6135_v10 = vld [vmem:[%s8530_s3 + $0x49c] ss:$16 sps:$4 sm:$0xff]  }
 0x20e   : > { %1747 = vrot.lane.b32.xlu1 %v1738_v53, %s6562_s15  ;;  %2580 = vmatprep.subr.bf16.mxu1 %v6120_v30  ;;  %v6133_v30 = vld [vmem:[%s8530_s3 + $0x498] ss:$16 sps:$4 sm:$0xff]   ;;  %s6572_s15 = smov 64  }
 0x20f   : > { %1761 = vrot.lane.b32.xlu0 %v1738_v53, %s6566_s19  ;;  %s6569_s19 = smov 4   ;;  %2665 = vmatpush1.bf16.msra.mxu0 %v6115_v6  ;;  %v6130_v6 = vld [vmem:[%s8530_s3 + $0x490] ss:$16 sps:$4 sm:$0xff]  }
 0x210   : > { %2666 = vmatprep.subr.bf16.mxu0 %v6123_v7  ;;  %v6141_v7 = vld [vmem:[%s8530_s3 + $0x4bc] ss:$16 sps:$4 sm:$0xff]  }
 0x211   : > { %2581 = vmatpush1.bf16.msra.mxu1 %v6118_v26  ;;  %v2118_v26 = vld [vmem:[%s8530_s3 + $0x4d0] sm:$0x33] }
 0x212   : > { %1924 = vrot.lane.b32.xlu1 %v1914_v59, %s6569_s19  ;;  %2593 = vmatprep.subr.bf16.mxu1 %v6126_v22  ;;  %v6136_v22 = vld [vmem:[%s8530_s3 + $0x4b0] ss:$16 sps:$4 sm:$0xff]  }
 0x213   : > { %1794 = vrot.lane.b32.xlu0 %v1790_v43, %s6567_s30  ;;  %2667 = vmatpush1.bf16.msra.mxu0 %v6121_v45 }
 0x214   : > { %2679 = vmatprep.subr.bf16.mxu0 %v6129_v28  ;;  %v6139_v28 = vld [vmem:[%s8530_s3 + $0x4b8] ss:$16 sps:$4 sm:$0xff]  }
 0x216   : > { %1926 = vrot.lane.b32.xlu1 %v1915_v9, %s6569_s19 }
 0x217   : > { %1848 = vrot.lane.b32.xlu0 %v1844_v0, %s6568_s20  ;;  %v6127_v0 = vld [vmem:[%s8530_s3 + $0x478] ss:$16 sps:$4 sm:$0xff]   ;;  %s6578_s20 = smov (%p45_p0), [#allocation6]  }
 0x21a   : > { %1947 = vrot.lane.b32.xlu1 %v1909_v58, %s6570_s22 }
 0x21b   : > { %1920 = vrot.lane.b32.xlu0 %v1912_v34, %s6569_s19  ;;  %v6138_v34 = vld [vmem:[%s8530_s3 + $0x4b4] ss:$16 sps:$4 sm:$0xff]  }
 0x21f   : > { %1922 = vrot.lane.b32.xlu0 %v1913_v11, %s6569_s19  ;;  %v2119_v11 = vld [vmem:[%s8530_s3 + $0x4d8] sm:$0x33]  ;;  %s6574_s19 = smov 112  }
 0x223   : > { %1945 = vrot.lane.b32.xlu0 %v1907_v24, %s6570_s22 }
 0x257   : > { %v1819_v57 = vpop.permute.xlu1 %1818 }
 0x263   : > { %v1750_v36 = vpop.permute.xlu0 %1749 }
 0x264   : > { %v1718_v19 = vpop.permute.xlu1 %1717 }
 0x265   : > { %1724 = vst.msk [vmem:[#allocation3 + $0x18] sm:$0x7] %vm1723_vm8, %v1718_v19  ;;  %vm1822_vm8 = vcmask 326752   ;;  %v5470_v19 = vcombine.high %v2118_v26, %v2118_v26 }
 0x268   : > { %v1752_v35 = vpop.permute.xlu1 %1751 }
 0x269   : > { %v1754_v55 = vsel %vm247_vm2, %v1750_v36, %v1752_v35  ;;  %v5472_v36 = vcombine.high %v2119_v11, %v2119_v11  ;;  %v5471_v35 = vcombine.low %v2119_v11, %v2119_v11  ;;  %v6211_v11 = vld [vmem:[%s8530_s3 + $0x14c] ss:$16 sps:$4 sm:$0xff]  }
 0x26a   : > { %1760 = vst.msk [vmem:[#allocation3 + $0x18] sm:$0x7] %vm1759_vm9, %v1754_v55  ;;  %vm1928_vm9 = vcmask 31744  }
 0x26c   : > { %v1869_v40 = vpop.permute.xlu1 %1868 }
 0x26d   : > { %v1817_v14 = vpop.permute.xlu0 %1816 }
 0x270   : > { %v1893_v63 = vpop.permute.xlu1 %1892 }
 0x271   : > { %v1716_v25 = vpop.permute.xlu0 %1715 }
 0x272   : > { %1722 = vst.msk [vmem:[#allocation3] sm:$0xff] %vm1721_vm10, %v1716_v25  ;;  %vm1941_vm10 = vcmask 190464   ;;  %v6148_v25 = vld [vmem:[%s8530_s3 + $0x4] ss:$16 sps:$4 sm:$0xff]  }
 0x274   : > { %v1764_v23 = vpop.permute.xlu1 %1763 }
 0x275   : > { %1770 = vst.msk [vmem:[#allocation3 + $0x18] sm:$0x7] %vm1769_vm11, %v1764_v23  ;;  %v1746_v41 = vpop.permute.xlu0 %1745  ;;  %vm1854_vm11 = vcmask 556352   ;;  %v6151_v23 = vld [vmem:[%s8530_s3 + $0xc] ss:$16 sps:$4 sm:$0xff]  }
 0x278   : > { %v1797_v51 = vpop.permute.xlu1 %1796 }
 0x279   : > { %1805 = vst.msk [vmem:[#allocation3 + $0x18] sm:$0x7] %vm1804_vm12, %v1797_v51  ;;  %v1867_v1 = vpop.permute.xlu0 %1866  ;;  %vm1872_vm12 = vcmask 785952  }
 0x27a   : > { %1807 = vst.msk [vmem:[#allocation3 + $0x20] sm:$0x7] %vm1806_vm13, %v1797_v51  ;;  %vm1953_vm13 = vcmask 420032   ;;  %v6146_v51 = vld [vmem:[%s8530_s3] ss:$16 sps:$4 sm:$0xff]  }
 0x27b   : > { %1825 = vst.msk [vmem:[#allocation3 + $0x20] sm:$0x7] %vm1824_vm14, %v1819_v57  ;;  %vm1935_vm14 = vcmask 1048544   ;;  %v5469_v57 = vcombine.low %v2118_v26, %v2118_v26  ;;  %v6208_v26 = vld [vmem:[%s8530_s3 + $0x144] ss:$16 sps:$4 sm:$0xff]  }
 0x27c   : > { %v1851_v54 = vpop.permute.xlu1 %1850 }
 0x27d   : > { %1857 = vst.msk [vmem:[#allocation3 + $0x20] sm:$0x7] %vm1856_vm15, %v1851_v54  ;;  %v1891_v31 = vpop.permute.xlu0 %1890  ;;  %vm1937_vm15 = vcmask 195584   ;;  %v6149_v54 = vld [vmem:[%s8530_s3 + $0x8] ss:$16 sps:$4 sm:$0xff]  }
 0x27e   : > { %1875 = vst.msk [vmem:[#allocation3 + $0x20] sm:$0x7] %vm1874_vm0, %v1869_v40  ;;  %vm1951_vm0 = vcmask 425152  }
 0x27f   : > { %1899 = vst.msk [vmem:[#allocation3 + $0x20] sm:$0x7] %vm1898_vm1, %v1893_v63  ;;  %vm2537_vm1 = vcmask 1041408  }
 0x280   : > { %v1748_v48 = vpop.permute.xlu1 %1747  ;;  %v1958_v50 = vld [vmem:[#allocation3 + $0x18] sm:$0x7]  ;;  %v2539_v40 = vsel %vm2537_vm1, %v5469_v57, 0  ;;  %v6214_v57 = vld [vmem:[%s8530_s3 + $0x164] ss:$16 sps:$4 sm:$0xff]  }
 0x281   : > { %v1753_v52 = vsel %vm247_vm2, %v1746_v41, %v1748_v48  ;;  %v1762_v5 = vpop.permute.xlu0 %1761  ;;  %vm1896_vm2 = vcmask 1015552   ;;  %v6157_v48 = vld [vmem:[%s8530_s3 + $0x2c] ss:$16 sps:$4 sm:$0xff]  }
 0x282   : > { %1758 = vst.msk [vmem:[#allocation3] sm:$0xff] %vm1757_vm3, %v1753_v52  ;;  %vm2533_vm3 = vcmask 424960   ;;  %v6152_v52 = vld [vmem:[%s8530_s3 + $0x20] ss:$16 sps:$4 sm:$0xff]  }
 0x283   : > { %1768 = vst.msk [vmem:[#allocation3] sm:$0xff] %vm1767_vm4, %v1762_v5  ;;  %v6155_v5 = vld [vmem:[%s8530_s3 + $0x28] ss:$16 sps:$4 sm:$0xff]  }
 0x284   : > { %v1925_v47 = vpop.permute.xlu1 %1924 }
 0x285   : > { %1940 = vst.msk [vmem:[#allocation3 + $0x20] sm:$0x7] %vm1939_vm5, %v1925_v47  ;;  %v1795_v8 = vpop.permute.xlu0 %1794 }
 0x286   : > { %1801 = vst.msk [vmem:[#allocation3] sm:$0xff] %vm1800_vm6, %v1795_v8 }
 0x287   : > { %1803 = vst.msk [vmem:[#allocation3 + $0x8] sm:$0xff] %vm1802_vm7, %v1795_v8  ;;  %v6163_v8 = vld [vmem:[%s8530_s3 + $0x4c] ss:$16 sps:$4 sm:$0xff]  }
 0x288   : > { %1823 = vst.msk [vmem:[#allocation3 + $0x8] sm:$0xff] %vm1822_vm8, %v1817_v14  ;;  %v1927_v38 = vpop.permute.xlu1 %1926  ;;  %v2545_v14 = vsel %vm2537_vm1, %v5471_v35, 0  ;;  %v6215_v35 = vld [vmem:[%s8530_s3 + $0x168] ss:$16 sps:$4 sm:$0xff]  }
 0x289   : > { %v1930_v46 = vsel %vm1928_vm9, %v1925_v47, %v1927_v38  ;;  %v1849_v53 = vpop.permute.xlu0 %1848  ;;  %v6160_v47 = vld [vmem:[%s8530_s3 + $0x44] ss:$16 sps:$4 sm:$0xff]   ;;  %v6158_v38 = vld [vmem:[%s8530_s3 + $0x40] ss:$16 sps:$4 sm:$0xff]  }
 0x28a   : > { %1942 = vst.msk [vmem:[#allocation3 + $0x28] sm:$0x7] %vm1941_vm10, %v1930_v46  ;;  %v6161_v46 = vld [vmem:[%s8530_s3 + $0x48] ss:$16 sps:$4 sm:$0xff]  }
 0x28b   : > { %1855 = vst.msk [vmem:[#allocation3 + $0x8] sm:$0xff] %vm1854_vm11, %v1849_v53  ;;  %v6166_v53 = vld [vmem:[%s8530_s3 + $0x64] ss:$16 sps:$4 sm:$0xff]  }
 0x28c   : > { %1873 = vst.msk [vmem:[#allocation3 + $0x8] sm:$0xff] %vm1872_vm12, %v1867_v1  ;;  %v1948_v44 = vpop.permute.xlu1 %1947  ;;  %v1959_v59 = vld [vmem:[#allocation3 + $0x20] sm:$0x7]  ;;  %vm4103_vm12 = vcmp.lt.s32.totalorder %v1044_v4, 432 }
 0x28d   : > { %1897 = vst.msk [vmem:[#allocation3 + $0x8] sm:$0xff] %vm1896_vm2, %v1891_v31  ;;  %v1921_v39 = vpop.permute.xlu0 %1920  ;;  %v1955_v61 = vld [vmem:[#allocation3] sm:$0xff]  ;;  %vm4202_vm2 = vcmask 654336  }
 0x28e   : > { %1954 = vst.msk [vmem:[#allocation3 + $0x28] sm:$0x7] %vm1953_vm13, %v1948_v44  ;;  %v7557_v56 = vpack.c.bf16 %v1958_v50, %v1955_v61  ;;  %v6154_v31 = vld [vmem:[%s8530_s3 + $0x24] ss:$16 sps:$4 sm:$0xff]   ;;  %v6169_v44 = vld [vmem:[%s8530_s3 + $0x6c] ss:$16 sps:$4 sm:$0xff]  }
 0x28f   : > { %1936 = vst.msk [vmem:[#allocation3 + $0x8] sm:$0xff] %vm1935_vm14, %v1921_v39  ;;  %v6167_v61 = vld [vmem:[%s8530_s3 + $0x68] ss:$16 sps:$4 sm:$0xff]   ;;  %v6172_v50 = vld [vmem:[%s8530_s3 + $0x84] ss:$16 sps:$4 sm:$0xff]   ;;  %vm4195_vm13 = vcmask 261120  }
 0x290   : > { %v2123_v3 = vshll.u32 %v7557_v56, 16  ;;  %v2121_v9 = vshrl.u32 %v7557_v56, 16  ;;  %vm4225_vm14 = vcmask 130048  }
 0x291   : > { %v1923_v32 = vpop.permute.xlu0 %1922 }
 0x292   : > { %v1929_v33 = vsel %vm1928_vm9, %v1921_v39, %v1923_v32  ;;  %v2125_v49 = vrot.slane %v2123_v3, 1  ;;  %v6164_v39 = vld [vmem:[%s8530_s3 + $0x60] ss:$16 sps:$4 sm:$0xff]   ;;  %v6175_v32 = vld [vmem:[%s8530_s3 + $0x8c] ss:$16 sps:$4 sm:$0xff]  }
 0x293   : > { %1938 = vst.msk [vmem:[#allocation3 + $0x10] sm:$0xff] %vm1937_vm15, %v1929_v33  ;;  %v6170_v33 = vld [vmem:[%s8530_s3 + $0x80] ss:$16 sps:$4 sm:$0xff]   ;;  %vm4199_vm15 = vcmask 388096  }
 0x294   : > { %v2126_v29 = vor.u32 %v2125_v49, %v2121_v9  ;;  %v6176_v3 = vld [vmem:[%s8530_s3 + $0xa0] ss:$16 sps:$4 sm:$0xff]   ;;  %v6184_v49 = vld [vmem:[%s8530_s3 + $0xc4] ss:$16 sps:$4 sm:$0xff]   ;;  %v6185_v9 = vld [vmem:[%s8530_s3 + $0xc8] ss:$16 sps:$4 sm:$0xff]  }
 0x295   : > { %v1946_v20 = vpop.permute.xlu0 %1945  ;;  %v1960_v24 = vld [vmem:[#allocation3 + $0x28] sm:$0x7] }
 0x296   : > { %v1956_v58 = vld [vmem:[#allocation3 + $0x8] sm:$0xff]  ;;  %1952 = vst.msk [vmem:[#allocation3 + $0x10] sm:$0xff] %vm1951_vm0, %v1946_v20  ;;  %vm4213_vm0 = vcmask 781696  }
 0x297   : > { %v7561_v15 = vpack.c.bf16 %v1959_v59, %v1956_v58  ;;  %v6173_v20 = vld [vmem:[%s8530_s3 + $0x88] ss:$16 sps:$4 sm:$0xff]   ;;  %v6178_v58 = vld [vmem:[%s8530_s3 + $0xa4] ss:$16 sps:$4 sm:$0xff]   ;;  %v6181_v59 = vld [vmem:[%s8530_s3 + $0xac] ss:$16 sps:$4 sm:$0xff]  }
 0x299   : > { %v2130_v43 = vshll.u32 %v7561_v15, 16  ;;  %v2128_v16 = vshrl.u32 %v7561_v15, 16 }
 0x29b   : > { %v2132_v42 = vrot.slane %v2130_v43, 1  ;;  %v6179_v43 = vld [vmem:[%s8530_s3 + $0xa8] ss:$16 sps:$4 sm:$0xff]  }
 0x29d   : > { %v2133_v27 = vor.u32 %v2132_v42, %v2128_v16  ;;  %v1957_v21 = vld [vmem:[#allocation3 + $0x10] sm:$0xff]  ;;  %v6187_v16 = vld [vmem:[%s8530_s3 + $0xcc] ss:$16 sps:$4 sm:$0xff]  }
 0x29e   : > { %v7593_v45 = vpack.c.bf16 %v1960_v24, %v1957_v21  ;;  %v6182_v42 = vld [vmem:[%s8530_s3 + $0xc0] ss:$16 sps:$4 sm:$0xff]   ;;  %v6205_v24 = vld [vmem:[%s8530_s3 + $0x12c] ss:$16 sps:$4 sm:$0xff]  }
 0x29f   : > { %2582 = vmatprep.mubr.bf16.mxu1 %v2133_v27  ;;  %2668 = vmatprep.mubr.bf16.mxu0 %v2133_v27  ;;  %v6190_v27 = vld [vmem:[%s8530_s3 + $0xe4] ss:$16 sps:$4 sm:$0xff]   ;;  %v6194_v21 = vld [vmem:[%s8530_s3 + $0x100] ss:$16 sps:$4 sm:$0xff]  }
 0x2a0   : > { %2583 = vmatmul.mubr.bf16.vlgmr.msra.gmra.mrb[20].mxu1 %v2126_v29  ;;  %2669 = vmatmul.mubr.bf16.vlgmr.msra.gmra.mrb[24].mxu0 %v2126_v29  ;;  %v2137_v55 = vshll.u32 %v7593_v45, 16  ;;  %v2135_v41 = vshrl.u32 %v7593_v45, 16  ;;  %v6191_v29 = vld [vmem:[%s8530_s3 + $0xe8] ss:$16 sps:$4 sm:$0xff]  }
 0x2a1   : > { %2594 = vmatpush1.bf16.msra.mxu1 %v6124_v62  ;;  %2680 = vmatpush1.bf16.msra.mxu0 %v6127_v0  ;;  %v6193_v62 = vld [vmem:[%s8530_s3 + $0xec] ss:$16 sps:$4 sm:$0xff]   ;;  %v6188_v0 = vld [vmem:[%s8530_s3 + $0xe0] ss:$16 sps:$4 sm:$0xff]  }
 0x2a2   : > { %2595 = vmatprep.subr.bf16.mxu1 %v6132_v60  ;;  %2681 = vmatprep.subr.bf16.mxu0 %v6135_v10  ;;  %v2139_v63 = vrot.slane %v2137_v55, 1  ;;  %v6196_v60 = vld [vmem:[%s8530_s3 + $0x104] ss:$16 sps:$4 sm:$0xff]   ;;  %v6199_v10 = vld [vmem:[%s8530_s3 + $0x10c] ss:$16 sps:$4 sm:$0xff]  }
 0x2a3   : > { %2625 = vmatprep.mubr.bf16.mxu1 %v6559_v2  ;;  %2711 = vmatprep.mubr.bf16.mxu0 %v6559_v2  ;;  %v6220_v55 = vld [vmem:[%s8530_s3 + $0x184] ss:$16 sps:$4 sm:$0xff]  }
 0x2a4   : > { %v2140_v1 = vor.u32 %v2139_v63, %v2135_v41  ;;  %v6221_v63 = vld [vmem:[%s8530_s3 + $0x188] ss:$16 sps:$4 sm:$0xff]   ;;  %v6224_v41 = vld [vmem:[%s8530_s3 + $0x1a0] ss:$16 sps:$4 sm:$0xff]  }
 0x2a5   : > { %2596 = vmatpush1.bf16.msra.mxu1 %v6130_v6  ;;  %2682 = vmatpush1.bf16.msra.mxu0 %v6133_v30  ;;  %v6197_v6 = vld [vmem:[%s8530_s3 + $0x108] ss:$16 sps:$4 sm:$0xff]   ;;  %v6202_v30 = vld [vmem:[%s8530_s3 + $0x124] ss:$16 sps:$4 sm:$0xff]  }
 0x2a6   : > { %2597 = vmatprep.subr.bf16.mxu1 %v6138_v34  ;;  %2683 = vmatprep.subr.bf16.mxu0 %v6141_v7  ;;  %v6200_v34 = vld [vmem:[%s8530_s3 + $0x120] ss:$16 sps:$4 sm:$0xff]   ;;  %v6203_v7 = vld [vmem:[%s8530_s3 + $0x128] ss:$16 sps:$4 sm:$0xff]  }
 0x2a9   : > { %2598 = vmatpush1.bf16.msra.mxu1 %v6136_v22  ;;  %2684 = vmatpush1.bf16.msra.mxu0 %v6139_v28  ;;  %v6206_v22 = vld [vmem:[%s8530_s3 + $0x140] ss:$16 sps:$4 sm:$0xff]   ;;  %v6209_v28 = vld [vmem:[%s8530_s3 + $0x148] ss:$16 sps:$4 sm:$0xff]  }
 0x2aa   : > { %5473 = vmatprep.subr.msk.bf16.mxu1 %vm2537_vm1, %v5470_v19  ;;  %5475 = vmatprep.subr.msk.bf16.mxu0 %vm2537_vm1, %v5472_v36  ;;  %v6217_v19 = vld [vmem:[%s8530_s3 + $0x16c] ss:$16 sps:$4 sm:$0xff]   ;;  %v6212_v36 = vld [vmem:[%s8530_s3 + $0x160] ss:$16 sps:$4 sm:$0xff]  }
 0x2ad   : > { %2600 = vmatpush1.bf16.msra.mxu1 %v2539_v40  ;;  %2686 = vmatpush1.bf16.msra.mxu0 %v2545_v14  ;;  %v6223_v40 = vld [vmem:[%s8530_s3 + $0x18c] ss:$16 sps:$4 sm:$0xff]   ;;  %v6218_v14 = vld [vmem:[%s8530_s3 + $0x180] ss:$16 sps:$4 sm:$0xff]  }
 0x2ae   : > { %3126 = vmatprep.subr.bf16.mxu1 %v6148_v25  ;;  %3212 = vmatprep.subr.bf16.mxu0 %v6151_v23  ;;  %v6226_v25 = vld [vmem:[%s8530_s3 + $0x1a4] ss:$16 sps:$4 sm:$0xff]   ;;  %v6229_v23 = vld [vmem:[%s8530_s3 + $0x1ac] ss:$16 sps:$4 sm:$0xff]  }
 0x2b0   : > { %5474 = vmatmul.mubr.msk.bf16.vlgmr.msra.gmra.mrb[20].mxu1 %vm2533_vm3, %v2140_v1  ;;  %5476 = vmatmul.mubr.msk.bf16.vlgmr.msra.gmra.mrb[24].mxu0 %vm2533_vm3, %v2140_v1  ;;  %v6232_v1 = vld [vmem:[%s8530_s3 + $0x1c4] ss:$16 sps:$4 sm:$0xff]  }
 0x2b1   : > { %3127 = vmatpush1.bf16.msra.mxu1 %v6146_v51  ;;  %3158 = vmatprep.mubr.bf16.mxu1 %v7561_v15  ;;  %v6227_v51 = vld [vmem:[%s8530_s3 + $0x1a8] ss:$16 sps:$4 sm:$0xff]  }
 0x2b2   : > { %3213 = vmatpush1.bf16.msra.mxu0 %v6149_v54  ;;  %3244 = vmatprep.mubr.bf16.mxu0 %v7561_v15  ;;  %v6235_v54 = vld [vmem:[%s8530_s3 + $0x1cc] ss:$16 sps:$4 sm:$0xff]  }
 0x2b3   : > { %3128 = vmatprep.subr.bf16.mxu1 %v6154_v31  ;;  %3214 = vmatprep.subr.bf16.mxu0 %v6157_v48  ;;  %v6230_v31 = vld [vmem:[%s8530_s3 + $0x1c0] ss:$16 sps:$4 sm:$0xff]   ;;  %v6233_v48 = vld [vmem:[%s8530_s3 + $0x1c8] ss:$16 sps:$4 sm:$0xff]  }
 0x2b5   : > { %3129 = vmatpush1.bf16.msra.mxu1 %v6152_v52  ;;  %v6238_v52 = vld [vmem:[%s8530_s3 + $0x1e4] ss:$16 sps:$4 sm:$0xff]  }
 0x2b6   : > { %3215 = vmatpush1.bf16.msra.mxu0 %v6155_v5  ;;  %3130 = vmatprep.subr.bf16.mxu1 %v6160_v47  ;;  %v6241_v5 = vld [vmem:[%s8530_s3 + $0x1ec] ss:$16 sps:$4 sm:$0xff]   ;;  %v6236_v47 = vld [vmem:[%s8530_s3 + $0x1e0] ss:$16 sps:$4 sm:$0xff]  }
 0x2b7   : > { %3216 = vmatprep.subr.bf16.mxu0 %v6163_v8  ;;  %v6239_v8 = vld [vmem:[%s8530_s3 + $0x1e8] ss:$16 sps:$4 sm:$0xff]  }
 0x2b9   : > { %3131 = vmatpush1.bf16.msra.mxu1 %v6158_v38  ;;  %v6244_v38 = vld [vmem:[%s8530_s3 + $0x204] ss:$16 sps:$4 sm:$0xff]  }
 0x2ba   : > { %3217 = vmatpush1.bf16.msra.mxu0 %v6161_v46  ;;  %3132 = vmatprep.subr.bf16.mxu1 %v6166_v53  ;;  %v6247_v46 = vld [vmem:[%s8530_s3 + $0x20c] ss:$16 sps:$4 sm:$0xff]   ;;  %v6242_v53 = vld [vmem:[%s8530_s3 + $0x200] ss:$16 sps:$4 sm:$0xff]  }
 0x2bb   : > { %3218 = vmatprep.subr.bf16.mxu0 %v6169_v44  ;;  %v6245_v44 = vld [vmem:[%s8530_s3 + $0x208] ss:$16 sps:$4 sm:$0xff]  }
 0x2bd   : > { %3133 = vmatpush1.bf16.msra.mxu1 %v6164_v39  ;;  %v6250_v39 = vld [vmem:[%s8530_s3 + $0x224] ss:$16 sps:$4 sm:$0xff]  }
 0x2be   : > { %3219 = vmatpush1.bf16.msra.mxu0 %v6167_v61  ;;  %3134 = vmatprep.subr.bf16.mxu1 %v6172_v50  ;;  %v6253_v61 = vld [vmem:[%s8530_s3 + $0x22c] ss:$16 sps:$4 sm:$0xff]   ;;  %v6248_v50 = vld [vmem:[%s8530_s3 + $0x220] ss:$16 sps:$4 sm:$0xff]  }
 0x2bf   : > { %3220 = vmatprep.subr.bf16.mxu0 %v6175_v32  ;;  %v6251_v32 = vld [vmem:[%s8530_s3 + $0x228] ss:$16 sps:$4 sm:$0xff]  }
 0x2c1   : > { %3135 = vmatpush1.bf16.msra.mxu1 %v6170_v33  ;;  %v6256_v33 = vld [vmem:[%s8530_s3 + $0x244] ss:$16 sps:$4 sm:$0xff]  }
 0x2c2   : > { %3221 = vmatpush1.bf16.msra.mxu0 %v6173_v20  ;;  %3136 = vmatprep.subr.bf16.mxu1 %v6178_v58  ;;  %v6259_v20 = vld [vmem:[%s8530_s3 + $0x24c] ss:$16 sps:$4 sm:$0xff]   ;;  %v2040_v58 = vld [vmem:[%s8530_s3 + $0x260] sm:$0x33] }
 0x2c3   : > { %3222 = vmatprep.subr.bf16.mxu0 %v6181_v59  ;;  %v2041_v59 = vld [vmem:[%s8530_s3 + $0x268] sm:$0x33] }
 0x2c5   : > { %3137 = vmatpush1.bf16.msra.mxu1 %v6176_v3  ;;  %v6254_v3 = vld [vmem:[%s8530_s3 + $0x240] ss:$16 sps:$4 sm:$0xff]  }
 0x2c6   : > { %3223 = vmatpush1.bf16.msra.mxu0 %v6179_v43  ;;  %3138 = vmatprep.subr.bf16.mxu1 %v6184_v49  ;;  %v6257_v43 = vld [vmem:[%s8530_s3 + $0x248] ss:$16 sps:$4 sm:$0xff]   ;;  %v5554_v49 = vcombine.high %v2040_v58, %v2040_v58 }
 0x2c7   : > { %3224 = vmatprep.subr.bf16.mxu0 %v6187_v16  ;;  %v5553_v16 = vcombine.low %v2040_v58, %v2040_v58  ;;  %v6332_v58 = vld [vmem:[%s8530_s3 + $0x644] ss:$16 sps:$4 sm:$0xff]  }
 0x2c9   : > { %3139 = vmatpush1.bf16.msra.mxu1 %v6182_v42  ;;  %v5556_v42 = vcombine.high %v2041_v59, %v2041_v59 }
 0x2ca   : > { %3225 = vmatpush1.bf16.msra.mxu0 %v6185_v9  ;;  %3140 = vmatprep.subr.bf16.mxu1 %v6190_v27  ;;  %v5555_v9 = vcombine.low %v2041_v59, %v2041_v59  ;;  %v3115_v27 = vsel %vm2537_vm1, %v5553_v16, 0  ;;  %v6335_v59 = vld [vmem:[%s8530_s3 + $0x64c] ss:$16 sps:$4 sm:$0xff]  }
 0x2cb   : > { %3226 = vmatprep.subr.bf16.mxu0 %v6193_v62  ;;  %v6266_v62 = vld [vmem:[%s8530_s3 + $0x4e4] ss:$16 sps:$4 sm:$0xff]   ;;  %v6341_v16 = vld [vmem:[%s8530_s3 + $0x66c] ss:$16 sps:$4 sm:$0xff]  }
 0x2cd   : > { %3141 = vmatpush1.bf16.msra.mxu1 %v6188_v0  ;;  %v3121_v0 = vsel %vm2537_vm1, %v5555_v9, 0  ;;  %v6339_v9 = vld [vmem:[%s8530_s3 + $0x668] ss:$16 sps:$4 sm:$0xff]  }
 0x2ce   : > { %3227 = vmatpush1.bf16.msra.mxu0 %v6191_v29  ;;  %3142 = vmatprep.subr.bf16.mxu1 %v6196_v60  ;;  %v6269_v29 = vld [vmem:[%s8530_s3 + $0x4ec] ss:$16 sps:$4 sm:$0xff]   ;;  %v6264_v60 = vld [vmem:[%s8530_s3 + $0x4e0] ss:$16 sps:$4 sm:$0xff]  }
 0x2cf   : > { %3228 = vmatprep.subr.bf16.mxu0 %v6199_v10  ;;  %v6267_v10 = vld [vmem:[%s8530_s3 + $0x4e8] ss:$16 sps:$4 sm:$0xff]  }
 0x2d1   : > { %3143 = vmatpush1.bf16.msra.mxu1 %v6194_v21  ;;  %v6272_v21 = vld [vmem:[%s8530_s3 + $0x504] ss:$16 sps:$4 sm:$0xff]  }
 0x2d2   : > { %3229 = vmatpush1.bf16.msra.mxu0 %v6197_v6  ;;  %3144 = vmatprep.subr.bf16.mxu1 %v6202_v30  ;;  %v3380_v6 = vrot.slane %v7561_v15, 1  ;;  %v6275_v30 = vld [vmem:[%s8530_s3 + $0x50c] ss:$16 sps:$4 sm:$0xff]   ;;  %v6278_v15 = vld [vmem:[%s8530_s3 + $0x524] ss:$16 sps:$4 sm:$0xff]  }
 0x2d3   : > { %3230 = vmatprep.subr.bf16.mxu0 %v6205_v24  ;;  %v6270_v24 = vld [vmem:[%s8530_s3 + $0x500] ss:$16 sps:$4 sm:$0xff]  }
 0x2d5   : > { %3145 = vmatpush1.bf16.msra.mxu1 %v6200_v34  ;;  %v6273_v34 = vld [vmem:[%s8530_s3 + $0x508] ss:$16 sps:$4 sm:$0xff]  }
 0x2d6   : > { %3231 = vmatpush1.bf16.msra.mxu0 %v6203_v7  ;;  %3146 = vmatprep.subr.bf16.mxu1 %v6208_v26  ;;  %v6281_v7 = vld [vmem:[%s8530_s3 + $0x52c] ss:$16 sps:$4 sm:$0xff]   ;;  %v6276_v26 = vld [vmem:[%s8530_s3 + $0x520] ss:$16 sps:$4 sm:$0xff]  }
 0x2d7   : > { %3232 = vmatprep.subr.bf16.mxu0 %v6211_v11  ;;  %v6279_v11 = vld [vmem:[%s8530_s3 + $0x528] ss:$16 sps:$4 sm:$0xff]  }
 0x2d9   : > { %3147 = vmatpush1.bf16.msra.mxu1 %v6206_v22  ;;  %v6284_v22 = vld [vmem:[%s8530_s3 + $0x544] ss:$16 sps:$4 sm:$0xff]  }
 0x2da   : > { %3233 = vmatpush1.bf16.msra.mxu0 %v6209_v28  ;;  %3148 = vmatprep.subr.bf16.mxu1 %v6214_v57  ;;  %v6287_v28 = vld [vmem:[%s8530_s3 + $0x54c] ss:$16 sps:$4 sm:$0xff]   ;;  %v6282_v57 = vld [vmem:[%s8530_s3 + $0x540] ss:$16 sps:$4 sm:$0xff]  }
 0x2db   : > { %3234 = vmatprep.subr.bf16.mxu0 %v6217_v19  ;;  %v6285_v19 = vld [vmem:[%s8530_s3 + $0x548] ss:$16 sps:$4 sm:$0xff]  }
 0x2dd   : > { %3149 = vmatpush1.bf16.msra.mxu1 %v6212_v36  ;;  %v6290_v36 = vld [vmem:[%s8530_s3 + $0x564] ss:$16 sps:$4 sm:$0xff]  }
 0x2de   : > { %3235 = vmatpush1.bf16.msra.mxu0 %v6215_v35  ;;  %3150 = vmatprep.subr.bf16.mxu1 %v6220_v55  ;;  %v6293_v35 = vld [vmem:[%s8530_s3 + $0x56c] ss:$16 sps:$4 sm:$0xff]   ;;  %v6288_v55 = vld [vmem:[%s8530_s3 + $0x560] ss:$16 sps:$4 sm:$0xff]  }
 0x2df   : > { %3236 = vmatprep.subr.bf16.mxu0 %v6223_v40  ;;  %v6291_v40 = vld [vmem:[%s8530_s3 + $0x568] ss:$16 sps:$4 sm:$0xff]  }
 0x2e1   : > { %3151 = vmatpush1.bf16.msra.mxu1 %v6218_v14  ;;  %v6296_v14 = vld [vmem:[%s8530_s3 + $0x584] ss:$16 sps:$4 sm:$0xff]  }
 0x2e2   : > { %3237 = vmatpush1.bf16.msra.mxu0 %v6221_v63  ;;  %3152 = vmatprep.subr.bf16.mxu1 %v6226_v25  ;;  %v6299_v63 = vld [vmem:[%s8530_s3 + $0x58c] ss:$16 sps:$4 sm:$0xff]   ;;  %v6294_v25 = vld [vmem:[%s8530_s3 + $0x580] ss:$16 sps:$4 sm:$0xff]  }
 0x2e3   : > { %3238 = vmatprep.subr.bf16.mxu0 %v6229_v23  ;;  %v6297_v23 = vld [vmem:[%s8530_s3 + $0x588] ss:$16 sps:$4 sm:$0xff]  }
 0x2e5   : > { %3153 = vmatpush1.bf16.msra.mxu1 %v6224_v41  ;;  %v6302_v41 = vld [vmem:[%s8530_s3 + $0x5a4] ss:$16 sps:$4 sm:$0xff]  }
 0x2e6   : > { %3239 = vmatpush1.bf16.msra.mxu0 %v6227_v51  ;;  %3154 = vmatprep.subr.bf16.mxu1 %v6232_v1  ;;  %v6305_v51 = vld [vmem:[%s8530_s3 + $0x5ac] ss:$16 sps:$4 sm:$0xff]   ;;  %v6300_v1 = vld [vmem:[%s8530_s3 + $0x5a0] ss:$16 sps:$4 sm:$0xff]  }
 0x2e7   : > { %3240 = vmatprep.subr.bf16.mxu0 %v6235_v54  ;;  %v6303_v54 = vld [vmem:[%s8530_s3 + $0x5a8] ss:$16 sps:$4 sm:$0xff]  }
 0x2e9   : > { %3155 = vmatpush1.bf16.msra.mxu1 %v6230_v31  ;;  %v6308_v31 = vld [vmem:[%s8530_s3 + $0x5c4] ss:$16 sps:$4 sm:$0xff]  }
 0x2ea   : > { %3241 = vmatpush1.bf16.msra.mxu0 %v6233_v48  ;;  %3156 = vmatprep.subr.bf16.mxu1 %v6238_v52  ;;  %v6311_v48 = vld [vmem:[%s8530_s3 + $0x5cc] ss:$16 sps:$4 sm:$0xff]   ;;  %v6306_v52 = vld [vmem:[%s8530_s3 + $0x5c0] ss:$16 sps:$4 sm:$0xff]  }
 0x2eb   : > { %3242 = vmatprep.subr.bf16.mxu0 %v6241_v5  ;;  %v6309_v5 = vld [vmem:[%s8530_s3 + $0x5c8] ss:$16 sps:$4 sm:$0xff]  }
 0x2ed   : > { %3157 = vmatpush1.bf16.msra.mxu1 %v6236_v47  ;;  %v6314_v47 = vld [vmem:[%s8530_s3 + $0x5e4] ss:$16 sps:$4 sm:$0xff]  }
 0x2ee   : > { %3243 = vmatpush1.bf16.msra.mxu0 %v6239_v8  ;;  %3169 = vmatprep.subr.bf16.mxu1 %v6244_v38  ;;  %v6317_v8 = vld [vmem:[%s8530_s3 + $0x5ec] ss:$16 sps:$4 sm:$0xff]   ;;  %v6312_v38 = vld [vmem:[%s8530_s3 + $0x5e0] ss:$16 sps:$4 sm:$0xff]  }
 0x2ef   : > { %3255 = vmatprep.subr.bf16.mxu0 %v6247_v46  ;;  %v6315_v46 = vld [vmem:[%s8530_s3 + $0x5e8] ss:$16 sps:$4 sm:$0xff]  }
 0x2f0   : > { %3159 = vmatmul.mubr.bf16.vlgmr.msra.gmra.mrb[20].mxu1 %v7557_v56 }
 0x2f1   : > { %3245 = vmatmul.mubr.bf16.vlgmr.msra.gmra.mrb[24].mxu0 %v7557_v56  ;;  %3170 = vmatpush1.bf16.msra.mxu1 %v6242_v53  ;;  %v6320_v53 = vld [vmem:[%s8530_s3 + $0x604] ss:$16 sps:$4 sm:$0xff]  }
 0x2f2   : > { %3256 = vmatpush1.bf16.msra.mxu0 %v6245_v44  ;;  %3171 = vmatprep.subr.bf16.mxu1 %v6250_v39  ;;  %v6323_v44 = vld [vmem:[%s8530_s3 + $0x60c] ss:$16 sps:$4 sm:$0xff]   ;;  %v6318_v39 = vld [vmem:[%s8530_s3 + $0x600] ss:$16 sps:$4 sm:$0xff]  }
 0x2f3   : > { %3257 = vmatprep.subr.bf16.mxu0 %v6253_v61  ;;  %3201 = vmatprep.mubr.bf16.mxu1 %v6559_v2  ;;  %v6321_v61 = vld [vmem:[%s8530_s3 + $0x608] ss:$16 sps:$4 sm:$0xff]  }
 0x2f4   : > { %3287 = vmatprep.mubr.bf16.mxu0 %v6559_v2 }
 0x2f5   : > { %3172 = vmatpush1.bf16.msra.mxu1 %v6248_v50  ;;  %v6326_v50 = vld [vmem:[%s8530_s3 + $0x624] ss:$16 sps:$4 sm:$0xff]  }
 0x2f6   : > { %3258 = vmatpush1.bf16.msra.mxu0 %v6251_v32  ;;  %3173 = vmatprep.subr.bf16.mxu1 %v6256_v33  ;;  %v6329_v32 = vld [vmem:[%s8530_s3 + $0x62c] ss:$16 sps:$4 sm:$0xff]   ;;  %v6324_v33 = vld [vmem:[%s8530_s3 + $0x620] ss:$16 sps:$4 sm:$0xff]  }
 0x2f7   : > { %3259 = vmatprep.subr.bf16.mxu0 %v6259_v20  ;;  %v6327_v20 = vld [vmem:[%s8530_s3 + $0x628] ss:$16 sps:$4 sm:$0xff]  }
 0x2f9   : > { %3174 = vmatpush1.bf16.msra.mxu1 %v6254_v3  ;;  %v6330_v3 = vld [vmem:[%s8530_s3 + $0x640] ss:$16 sps:$4 sm:$0xff]  }
 0x2fa   : > { %3260 = vmatpush1.bf16.msra.mxu0 %v6257_v43  ;;  %5557 = vmatprep.subr.msk.bf16.mxu1 %vm2537_vm1, %v5554_v49  ;;  %v6333_v43 = vld [vmem:[%s8530_s3 + $0x648] ss:$16 sps:$4 sm:$0xff]   ;;  %v6338_v49 = vld [vmem:[%s8530_s3 + $0x664] ss:$16 sps:$4 sm:$0xff]  }
 0x2fb   : > { %5559 = vmatprep.subr.msk.bf16.mxu0 %vm2537_vm1, %v5556_v42  ;;  %v6336_v42 = vld [vmem:[%s8530_s3 + $0x660] ss:$16 sps:$4 sm:$0xff]  }
 0x2fd   : > { %3176 = vmatpush1.bf16.msra.mxu1 %v3115_v27  ;;  %v6344_v27 = vld [vmem:[%s8530_s3 + $0x684] ss:$16 sps:$4 sm:$0xff]  }
 0x2fe   : > { %3262 = vmatpush1.bf16.msra.mxu0 %v3121_v0  ;;  %3789 = vmatprep.subr.bf16.mxu1 %v6266_v62  ;;  %v6347_v62 = vld [vmem:[%s8530_s3 + $0x68c] ss:$16 sps:$4 sm:$0xff]   ;;  %v6342_v0 = vld [vmem:[%s8530_s3 + $0x680] ss:$16 sps:$4 sm:$0xff]  }
 0x2ff   : > { %3875 = vmatprep.subr.bf16.mxu0 %v6269_v29  ;;  %v6345_v29 = vld [vmem:[%s8530_s3 + $0x688] ss:$16 sps:$4 sm:$0xff]  }
 0x300   : > { %5558 = vmatmul.mubr.msk.bf16.vlgmr.msra.gmra.mrb[20].mxu1 %vm2533_vm3, %v7593_v45 }
 0x301   : > { %5560 = vmatmul.mubr.msk.bf16.vlgmr.msra.gmra.mrb[24].mxu0 %vm2533_vm3, %v7593_v45  ;;  %3790 = vmatpush1.bf16.msra.mxu1 %v6264_v60  ;;  %v6350_v60 = vld [vmem:[%s8530_s3 + $0x6a4] ss:$16 sps:$4 sm:$0xff]  }
 0x302   : > { %3821 = vmatprep.mubr.bf16.mxu1 %v3380_v6  ;;  %3876 = vmatpush1.bf16.msra.mxu0 %v6267_v10  ;;  %v6353_v10 = vld [vmem:[%s8530_s3 + $0x6ac] ss:$16 sps:$4 sm:$0xff]  }
 0x303   : > { %3907 = vmatprep.mubr.bf16.mxu0 %v3380_v6  ;;  %3791 = vmatprep.subr.bf16.mxu1 %v6272_v21  ;;  %v6348_v21 = vld [vmem:[%s8530_s3 + $0x6a0] ss:$16 sps:$4 sm:$0xff]   ;;  %v6351_v6 = vld [vmem:[%s8530_s3 + $0x6a8] ss:$16 sps:$4 sm:$0xff]  }
 0x304   : > { %3877 = vmatprep.subr.bf16.mxu0 %v6275_v30  ;;  %v6356_v30 = vld [vmem:[%s8530_s3 + $0x6c4] ss:$16 sps:$4 sm:$0xff]  }
 0x305   : > { %3792 = vmatpush1.bf16.msra.mxu1 %v6270_v24  ;;  %v6359_v24 = vld [vmem:[%s8530_s3 + $0x6cc] ss:$16 sps:$4 sm:$0xff]  }
 0x306   : > { %3878 = vmatpush1.bf16.msra.mxu0 %v6273_v34  ;;  %3793 = vmatprep.subr.bf16.mxu1 %v6278_v15  ;;  %v6354_v34 = vld [vmem:[%s8530_s3 + $0x6c0] ss:$16 sps:$4 sm:$0xff]   ;;  %v6357_v15 = vld [vmem:[%s8530_s3 + $0x6c8] ss:$16 sps:$4 sm:$0xff]  }
 0x307   : > { %3879 = vmatprep.subr.bf16.mxu0 %v6281_v7  ;;  %v6362_v7 = vld [vmem:[%s8530_s3 + $0x6e4] ss:$16 sps:$4 sm:$0xff]  }
 0x309   : > { %3794 = vmatpush1.bf16.msra.mxu1 %v6276_v26  ;;  %v6365_v26 = vld [vmem:[%s8530_s3 + $0x6ec] ss:$16 sps:$4 sm:$0xff]  }
 0x30a   : > { %3880 = vmatpush1.bf16.msra.mxu0 %v6279_v11  ;;  %3795 = vmatprep.subr.bf16.mxu1 %v6284_v22  ;;  %v6360_v11 = vld [vmem:[%s8530_s3 + $0x6e0] ss:$16 sps:$4 sm:$0xff]   ;;  %v3379_v22 = vrot.slane %v7557_v56, 1 }
 0x30b   : > { %3881 = vmatprep.subr.bf16.mxu0 %v6287_v28  ;;  %v6363_v28 = vld [vmem:[%s8530_s3 + $0x6e8] ss:$16 sps:$4 sm:$0xff]   ;;  %v6366_v56 = vld [vmem:[%s8530_s3 + $0x700] ss:$16 sps:$4 sm:$0xff]  }
 0x30d   : > { %3796 = vmatpush1.bf16.msra.mxu1 %v6282_v57  ;;  %v6368_v57 = vld [vmem:[%s8530_s3 + $0x704] ss:$16 sps:$4 sm:$0xff]  }
 0x30e   : > { %3882 = vmatpush1.bf16.msra.mxu0 %v6285_v19  ;;  %3797 = vmatprep.subr.bf16.mxu1 %v6290_v36  ;;  %v6371_v19 = vld [vmem:[%s8530_s3 + $0x70c] ss:$16 sps:$4 sm:$0xff]   ;;  %v6369_v36 = vld [vmem:[%s8530_s3 + $0x708] ss:$16 sps:$4 sm:$0xff]  }
 0x30f   : > { %3883 = vmatprep.subr.bf16.mxu0 %v6293_v35  ;;  %v6374_v35 = vld [vmem:[%s8530_s3 + $0x724] ss:$16 sps:$4 sm:$0xff]  }
 0x311   : > { %3798 = vmatpush1.bf16.msra.mxu1 %v6288_v55  ;;  %v6377_v55 = vld [vmem:[%s8530_s3 + $0x72c] ss:$16 sps:$4 sm:$0xff]  }
 0x312   : > { %3884 = vmatpush1.bf16.msra.mxu0 %v6291_v40  ;;  %3799 = vmatprep.subr.bf16.mxu1 %v6296_v14  ;;  %v3374_v40 = vld [vmem:[%s8530_s3 + $0x740] sm:$0x33]  ;;  %v3375_v14 = vld [vmem:[%s8530_s3 + $0x748] sm:$0x33] }
 0x313   : > { %3885 = vmatprep.subr.bf16.mxu0 %v6299_v63  ;;  %v6372_v63 = vld [vmem:[%s8530_s3 + $0x720] ss:$16 sps:$4 sm:$0xff]  }
 0x315   : > { %3800 = vmatpush1.bf16.msra.mxu1 %v6294_v25  ;;  %v6375_v25 = vld [vmem:[%s8530_s3 + $0x728] ss:$16 sps:$4 sm:$0xff]  }
 0x316   : > { %3886 = vmatpush1.bf16.msra.mxu0 %v6297_v23  ;;  %3801 = vmatprep.subr.bf16.mxu1 %v6302_v41  ;;  %v5638_v23 = vcombine.high %v3374_v40, %v3374_v40  ;;  %v5637_v41 = vcombine.low %v3374_v40, %v3374_v40 }
 0x317   : > { %3887 = vmatprep.subr.bf16.mxu0 %v6305_v51  ;;  %v5640_v51 = vcombine.high %v3375_v14, %v3375_v14 }
 0x319   : > { %3802 = vmatpush1.bf16.msra.mxu1 %v6300_v1  ;;  %v5639_v1 = vcombine.low %v3375_v14, %v3375_v14 }
 0x31a   : > { %3888 = vmatpush1.bf16.msra.mxu0 %v6303_v54  ;;  %3803 = vmatprep.subr.bf16.mxu1 %v6308_v31  ;;  %v3778_v54 = vsel %vm2537_vm1, %v5637_v41, 0 }
 0x31b   : > { %3889 = vmatprep.subr.bf16.mxu0 %v6311_v48  ;;  %v3784_v31 = vsel %vm2537_vm1, %v5639_v1, 0  ;;  %v3381_v48 = vrot.slane %v7593_v45, 1 }
 0x31d   : > { %3804 = vmatpush1.bf16.msra.mxu1 %v6306_v52  ;;  %v3969_v52 = vld [vmem:[%s8531_s4] ss:$2 sm:$0xf] }
 0x31e   : > { %3890 = vmatpush1.bf16.msra.mxu0 %v6309_v5  ;;  %3805 = vmatprep.subr.bf16.mxu1 %v6314_v47  ;;  %v5645_v5 = vld [vmem:[%s8531_s4 + $0x1] ss:$2 sm:$0xf]  ;;  %v3974_v47 = vrot.slane %v3969_v52, %v6945_v12 }
 0x31f   : > { %3891 = vmatprep.subr.bf16.mxu0 %v6317_v8  ;;  %v3982_v8 = vrot.slane %v3969_v52, %v6948_v13  ;;  %v4013_v45 = vrot.slane %v5645_v5, %v6945_v12 }
 0x321   : > { %3806 = vmatpush1.bf16.msra.mxu1 %v6312_v38  ;;  %v3978_v38 = vrot.slane %v3969_v52, %v6956_v17 }
 0x322   : > { %3892 = vmatpush1.bf16.msra.mxu0 %v6315_v46  ;;  %3807 = vmatprep.subr.bf16.mxu1 %v6320_v53  ;;  %v3986_v46 = vrot.slane %v3969_v52, %v6959_v18 }
 0x323   : > { %3893 = vmatprep.subr.bf16.mxu0 %v6323_v44  ;;  %v4021_v44 = vrot.slane %v5645_v5, %v6948_v13 }
 0x325   : > { %3808 = vmatpush1.bf16.msra.mxu1 %v6318_v39  ;;  %v4017_v39 = vrot.slane %v5645_v5, %v6956_v17 }
 0x326   : > { %3894 = vmatpush1.bf16.msra.mxu0 %v6321_v61  ;;  %3809 = vmatprep.subr.bf16.mxu1 %v6326_v50 }
 0x327   : > { %3895 = vmatprep.subr.bf16.mxu0 %v6329_v32 }
 0x329   : > { %3810 = vmatpush1.bf16.msra.mxu1 %v6324_v33  ;;  %v4025_v33 = vrot.slane %v5645_v5, %v6959_v18 }
 0x32a   : > { %3896 = vmatpush1.bf16.msra.mxu0 %v6327_v20  ;;  %3811 = vmatprep.subr.bf16.mxu1 %v6332_v58 }
 0x32b   : > { %3897 = vmatprep.subr.bf16.mxu0 %v6335_v59 }
 0x32d   : > { %3812 = vmatpush1.bf16.msra.mxu1 %v6330_v3 }
 0x32e   : > { %3898 = vmatpush1.bf16.msra.mxu0 %v6333_v43  ;;  %3813 = vmatprep.subr.bf16.mxu1 %v6338_v49 }
 0x32f   : > { %3899 = vmatprep.subr.bf16.mxu0 %v6341_v16 }
 0x331   : > { %3814 = vmatpush1.bf16.msra.mxu1 %v6336_v42 }
 0x332   : > { %3900 = vmatpush1.bf16.msra.mxu0 %v6339_v9  ;;  %3815 = vmatprep.subr.bf16.mxu1 %v6344_v27 }
 0x333   : > { %3901 = vmatprep.subr.bf16.mxu0 %v6347_v62 }
 0x335   : > { %3816 = vmatpush1.bf16.msra.mxu1 %v6342_v0 }
 0x336   : > { %3902 = vmatpush1.bf16.msra.mxu0 %v6345_v29  ;;  %3817 = vmatprep.subr.bf16.mxu1 %v6350_v60 }
 0x337   : > { %3903 = vmatprep.subr.bf16.mxu0 %v6353_v10 }
 0x339   : > { %3818 = vmatpush1.bf16.msra.mxu1 %v6348_v21 }
 0x33a   : > { %3904 = vmatpush1.bf16.msra.mxu0 %v6351_v6  ;;  %3819 = vmatprep.subr.bf16.mxu1 %v6356_v30 }
 0x33b   : > { %3905 = vmatprep.subr.bf16.mxu0 %v6359_v24 }
 0x33d   : > { %3820 = vmatpush1.bf16.msra.mxu1 %v6354_v34 }
 0x33e   : > { %3906 = vmatpush1.bf16.msra.mxu0 %v6357_v15  ;;  %3832 = vmatprep.subr.bf16.mxu1 %v6362_v7 }
 0x33f   : > { %3918 = vmatprep.subr.bf16.mxu0 %v6365_v26 }
 0x340   : > { %3822 = vmatmul.mubr.bf16.vlgmr.msra.gmra.mrb[20].mxu1 %v3379_v22 }
 0x341   : > { %3908 = vmatmul.mubr.bf16.vlgmr.msra.gmra.mrb[24].mxu0 %v3379_v22  ;;  %3833 = vmatpush1.bf16.msra.mxu1 %v6360_v11 }
 0x342   : > { %3919 = vmatpush1.bf16.msra.mxu0 %v6363_v28  ;;  %3834 = vmatprep.subr.bf16.mxu1 %v6368_v57 }
 0x343   : > { %3920 = vmatprep.subr.bf16.mxu0 %v6371_v19  ;;  %3864 = vmatprep.mubr.bf16.mxu1 %v6559_v2 }
 0x344   : > { %3950 = vmatprep.mubr.bf16.mxu0 %v6559_v2 }
 0x345   : > { %3835 = vmatpush1.bf16.msra.mxu1 %v6366_v56 }
 0x346   : > { %3921 = vmatpush1.bf16.msra.mxu0 %v6369_v36  ;;  %3836 = vmatprep.subr.bf16.mxu1 %v6374_v35 }
 0x347   : > { %3922 = vmatprep.subr.bf16.mxu0 %v6377_v55 }
 0x349   : > { %3837 = vmatpush1.bf16.msra.mxu1 %v6372_v63 }
 0x34a   : > { %3923 = vmatpush1.bf16.msra.mxu0 %v6375_v25  ;;  %5641 = vmatprep.subr.msk.bf16.mxu1 %vm2537_vm1, %v5638_v23 }
 0x34b   : > { %5643 = vmatprep.subr.msk.bf16.mxu0 %vm2537_vm1, %v5640_v51  ;;  %vm4240_vm1 = vcmask 1044224  }
 0x34d   : > { %3839 = vmatpush1.bf16.msra.mxu1 %v3778_v54 }
 0x34e   : > { %3925 = vmatpush1.bf16.msra.mxu0 %v3784_v31 }
 0x350   : > { %5642 = vmatmul.mubr.msk.bf16.vlgmr.msra.gmra.mrb[20].mxu1 %vm2533_vm3, %v3381_v48 }
 0x351   : > { %5644 = vmatmul.mubr.msk.bf16.vlgmr.msra.gmra.mrb[24].mxu0 %vm2533_vm3, %v3381_v48  ;;  %vm4241_vm3 = vcmask 130052  }
 0x423   : > { %v3866_v53 = vpop.f32.mrb[20].mxu1 }
 0x424   : > { %v3991_v61 = vadd.f32 %v3974_v47, %v3866_v53  ;;  %v3952_v50 = vpop.f32.mrb[24].mxu0  ;;  %v3868_v32 = vpop.f32.mrb[21].mxu1 }
 0x425   : > { %v3993_v20 = vadd.f32 %v3982_v8, %v3952_v50  ;;  %v3992_v58 = vadd.f32 %v3978_v38, %v3868_v32  ;;  %v3954_v59 = vpop.f32.mrb[25].mxu0  ;;  %v3870_v3 = vpop.f32.mrb[22].mxu1 }
 0x426   : > { %vm3999_vm4 = vcmp.gt.f32.partialorder %v3991_v61, 0.0  ;;  %v4030_v43 = vmul.f32 %v4013_v45, %v3991_v61  ;;  %v3994_v49 = vadd.f32 %v3986_v46, %v3954_v59  ;;  %v3995_v16 = vadd.f32 %v3974_v47, %v3870_v3  ;;  %v3956_v42 = vpop.f32.mrb[26].mxu0  ;;  %v3872_v9 = vpop.f32.mrb[23].mxu1 }
 0x427   : > { %vm4001_vm5 = vcmp.gt.f32.partialorder %v3993_v20, 0.0  ;;  %v4032_v27 = vmul.f32 %v4021_v44, %v3993_v20  ;;  %vm4000_vm6 = vcmp.gt.f32.partialorder %v3992_v58, 0.0  ;;  %v4031_v13 = vmul.f32 %v4017_v39, %v3992_v58  ;;  %v3958_v62 = vpop.f32.mrb[27].mxu0 }
 0x428   : > { %v4038_v0 = vsel %vm3999_vm4, %v3991_v61, %v4030_v43  ;;  %vm4002_vm7 = vcmp.gt.f32.partialorder %v3994_v49, 0.0  ;;  %v4033_v29 = vmul.f32 %v4025_v33, %v3994_v49  ;;  %vm4003_vm8 = vcmp.gt.f32.partialorder %v3995_v16, 0.0 }
 0x429   : > { %v4050_v18 = vrot.slane %v4038_v0, 1  ;;  %v4062_v60 = vrot.slane %v4038_v0, 2  ;;  %v4040_v10 = vsel %vm4001_vm5, %v3993_v20, %v4032_v27  ;;  %v4039_v21 = vsel %vm4000_vm6, %v3992_v58, %v4031_v13  ;;  %vm4242_vm5 = vmor %vm4241_vm3, %vm4240_vm1 }
 0x42a   : > { %v4052_v6 = vrot.slane %v4040_v10, 1  ;;  %v4064_v30 = vrot.slane %v4040_v10, 2  ;;  %v4051_v24 = vrot.slane %v4039_v21, 1  ;;  %v4063_v34 = vrot.slane %v4039_v21, 2 }
 0x42b   : > { %v4058_v15 = vmax.f32 %v4038_v0, %v4050_v18  ;;  %v4041_v7 = vsel %vm4002_vm7, %v3994_v49, %v4033_v29  ;;  %v4034_v26 = vmul.f32 %v4013_v45, %v3995_v16  ;;  %v3997_v11 = vadd.f32 %v3982_v8, %v3956_v42  ;;  %v6384_v29 = vld [vmem:[%s8532_s5 + $0x4] ss:$8 sps:$4 sm:$0xff]   ;;  %v6387_v18 = vld [vmem:[%s8532_s5 + $0x14] ss:$8 sps:$4 sm:$0xff]  }
 0x42c   : > { %v4060_v22 = vmax.f32 %v4040_v10, %v4052_v6  ;;  %v4059_v28 = vmax.f32 %v4039_v21, %v4051_v24  ;;  %v4053_v57 = vrot.slane %v4041_v7, 1  ;;  %v4065_v19 = vrot.slane %v4041_v7, 2  ;;  %4616 = vmatprep.subr.bf16.mxu0 %v6384_v29  ;;  %v6390_v10 = vld [vmem:[%s8532_s5 + $0xc4] ss:$8 sps:$4 sm:$0xff]   ;;  %v6385_v6 = vld [vmem:[%s8532_s5 + $0x10] ss:$8 sps:$4 sm:$0xff]  }
 0x42d   : > { %v4070_v56 = vmax.f32 %v4058_v15, %v4062_v60  ;;  %v4042_v36 = vsel %vm4003_vm8, %v3995_v16, %v4034_v26  ;;  %vm4005_vm9 = vcmp.gt.f32.partialorder %v3997_v11, 0.0  ;;  %v4036_v35 = vmul.f32 %v4021_v44, %v3997_v11  ;;  %v6388_v60 = vld [vmem:[%s8532_s5 + $0xc0] ss:$8 sps:$4 sm:$0xff]   ;;  %4453 = vmatprep.subr.bf16.mxu1 %v6390_v10  ;;  %v6393_v24 = vld [vmem:[%s8532_s5 + $0x24] ss:$8 sps:$4 sm:$0xff]  }
 0x42e   : > { %v4072_v55 = vmax.f32 %v4060_v22, %v4064_v30  ;;  %v4071_v40 = vmax.f32 %v4059_v28, %v4063_v34  ;;  %v4061_v14 = vmax.f32 %v4041_v7, %v4053_v57  ;;  %v4141_v63 = vrot.slane %v4042_v36, 2  ;;  %v6396_v30 = vld [vmem:[%s8532_s5 + $0xd4] ss:$8 sps:$4 sm:$0xff]   ;;  %4454 = vmatpush1.bf16.msra.mxu1 %v6388_v60  ;;  %v6394_v34 = vld [vmem:[%s8532_s5 + $0xd0] ss:$8 sps:$4 sm:$0xff]  }
 0x42f   : > { %v4044_v25 = vsel %vm4005_vm9, %v3997_v11, %v4036_v35  ;;  %v3996_v23 = vadd.f32 %v3978_v38, %v3872_v9  ;;  %v3998_v41 = vadd.f32 %v3986_v46, %v3958_v62  ;;  %4455 = vmatprep.subr.bf16.mxu1 %v6396_v30  ;;  %v6402_v7 = vld [vmem:[%s8532_s5 + $0xe4] ss:$8 sps:$4 sm:$0xff]   ;;  %v6399_v26 = vld [vmem:[%s8532_s5 + $0x34] ss:$8 sps:$4 sm:$0xff]   ;;  %v6400_v11 = vld [vmem:[%s8532_s5 + $0xe0] ss:$8 sps:$4 sm:$0xff]  }
 0x430   : > { %v4078_v51 = vcombine.low %v4070_v56, %v4071_v40  ;;  %v4110_v1 = vcombine.high %v4070_v56, %v4071_v40  ;;  %v4073_v54 = vmax.f32 %v4061_v14, %v4065_v19  ;;  %v4149_v31 = vmax.f32 %v4058_v15, %v4141_v63  ;;  %v6391_v15 = vld [vmem:[%s8532_s5 + $0x20] ss:$8 sps:$4 sm:$0xff]   ;;  %v6405_v57 = vld [vmem:[%s8532_s5 + $0x44] ss:$8 sps:$4 sm:$0xff]   ;;  %v6406_v19 = vld [vmem:[%s8532_s5 + $0xf0] ss:$8 sps:$4 sm:$0xff]  }
 0x431   : > { %v4143_v48 = vrot.slane %v4044_v25, 2  ;;  %vm4004_vm10 = vcmp.gt.f32.partialorder %v3996_v23, 0.0  ;;  %v4035_v52 = vmul.f32 %v4017_v39, %v3996_v23  ;;  %vm4006_vm11 = vcmp.gt.f32.partialorder %v3998_v41, 0.0  ;;  %v6403_v56 = vld [vmem:[%s8532_s5 + $0x40] ss:$8 sps:$4 sm:$0xff]  }
 0x432   : > { %v4086_v5 = vrot.slane %v4078_v51, %v7001_v37  ;;  %v4118_v47 = vrot.slane %v4110_v1, %v7001_v37  ;;  %v4079_v8 = vcombine.low %v4072_v55, %v4073_v54  ;;  %v4111_v45 = vcombine.high %v4072_v55, %v4073_v54  ;;  %4456 = vmatpush1.bf16.msra.mxu1 %v6394_v34  ;;  %v6414_v36 = vld [vmem:[%s8532_s5 + $0x104] ss:$8 sps:$4 sm:$0xff]   ;;  %v6411_v35 = vld [vmem:[%s8532_s5 + $0x54] ss:$8 sps:$4 sm:$0xff]   ;;  %v6412_v55 = vld [vmem:[%s8532_s5 + $0x100] ss:$8 sps:$4 sm:$0xff]  }
 0x433   : > { %v4151_v53 = vmax.f32 %v4060_v22, %v4143_v48  ;;  %v4043_v44 = vsel %vm4004_vm10, %v3996_v23, %v4035_v52  ;;  %v4037_v61 = vmul.f32 %v4025_v33, %v3998_v41  ;;  %v6397_v22 = vld [vmem:[%s8532_s5 + $0x30] ss:$8 sps:$4 sm:$0xff]   ;;  %4457 = vmatprep.subr.bf16.mxu1 %v6402_v7  ;;  %v6417_v63 = vld [vmem:[%s8532_s5 + $0x64] ss:$8 sps:$4 sm:$0xff]   ;;  %v6415_v23 = vld [vmem:[%s8532_s5 + $0x60] ss:$8 sps:$4 sm:$0xff]  }
 0x434   : > { %v4093_v38 = vrot.slane %v4079_v8, %v7001_v37  ;;  %v4125_v46 = vrot.slane %v4111_v45, %v7001_v37  ;;  %v4142_v50 = vrot.slane %v4043_v44, 2  ;;  %v6409_v40 = vld [vmem:[%s8532_s5 + $0x50] ss:$8 sps:$4 sm:$0xff]   ;;  %v6426_v1 = vld [vmem:[%s8532_s5 + $0x124] ss:$8 sps:$4 sm:$0xff]   ;;  %vm4237_vm4 = vcmask 785408  }
 0x435   : > { %v4045_v32 = vsel %vm4006_vm11, %v3998_v41, %v4037_v61  ;;  %v6418_v25 = vld [vmem:[%s8532_s5 + $0x110] ss:$8 sps:$4 sm:$0xff]   ;;  %v6423_v41 = vld [vmem:[%s8532_s5 + $0x74] ss:$8 sps:$4 sm:$0xff]   ;;  %v6424_v54 = vld [vmem:[%s8532_s5 + $0x120] ss:$8 sps:$4 sm:$0xff]  }
 0x436   : > { %v4094_v20 = vcombine.low %v4086_v5, %v4093_v38  ;;  %v4126_v58 = vcombine.low %v4118_v47, %v4125_v46  ;;  %v4150_v59 = vmax.f32 %v4059_v28, %v4142_v50  ;;  %v4144_v39 = vrot.slane %v4045_v32, 2  ;;  %v6408_v28 = vld [vmem:[%s8532_s5 + $0xf4] ss:$8 sps:$4 sm:$0xff]   ;;  %4458 = vmatpush1.bf16.msra.mxu1 %v6400_v11  ;;  %v6421_v51 = vld [vmem:[%s8532_s5 + $0x70] ss:$8 sps:$4 sm:$0xff]  }
 0x437   : > { %4459 = vmatprep.subr.bf16.mxu1 %v6408_v28  ;;  %v6429_v52 = vld [vmem:[%s8532_s5 + $0x84] ss:$8 sps:$4 sm:$0xff]   ;;  %v6427_v47 = vld [vmem:[%s8532_s5 + $0x80] ss:$8 sps:$4 sm:$0xff]   ;;  %v6432_v8 = vld [vmem:[%s8532_s5 + $0x134] ss:$8 sps:$4 sm:$0xff]  }
 0x438   : > { %v4101_v3 = vrot.slane %v4094_v20, %v7001_v37  ;;  %v4133_v43 = vrot.slane %v4126_v58, %v7001_v37  ;;  %v4157_v49 = vcombine.high %v4149_v31, %v4150_v59  ;;  %v4152_v16 = vmax.f32 %v4061_v14, %v4144_v39  ;;  %v6420_v14 = vld [vmem:[%s8532_s5 + $0x114] ss:$8 sps:$4 sm:$0xff]   ;;  %v6433_v50 = vld [vmem:[%s8532_s5 + $0x90] ss:$8 sps:$4 sm:$0xff]   ;;  %v6436_v32 = vld [vmem:[%s8532_s5 + $0x140] ss:$8 sps:$4 sm:$0xff]  }
 0x439   : > { %v6435_v38 = vld [vmem:[%s8532_s5 + $0x94] ss:$8 sps:$4 sm:$0xff]   ;;  %v6438_v59 = vld [vmem:[%s8532_s5 + $0x144] ss:$8 sps:$4 sm:$0xff]   ;;  %v6448_v34 = vld [vmem:[%s8532_s5 + $0x160] ss:$8 sps:$4 sm:$0xff]  }
 0x43a   : > { %4105 = vst.msk [vmem:[#allocation4] ss:$4 sm:$0xf] %vm4103_vm12, %v4101_v3  ;;  %v4106_v33 = vcombine.high %v4101_v3, %v4101_v3  ;;  %4136 = vst.msk [vmem:[#allocation4 + $0x2] ss:$4 sm:$0xf] %vm4103_vm12, %v4133_v43  ;;  %v4165_v42 = vrot.slane %v4157_v49, %v7001_v37  ;;  %v4158_v9 = vcombine.high %v4151_v53, %v4152_v16  ;;  %4460 = vmatpush1.bf16.msra.mxu1 %v6406_v19 }
 0x43b   : > { %4461 = vmatprep.subr.bf16.mxu1 %v6414_v36  ;;  %v6430_v53 = vld [vmem:[%s8532_s5 + $0x130] ss:$8 sps:$4 sm:$0xff]   ;;  %v6441_v39 = vld [vmem:[%s8532_s5 + $0xa4] ss:$8 sps:$4 sm:$0xff]   ;;  %v6439_v49 = vld [vmem:[%s8532_s5 + $0xa0] ss:$8 sps:$4 sm:$0xff]  }
 0x43c   : > { %4109 = vst.msk [vmem:[#allocation4 + $0x1] ss:$4 sm:$0xf] %vm4103_vm12, %v4106_v33  ;;  %v4172_v27 = vrot.slane %v4158_v9, %v7001_v37  ;;  %v6444_v16 = vld [vmem:[%s8532_s5 + $0x154] ss:$8 sps:$4 sm:$0xff]   ;;  %vm4258_vm6 = vcmask 519296  }
 0x43d   : > { %v6450_v29 = vld [vmem:[%s8532_s5 + $0x164] ss:$8 sps:$4 sm:$0xff]   ;;  %vm4449_vm7 = vcmask 523264   ;;  %vm6576_vm10 = vmmov 0  }
 0x43e   : > { %v4173_v13 = vcombine.low %v4165_v42, %v4172_v27  ;;  %4462 = vmatpush1.bf16.msra.mxu1 %v6412_v55 }
 0x43f   : > { %4463 = vmatprep.subr.bf16.mxu1 %v6420_v14 }
 0x440   : > { %v4180_v62 = vrot.slane %v4173_v13, %v7001_v37  ;;  %v6382_v37 = vld [vmem:[%s8532_s5] ss:$8 sps:$4 sm:$0xff]  }
 0x441   : > { %4617 = vmatpush1.bf16.msra.mxu0 %v6382_v37 }
 0x442   : > { %v4181_v0 = vcombine.high %v4180_v62, %v4180_v62  ;;  %4618 = vmatprep.subr.bf16.mxu0 %v6387_v18  ;;  %4464 = vmatpush1.bf16.msra.mxu1 %v6418_v25  ;;  %v6447_v62 = vld [vmem:[%s8532_s5 + $0xb4] ss:$8 sps:$4 sm:$0xff]   ;;  %v6445_v18 = vld [vmem:[%s8532_s5 + $0xb0] ss:$8 sps:$4 sm:$0xff]   ;;  %v6455_v25 = vld [vmem:[%s8534_s7] sm:$0xff]  }
 0x443   : > { %4465 = vmatprep.subr.bf16.mxu1 %v6426_v1 }
 0x444   : > { %4184 = vst.msk [vmem:[#allocation4 + $0x3] ss:$4 sm:$0xf] %vm4103_vm12, %v4181_v0  ;;  %vm5240_vm12 = vcmask 8192  }
 0x445   : > { %4619 = vmatpush1.bf16.msra.mxu0 %v6385_v6 }
 0x446   : > { %4620 = vmatprep.subr.bf16.mxu0 %v6393_v24  ;;  %4466 = vmatpush1.bf16.msra.mxu1 %v6424_v54  ;;  %v6457_v54 = vld [vmem:[%s8534_s7 + $0x8] sm:$0xff]  }
 0x447   : > { %4467 = vmatprep.subr.bf16.mxu1 %v6432_v8  ;;  %v6458_v8 = vld [vmem:[%s8534_s7 + $0x68] sm:$0xff]  }
 0x449   : > { %4621 = vmatpush1.bf16.msra.mxu0 %v6391_v15 }
 0x44a   : > { %4622 = vmatprep.subr.bf16.mxu0 %v6399_v26  ;;  %4468 = vmatpush1.bf16.msra.mxu1 %v6430_v53  ;;  %v6454_v26 = vld [vmem:[%s8532_s5 + $0x174] ss:$8 sps:$4 sm:$0xff]  }
 0x44b   : > { %v8132_v4 = vld [vmem:[#allocation4] sm:$0xff]  ;;  %v8156_v21 = vld [vmem:[#allocation4 + $0x8] sm:$0xff]  ;;  %4469 = vmatprep.subr.bf16.mxu1 %v6438_v59  ;;  %v6460_v53 = vld [vmem:[%s8534_s7 + $0x70] sm:$0xff]  }
 0x44c   : > { %4220 = vrot.lane.b32.xlu1 %v8132_v4, %s6567_s30  ;;  %4188 = vrot.lane.b32.xlu0 %v8132_v4, %s6571_s28  ;;  %v6470_v59 = vld [vmem:[%s8534_s7 + $0x98] sm:$0xff]  }
 0x44d   : > { %4623 = vmatpush1.bf16.msra.mxu0 %v6397_v22 }
 0x44e   : > { %4624 = vmatprep.subr.bf16.mxu0 %v6405_v57  ;;  %4470 = vmatpush1.bf16.msra.mxu1 %v6436_v32  ;;  %v6466_v32 = vld [vmem:[%s8534_s7 + $0x88] sm:$0xff]  }
 0x44f   : > { %4471 = vmatprep.subr.bf16.mxu1 %v6444_v16  ;;  %v6475_v16 = vld [vmem:[%s8534_s7 + $0x50] sm:$0xff]  }
 0x450   : > { %4215 = vrot.lane.b32.xlu1 %v8132_v4, %s6572_s15  ;;  %4192 = vrot.lane.b32.xlu0 %v8132_v4, %s6565_s27 }
 0x451   : > { %4625 = vmatpush1.bf16.msra.mxu0 %v6403_v56 }
 0x452   : > { %4626 = vmatprep.subr.bf16.mxu0 %v6411_v35 }
 0x454   : > { %4229 = vrot.lane.b32.xlu1 %v8156_v21, %s6573_s23  ;;  %4222 = vrot.lane.b32.xlu0 %v8156_v21, %s6567_s30 }
 0x455   : > { %4627 = vmatpush1.bf16.msra.mxu0 %v6409_v40 }
 0x456   : > { %4628 = vmatprep.subr.bf16.mxu0 %v6417_v63 }
 0x458   : > { %4244 = vrot.lane.b32.xlu1 %v8156_v21, %s6571_s28  ;;  %4248 = vrot.lane.b32.xlu0 %v8156_v21, %s6565_s27 }
 0x459   : > { %4629 = vmatpush1.bf16.msra.mxu0 %v6415_v23 }
 0x45a   : > { %4630 = vmatprep.subr.bf16.mxu0 %v6423_v41 }
 0x45d   : > { %4631 = vmatpush1.bf16.msra.mxu0 %v6421_v51 }
 0x45e   : > { %4632 = vmatprep.subr.bf16.mxu0 %v6429_v52  ;;  %v6456_v52 = vld [vmem:[%s8534_s7 + $0x60] sm:$0xff]  }
 0x461   : > { %4633 = vmatpush1.bf16.msra.mxu0 %v6427_v47  ;;  %v6459_v47 = vld [vmem:[%s8534_s7 + $0x10] sm:$0xff]  }
 0x462   : > { %4634 = vmatprep.subr.bf16.mxu0 %v6435_v38  ;;  %v6465_v38 = vld [vmem:[%s8534_s7 + $0x28] sm:$0xff]  }
 0x465   : > { %4635 = vmatpush1.bf16.msra.mxu0 %v6433_v50  ;;  %v6467_v50 = vld [vmem:[%s8534_s7 + $0x30] sm:$0xff]  }
 0x466   : > { %4636 = vmatprep.subr.bf16.mxu0 %v6441_v39  ;;  %v6471_v39 = vld [vmem:[%s8534_s7 + $0x40] sm:$0xff]  }
 0x469   : > { %4637 = vmatpush1.bf16.msra.mxu0 %v6439_v49  ;;  %v6474_v49 = vld [vmem:[%s8534_s7 + $0xa8] sm:$0xff]  }
 0x46a   : > { %4638 = vmatprep.subr.bf16.mxu0 %v6447_v62 }
 0x46d   : > { %4639 = vmatpush1.bf16.msra.mxu0 %v6445_v18 }
 0x46e   : > { %4936 = vmatprep.subr.bf16.mxu0 %v6559_v2 }
 0x4be   : > { %v4221_v31 = vpop.permute.xlu1 %4220  ;;  %v4189_v48 = vpop.permute.xlu0 %4188 }
 0x4bf   : > { %v4201_v5 = vrot.slane %v4189_v48, 4  ;;  %v4191_v20 = vmax.f32 %v8132_v4, %v4189_v48  ;;  %v4224_v3 = vrot.slane %v4221_v31, 4 }
 0x4c1   : > { %v4203_v45 = vsel %vm4202_vm2, %v4189_v48, %v4201_v5 }
 0x4c2   : > { %v4216_v44 = vpop.permute.xlu1 %4215  ;;  %v4193_v61 = vpop.permute.xlu0 %4192  ;;  %v4205_v58 = vmax.f32 %v8132_v4, %v4203_v45  ;;  %v6442_v4 = vld [vmem:[%s8532_s5 + $0x150] ss:$8 sps:$4 sm:$0xff]  }
 0x4c3   : > { %v4194_v46 = vrot.slane %v4193_v61, 4  ;;  %v4217_v33 = vrot.slane %v4216_v44, 4  ;;  %4472 = vmatpush1.bf16.msra.mxu1 %v6442_v4  ;;  %v6461_v45 = vld [vmem:[%s8534_s7 + $0x18] sm:$0xff]   ;;  %v6463_v44 = vld [vmem:[%s8534_s7 + $0x20] sm:$0xff]  }
 0x4c4   : > { %4473 = vmatprep.subr.bf16.mxu1 %v6450_v29 }
 0x4c5   : > { %v4196_v43 = vsel %vm4195_vm13, %v4193_v61, %v4194_v46  ;;  %v6462_v61 = vld [vmem:[%s8534_s7 + $0x78] sm:$0xff]   ;;  %v6464_v46 = vld [vmem:[%s8534_s7 + $0x80] sm:$0xff]  }
 0x4c6   : > { %v4198_v42 = vmax.f32 %v4191_v20, %v4196_v43  ;;  %v4206_v9 = vmax.f32 %v4205_v58, %v4196_v43  ;;  %v4230_v27 = vpop.permute.xlu1 %4229  ;;  %v4223_v13 = vpop.permute.xlu0 %4222  ;;  %v6469_v20 = vld [vmem:[%s8534_s7 + $0x38] sm:$0xff]   ;;  %v6468_v58 = vld [vmem:[%s8534_s7 + $0x90] sm:$0xff]   ;;  %v6473_v43 = vld [vmem:[%s8534_s7 + $0x48] sm:$0xff]  }
 0x4c7   : > { %v4226_v0 = vsel %vm4225_vm14, %v4224_v3, %v4223_v13  ;;  %4474 = vmatpush1.bf16.msra.mxu1 %v6448_v34  ;;  %v6472_v3 = vld [vmem:[%s8534_s7 + $0xa0] sm:$0xff]  }
 0x4c8   : > { %4200 = vst.msk [vmem:[#allocation5] sm:$0xf] %vm4199_vm15, %v4198_v42  ;;  %v4228_v37 = vmax.f32 %v4217_v33, %v4226_v0  ;;  %4208 = vrot.lane.b32.xlu0 %v4206_v9, %s6571_s28  ;;  %4475 = vmatprep.subr.bf16.mxu1 %v6454_v26  ;;  %v6476_v33 = vld [vmem:[%s8534_s7 + $0xb0] sm:$0xff]   ;;  %v6477_v42 = vld [vmem:[%s8534_s7 + $0x58] sm:$0xff]  }
 0x4c9   : > { %v6478_v9 = vld [vmem:[%s8534_s7 + $0xb8] sm:$0xff]   ;;  %v4657_v0 = vld [vmem:[%s8533_s6] ss:$2 sm:$0x3] }
 0x4ca   : > { %v4245_v60 = vpop.permute.xlu1 %4244  ;;  %v4249_v10 = vpop.permute.xlu0 %4248  ;;  %v4232_v6 = vmax.f32 %v4228_v37, %v4230_v27  ;;  %v5696_v37 = vld [vmem:[%s8533_s6 + $0x1] ss:$2 sm:$0x3]  ;;  %v4662_v29 = vrot.slane %v4657_v0, %v6945_v12 }
 0x4cb   : > { %v4247_v30 = vmax.f32 %v8156_v21, %v4245_v60  ;;  %v4250_v24 = vrot.slane %v4249_v10, 4  ;;  %v6452_v21 = vld [vmem:[%s8532_s5 + $0x170] ss:$8 sps:$4 sm:$0xff]   ;;  %v4666_v60 = vrot.slane %v4657_v0, %v6956_v17  ;;  %v4683_v34 = vrot.slane %v5696_v37, %v6956_v17 }
 0x4cc   : > { %4234 = vrot.lane.b32.xlu1 %v4232_v6, %s6573_s23  ;;  %4476 = vmatpush1.bf16.msra.mxu1 %v6452_v21  ;;  %v4679_v6 = vrot.slane %v5696_v37, %v6945_v12  ;;  %v6479_v12 = vld [vmem:[%s8534_s7 + $0xc0] sm:$0xff]   ;;  %s5254_s23 = sshll.u32 (%p45_p0), %s6578_s20, 4  ;;  %s5255_s23 = int_to_ptr.vmem [resolvable:$true] %s5254_s23 }
 0x4cd   : > { %v4251_v15 = vsel %vm4195_vm13, %v4249_v10, %v4250_v24  ;;  %4822 = vmatprep.subr.bf16.mxu1 %v6559_v2  ;;  %v5144_v37 = vld [vmem:[%s8537_s10] sm:$0x1]  ;;  %s6503_s14 = scalar_lea.vmem (%p45_p0), %s5255_s23, 32  ;;  %p6508_p2 = scmp.lt.s32.totalorder (%p45_p0), %s5255_s23, %s5255_s23 }
 0x4ce   : > { %v4253_v7 = vmax.f32 %v4247_v30, %v4251_v15  ;;  %p6504_p1 = scmp.ne.s32.totalorder (%p45_p0), %s5255_s23, %s6503_s14  ;;  %p6509_p3 = scmp.lt.s32.totalorder (%p45_p0), %s6503_s14, %s6503_s14 }
 0x4d0   : > { %4255 = vrot.lane.b32.xlu0 %v4253_v7, %s6574_s19  ;;  %p6510_p4 = por (%p45_p0), %p6509_p3, %p6508_p2 }
 0x4d2   :  { %p6511_p5 = pnand (%p45_p0), %p6510_p4, %p6504_p1 }
 0x53a   : > { %v4209_v11 = vpop.permute.xlu0 %4208 }
 0x53b   : > { %v4210_v22 = vrot.slane %v4209_v11, 4 }
 0x53d   : > { %v4211_v28 = vsel %vm4202_vm2, %v4209_v11, %v4210_v22  ;;  %vm5247_vm2 = vcmask 24576  }
 0x53e   : > { %4214 = vst.msk [vmem:[#allocation5] sm:$0xf] %vm4213_vm0, %v4211_v28  ;;  %v4235_v57 = vpop.permute.xlu1 %4234 }
 0x53f   : > { %v4236_v19 = vrot.slane %v4235_v57, 4 }
 0x541   : > { %v4238_v56 = vsel %vm4237_vm4, %v4236_v19, %v4235_v57 }
 0x542   : > { %4243 = vst.msk [vmem:[#allocation5] sm:$0xff] %vm4242_vm5, %v4238_v56  ;;  %v4256_v36 = vpop.permute.xlu0 %4255 }
 0x543   : > { %4259 = vst.msk [vmem:[#allocation5 + $0x4] sm:$0xf] %vm4258_vm6, %v4256_v36 }
 0x54a   : > { %v4260_v35 = vld [vmem:[#allocation5] sm:$0xff] }
 0x54b   : > { %v4262_v55 = vcombine.high %v4260_v35, %v4260_v35  ;;  %v4264_v40 = vpack.c.bf16 %v4260_v35, %v4260_v35 }
 0x54d   : > { %v4265_v14 = vpack.c.bf16 %v4262_v55, %v4262_v55  ;;  %v4317_v63 = vshll.u32 %v4264_v40, 16  ;;  %v4315_v31 = vshrl.u32 %v4264_v40, 16  ;;  %v6480_v55 = vld [vmem:[%s8534_s7 + $0xc8] sm:$0xff]  }
 0x54f   : > { %5695 = vmatprep.mubr.msk.bf16.mxu0 %vm4449_vm7, %v4265_v14  ;;  %v4324_v23 = vshll.u32 %v4265_v14, 16  ;;  %v4319_v41 = vrot.slane %v4317_v63, 1  ;;  %v4322_v51 = vshrl.u32 %v4265_v14, 16  ;;  %v6482_v14 = vld [vmem:[%s8534_s7 + $0xd8] sm:$0xff]   ;;  %v6483_v63 = vld [vmem:[%s8534_s7 + $0xe0] sm:$0xff]  }
 0x550   : > { %4649 = vmatmul.mubr.bf16.vlgmr.msra.gmra.mrb[28].mxu0 %v4264_v40  ;;  %v6481_v40 = vld [vmem:[%s8534_s7 + $0xd0] sm:$0xff]  }
 0x551   : > { %v4326_v1 = vrot.slane %v4324_v23, 1  ;;  %4937 = vmatpush1.bf16.msra.mxu0 %v6455_v25  ;;  %v4320_v5 = vor.u32 %v4319_v41, %v4315_v31  ;;  %v6484_v25 = vld [vmem:[%s8534_s7 + $0xe8] sm:$0xff]   ;;  %v6485_v23 = vld [vmem:[%s8534_s7 + $0xf0] sm:$0xff]   ;;  %v6486_v41 = vld [vmem:[%s8534_s7 + $0xf8] sm:$0xff]  }
 0x552   : > { %4938 = vmatprep.subr.bf16.mxu0 %v6559_v2  ;;  %v6490_v31 = vld [vmem:[%s8534_s7 + $0x118] sm:$0xff]  }
 0x553   : > { %v4327_v48 = vor.u32 %v4326_v1, %v4322_v51  ;;  %v6487_v51 = vld [vmem:[%s8534_s7 + $0x100] sm:$0xff]   ;;  %v6488_v1 = vld [vmem:[%s8534_s7 + $0x108] sm:$0xff]  }
 0x555   : > { %5670 = vmatprep.mubr.msk.bf16.mxu1 %vm4449_vm7, %v4327_v48  ;;  %4939 = vmatpush1.bf16.msra.mxu0 %v6457_v54  ;;  %v6489_v54 = vld [vmem:[%s8534_s7 + $0x110] sm:$0xff]  }
 0x556   : > { %4486 = vmatmul.mubr.bf16.vlgmr.msra.gmra.mrb[24].mxu1 %v4320_v5  ;;  %4940 = vmatprep.subr.bf16.mxu0 %v6559_v2  ;;  %v6575_v5 = vmov 0.0  }
 0x557   : > { %4823 = vmatpush1.bf16.msra.mxu1 %v6456_v52  ;;  %v6491_v52 = vld [vmem:[%s8536_s9] sm:$0xff]  }
 0x558   : > { %4824 = vmatprep.subr.bf16.mxu1 %v6559_v2 }
 0x559   : > { %4941 = vmatpush1.bf16.msra.mxu0 %v6459_v47  ;;  %v6492_v47 = vld [vmem:[%s8536_s9 + $0x8] sm:$0xff]  }
 0x55a   : > { %4942 = vmatprep.subr.bf16.mxu0 %v6559_v2 }
 0x55b   : > { %4825 = vmatpush1.bf16.msra.mxu1 %v6458_v8  ;;  %v6494_v8 = vld [vmem:[%s8536_s9 + $0x18] sm:$0xff]  }
 0x55c   : > { %4826 = vmatprep.subr.bf16.mxu1 %v6559_v2 }
 0x55d   : > { %4943 = vmatpush1.bf16.msra.mxu0 %v6461_v45  ;;  %v6495_v45 = vld [vmem:[%s8536_s9 + $0x20] sm:$0xff]  }
 0x55e   : > { %4944 = vmatprep.subr.bf16.mxu0 %v6559_v2 }
 0x55f   : > { %4827 = vmatpush1.bf16.msra.mxu1 %v6460_v53  ;;  %v6496_v53 = vld [vmem:[%s8536_s9 + $0x28] sm:$0xff]  }
 0x560   : > { %4828 = vmatprep.subr.bf16.mxu1 %v6559_v2 }
 0x561   : > { %4945 = vmatpush1.bf16.msra.mxu0 %v6463_v44  ;;  %v6497_v44 = vld [vmem:[%s8536_s9 + $0x30] sm:$0xff]  }
 0x562   : > { %4946 = vmatprep.subr.bf16.mxu0 %v6559_v2 }
 0x563   : > { %4829 = vmatpush1.bf16.msra.mxu1 %v6462_v61  ;;  %v6498_v61 = vld [vmem:[%s8536_s9 + $0x38] sm:$0xff]  }
 0x564   : > { %4830 = vmatprep.subr.bf16.mxu1 %v6559_v2 }
 0x565   : > { %4947 = vmatpush1.bf16.msra.mxu0 %v6465_v38 }
 0x566   : > { %4948 = vmatprep.subr.bf16.mxu0 %v6559_v2 }
 0x567   : > { %4831 = vmatpush1.bf16.msra.mxu1 %v6464_v46 }
 0x568   : > { %4832 = vmatprep.subr.bf16.mxu1 %v6559_v2 }
 0x569   : > { %4949 = vmatpush1.bf16.msra.mxu0 %v6467_v50 }
 0x56a   : > { %4950 = vmatprep.subr.bf16.mxu0 %v6559_v2 }
 0x56b   : > { %4833 = vmatpush1.bf16.msra.mxu1 %v6466_v32 }
 0x56c   : > { %4834 = vmatprep.subr.bf16.mxu1 %v6559_v2 }
 0x56d   : > { %4951 = vmatpush1.bf16.msra.mxu0 %v6469_v20 }
 0x56e   : > { %4952 = vmatprep.subr.bf16.mxu0 %v6559_v2 }
 0x56f   : > { %4835 = vmatpush1.bf16.msra.mxu1 %v6468_v58 }
 0x570   : > { %4836 = vmatprep.subr.bf16.mxu1 %v6559_v2 }
 0x571   : > { %4953 = vmatpush1.bf16.msra.mxu0 %v6471_v39 }
 0x572   : > { %4954 = vmatprep.subr.bf16.mxu0 %v6559_v2 }
 0x573   : > { %4837 = vmatpush1.bf16.msra.mxu1 %v6470_v59 }
 0x574   : > { %4838 = vmatprep.subr.bf16.mxu1 %v6559_v2 }
 0x575   : > { %4955 = vmatpush1.bf16.msra.mxu0 %v6473_v43 }
 0x576   : > { %4956 = vmatprep.subr.bf16.mxu0 %v6559_v2 }
 0x577   : > { %4839 = vmatpush1.bf16.msra.mxu1 %v6472_v3 }
 0x578   : > { %4840 = vmatprep.subr.bf16.mxu1 %v6559_v2 }
 0x579   : > { %4957 = vmatpush1.bf16.msra.mxu0 %v6475_v16 }
 0x57a   : > { %4958 = vmatprep.subr.bf16.mxu0 %v6559_v2 }
 0x57b   : > { %4841 = vmatpush1.bf16.msra.mxu1 %v6474_v49  ;;  %v5121_v49 = vld [vmem:[%s8535_s8] sm:$0x1] }
 0x57c   : > { %4842 = vmatprep.subr.bf16.mxu1 %v6559_v2 }
 0x57d   : > { %4959 = vmatpush1.bf16.msra.mxu0 %v6477_v42  ;;  %v5124_v42 = vld [vmem:[%s8535_s8 + $0x1] sm:$0x1] }
 0x57e   : > { %5817 = vmatprep.subr.bf16.mxu0 %v6575_v5 }
 0x57f   : > { %4843 = vmatpush1.bf16.msra.mxu1 %v6476_v33 }
 0x580   : > { %4844 = vmatprep.subr.bf16.mxu1 %v6559_v2 }
 0x583   : > { %4845 = vmatpush1.bf16.msra.mxu1 %v6478_v9 }
 0x584   : > { %5080 = vmatprep.subr.bf16.mxu1 %v6559_v2 }
 0x623   : > { %v4650_v27 = vpop.f32.mrb[28].mxu0 }
 0x624   : > { %v4652_v13 = vpop.f32.mrb[29].mxu0 }
 0x625   : > { %v4654_v62 = vpop.f32.mrb[30].mxu0 }
 0x626   : > { %v4655_v4 = vpop.f32.mrb[31].mxu0 }
 0x629   : > { %v4487_v18 = vpop.f32.mrb[24].mxu1 }
 0x62a   : > { %v4651_v10 = vadd.f32 %v4650_v27, %v4487_v18  ;;  %v4489_v30 = vpop.f32.mrb[25].mxu1 }
 0x62b   : > { %v4653_v24 = vadd.f32 %v4652_v13, %v4489_v30  ;;  %v4491_v15 = vpop.f32.mrb[26].mxu1 }
 0x62c   : > { %v4669_v7 = vadd.f32 %v4662_v29, %v4651_v10  ;;  %v4492_v21 = vpop.f32.mrb[27].mxu1 }
 0x62d   : > { %v4670_v26 = vadd.f32 %v4666_v60, %v4653_v24 }
 0x62e   : > { %vm4671_vm8 = vcmp.gt.f32.partialorder %v4669_v7, 0.0  ;;  %v4686_v11 = vmul.f32 %v4679_v6, %v4669_v7 }
 0x62f   : > { %vm4672_vm9 = vcmp.gt.f32.partialorder %v4670_v26, 0.0  ;;  %v4687_v22 = vmul.f32 %v4683_v34, %v4670_v26 }
 0x630   : > { %v4688_v28 = vsel %vm4671_vm8, %v4669_v7, %v4686_v11 }
 0x631   : > { %v4690_v57 = vpack.c.bf16 %v4688_v28, %v4688_v28  ;;  %v4689_v19 = vsel %vm4672_vm9, %v4670_v26, %v4687_v22 }
 0x632   : > { %v4691_v56 = vpack.c.bf16 %v4689_v19, %v4689_v19 }
 0x633   : > { %v4741_v17 = vshrl.u32 %v4690_v57, 16  ;;  %v5002_v48 = vrot.slane %v4690_v57, 1 }
 0x634   : > { %5722 = vmatprep.mubr.msk.bf16.mxu0 %vm4449_vm7, %v4691_v56  ;;  %v4744_v36 = vshrl.u32 %v4691_v56, 16  ;;  %v5003_v35 = vrot.slane %v4691_v56, 1 }
 0x635   : > { %4969 = vmatmul.mubr.bf16.vlgmr.msra.gmra.mrb[32].mxu0 %v4690_v57 }
 0x636   : > { %5709 = vmatprep.mubr.msk.bf16.mxu1 %vm4449_vm7, %v4744_v36  ;;  %5818 = vmatpush3.bf16.msra.mxu0 %v6491_v52 }
 0x637   : > { %4855 = vmatmul.mubr.bf16.vlgmr.msra.gmra.mrb[28].mxu1 %v4741_v17  ;;  %5819 = vmatprep.subr.bf16.mxu0 %v6575_v5 }
 0x638   : > { %5081 = vmatpush1.bf16.msra.mxu1 %v6479_v12  ;;  %5735 = vmatprep.mubr.msk.bf16.mxu1 %vm4449_vm7, %v5003_v35 }
 0x639   : > { %5082 = vmatprep.subr.bf16.mxu1 %v6559_v2  ;;  %5833 = vmatprep.mubr.msk.bf16.mxu0 %vm6576_vm10, %v6575_v5 }
 0x63a   : > { %5820 = vmatpush3.bf16.msra.mxu0 %v6492_v47 }
 0x63b   : > { %5821 = vmatprep.subr.bf16.mxu0 %v6575_v5 }
 0x63c   : > { %5083 = vmatpush1.bf16.msra.mxu1 %v6480_v55 }
 0x63d   : > { %5084 = vmatprep.subr.bf16.mxu1 %v6559_v2 }
 0x640   : > { %5085 = vmatpush1.bf16.msra.mxu1 %v6481_v40 }
 0x641   : > { %5086 = vmatprep.subr.bf16.mxu1 %v6559_v2 }
 0x644   : > { %5087 = vmatpush1.bf16.msra.mxu1 %v6482_v14 }
 0x645   : > { %5088 = vmatprep.subr.bf16.mxu1 %v6559_v2 }
 0x648   : > { %5089 = vmatpush1.bf16.msra.mxu1 %v6483_v63 }
 0x649   : > { %5090 = vmatprep.subr.bf16.mxu1 %v6559_v2 }
 0x64c   : > { %5091 = vmatpush1.bf16.msra.mxu1 %v6484_v25 }
 0x64d   : > { %5092 = vmatprep.subr.bf16.mxu1 %v6559_v2 }
 0x650   : > { %5093 = vmatpush1.bf16.msra.mxu1 %v6485_v23 }
 0x651   : > { %5094 = vmatprep.subr.bf16.mxu1 %v6559_v2 }
 0x654   : > { %5095 = vmatpush1.bf16.msra.mxu1 %v6486_v41 }
 0x655   : > { %5096 = vmatprep.subr.bf16.mxu1 %v6559_v2 }
 0x658   : > { %5097 = vmatpush1.bf16.msra.mxu1 %v6487_v51 }
 0x659   : > { %5098 = vmatprep.subr.bf16.mxu1 %v6559_v2 }
 0x65c   : > { %5099 = vmatpush1.bf16.msra.mxu1 %v6488_v1 }
 0x65d   : > { %5100 = vmatprep.subr.bf16.mxu1 %v6559_v2 }
 0x660   : > { %5101 = vmatpush1.bf16.msra.mxu1 %v6489_v54 }
 0x661   : > { %5102 = vmatprep.subr.bf16.mxu1 %v6559_v2  ;;  %v6493_v2 = vld [vmem:[%s8536_s9 + $0x10] sm:$0xff]  }
 0x662   : > { %5822 = vmatpush3.bf16.msra.mxu0 %v6493_v2 }
 0x663   : > { %5823 = vmatprep.subr.bf16.mxu0 %v6575_v5 }
 0x664   : > { %5103 = vmatpush1.bf16.msra.mxu1 %v6490_v31 }
 0x666   : > { %5824 = vmatpush3.bf16.msra.mxu0 %v6494_v8 }
 0x667   : > { %5113 = vmatmul.mubr.bf16.vlgmr.msra.gmra.mrb[32].mxu1 %v5002_v48  ;;  %5825 = vmatprep.subr.bf16.mxu0 %v6575_v5 }
 0x66a   : > { %5826 = vmatpush3.bf16.msra.mxu0 %v6495_v45 }
 0x66b   : > { %5827 = vmatprep.subr.bf16.mxu0 %v6575_v5 }
 0x66e   : > { %5828 = vmatpush3.bf16.msra.mxu0 %v6496_v53 }
 0x66f   : > { %5829 = vmatprep.subr.bf16.mxu0 %v6575_v5 }
 0x672   : > { %5830 = vmatpush3.bf16.msra.mxu0 %v6497_v44 }
 0x673   : > { %5831 = vmatprep.subr.bf16.mxu0 %v6575_v5 }
 0x676   : > { %5832 = vmatpush3.bf16.msra.mxu0 %v6498_v61 }
 0x708   : > { %v4970_v38 = vpop.f32.mrb[32].mxu0 }
 0x709   : > { %v4972_v46 = vpop.f32.mrb[33].mxu0 }
 0x70a   : > { %v4856_v50 = vpop.f32.mrb[28].mxu1  ;;  %v4973_v32 = vpop.f32.mrb[34].mxu0 }
 0x70b   : > { %v4971_v20 = vadd.f32 %v4970_v38, %v4856_v50  ;;  %v4858_v58 = vpop.f32.mrb[29].mxu1  ;;  %v4974_v59 = vpop.f32.mrb[35].mxu0 }
 0x70c   : > { %v4859_v39 = vpop.f32.mrb[30].mxu1 }
 0x70d   : > { %v4860_v3 = vpop.f32.mrb[31].mxu1 }
 0x73a   : > { %v5114_v43 = vpop.f32.mrb[32].mxu1 }
 0x73b   : > { %v5120_v16 = vadd.f32 %v5114_v43, %v4971_v20  ;;  %v5116_v33 = vpop.f32.mrb[33].mxu1 }
 0x73c   : > { %v5117_v9 = vpop.f32.mrb[34].mxu1 }
 0x73d   : > { %v5122_v27 = vadd.f32 %v5121_v49, %v5120_v16  ;;  %v5118_v13 = vpop.f32.mrb[35].mxu1 }
 0x73f   : > { %vm5123_vm11 = vcmp.gt.f32.partialorder %v5122_v27, 0.0  ;;  %v5125_v62 = vmul.f32 %v5124_v42, %v5122_v27 }
 0x741   : > { %v5126_v0 = vsel %vm5123_vm11, %v5122_v27, %v5125_v62 }
 0x742   : > { %v5127_v4 = vpack.c.bf16 %v5126_v0, %v5126_v0 }
 0x744   : > { %5834 = vmatmul.mubr.bf16.vlgmr.msra.gmra.mrb[36].mxu0 %v5127_v4 }
 0x817   : > { %v5227_v29 = vpop.f32.mrb[36].mxu0 }
 0x818   : > { %v5228_v18 = vadd.f32 %v5227_v29, %v5144_v37  ;;  %v5835_v60 = vpop.f32.mrb[37].mxu0 }
 0x819   : > { %v5230_v10 = vpop.f32.mrb[38].mxu0 }
 0x81a   : > { %v5233_v6 = vsub.f32 0.0, %v5228_v18  ;;  %5243 = vrot.lane.b32.xlu1 %v5228_v18, %s6577_s13  ;;  %v5836_v30 = vpop.f32.mrb[39].mxu0 }
 0x81c   : > { %v5234_v24 = vmul.f32 1.442695, %v5233_v6 }
 0x81e   : > { %6499 = vpow2.f32 %v5234_v24 }
 0x828   : > { %v6500_v34 = vpop.eup %6499 }
 0x829   : > { %v5236_v15 = vadd.f32 1.0, %v6500_v34 }
 0x82b   : > { %6501 = vrcp.f32 %v5236_v15 }
 0x835   : > { %v6502_v7 = vpop.eup %6501 }
 0x836   : > { %5241 = vst.msk [vmem:[%s5239_s16] sm:$0x1] %vm5240_vm12, %v6502_v7 }
 0x887   :  { %47 = sbr.rel (!%p45_p0) target bundleno = 2 (0x2), region = 98 }
 0x88c   : > { %v5244_v21 = vpop.permute.xlu1 %5243 }
 0x88d   : > { %5248 = vst.msk [vmem:[%s5246_s18] sm:$0x1] %vm5247_vm2, %v5244_v21 }
 0x88e   :  { %6514 = shalt.err (!%p6511_p5)
}
 0x88f   :  { %s6515_s24 = scalar_lea.hbm %s8538_s11, 32 }
 0x890   :  { %p6516_p6 = scmp.ne.s32.totalorder %s8538_s11, %s6515_s24  ;;  %p6519_p7 = scmp.lt.u32.totalorder %s6515_s24, %s8538_s11 }
 0x892   :  { %p6521_p8 = pnand %p6519_p7, %p6516_p6 }
 0x894   :  { %6524 = shalt.err (!%p6521_p8)
}
 0x895   :  { %s6579_s0 = smov 16   ;;  %s6580_s1 = smov 1  }
 0x896   :  { %5260 = dma.vmem_to_hbm [thread:$0]  %s5255_s23, 32, %s8538_s11, [#allocation7], %s6579_s0, %s6579_s0, %s6580_s1  }
 0x897   :  { %s6581_s4 = smov [#allocation8]  }
 0x898   :  { %s5266_s5 = sshll.u32 %s6581_s4, 4  ;;  %s5267_s5 = int_to_ptr.vmem [resolvable:$true] %s5266_s5 }
 0x899   :  { %s6525_s6 = scalar_lea.vmem %s5267_s5, 32  ;;  %p6530_p10 = scmp.lt.s32.totalorder %s5267_s5, %s5267_s5 }
 0x89a   :  { %p6526_p9 = scmp.ne.s32.totalorder %s5267_s5, %s6525_s6  ;;  %p6531_p11 = scmp.lt.s32.totalorder %s6525_s6, %s6525_s6 }
 0x89c   :  { %p6532_p12 = por %p6531_p11, %p6530_p10 }
 0x89e   :  { %p6533_p13 = pnand %p6532_p12, %p6526_p9 }
 0x8a0   :  { %6536 = shalt.err (!%p6533_p13)
}
 0x8a1   :  { %s6537_s9 = scalar_lea.hbm %s8539_s12, 32 }
 0x8a2   :  { %p6538_p0 = scmp.ne.s32.totalorder %s8539_s12, %s6537_s9  ;;  %p6541_p1 = scmp.lt.u32.totalorder %s6537_s9, %s8539_s12 }
 0x8a4   :  { %p6543_p2 = pnand %p6541_p1, %p6538_p0 }
 0x8a6   :  { %6546 = shalt.err (!%p6543_p2)
}
 0x8a7   :  { %5272 = dma.vmem_to_hbm [thread:$0]  %s5267_s5, 32, %s8539_s12, [#allocation9], %s6579_s0, %s6579_s0, %s6580_s1  }
 0x8a8   :  { %6551 = dma.done.wait [#allocation7], 32  }
 0x8a9   :  { %6552 = vsyncadd [#allocation7], 4294967264 }
 0x8aa   :  { %6553 = dma.done.wait [#allocation9], 32  }
 0x8ab   :  { %6554 = vsyncadd [#allocation9], 4294967264 }
 0x8ac   :  { %5279 = vsyncpa [#allocation7], 1 }
 0x8ad   :  { %5280 = vsyncpa [#allocation9], 1 }

</bundles_post_ra>
